<compile_context>
chip_gen: v5e
topology: v5e:2x2
jax: 0.10.0
libtpu: 0.0.40
codegen_flags: <defaults>
</compile_context>

<pallas_src>
import functools
import math

import jax
import jax.numpy as jnp
from jax import lax
from jax.experimental import pallas as pl
from jax.experimental.pallas import tpu as pltpu

LN_EPS = 1e-5


def _layernorm(x, gamma, beta):
    # PyTorch LayerNorm: biased variance, eps inside rsqrt.  fp32 math.
    mean = jnp.mean(x, axis=-1, keepdims=True)
    xc = x - mean
    var = jnp.mean(xc * xc, axis=-1, keepdims=True)
    return xc * lax.rsqrt(var + LN_EPS) * gamma + beta


def encoder_layer_kernel(
    # inputs
    x_ref,                                   # (1, S, E) bf16 full-seq slab (current batch)
    wq_ref, bq_ref, wk_ref, bk_ref, wv_ref, bv_ref,   # (H,E,Dh) bf16 / (H,1,Dh) f32
    wo_ref, bo_ref,                          # (H,Dh,E) bf16 / (1,E) f32
    ln1_g_ref, ln1_b_ref,                    # (1,E) f32
    w1_ref, b1_ref, w2_ref, b2_ref,          # (E,F) bf16 / (1,F) f32 / (F,E) bf16 / (1,E) f32
    ln2_g_ref, ln2_b_ref,                    # (1,E) f32
    # outputs
    o_ref,                                   # (1, Tq, E) query-row tile
    # scratch
    k_scr, v_scr,                            # (H, S, Dh) bf16 — persistent per batch element
    *, num_heads, head_dim, q_tile, kv_tile, num_kv_tiles,
):
    H, Dh, Tq, Tk = num_heads, head_dim, q_tile, kv_tile
    cd = k_scr.dtype                         # compute dtype for MXU inputs (bf16)
    f32 = jnp.float32
    E = bo_ref.shape[-1]
    qi = pl.program_id(1)

    # ---- K / V projection for the whole sequence: once per batch element,
    #      chunked over sequence rows (no full (S, E) fp32 transient). --------
    @pl.when(qi == 0)
    def _():
        for c in range(num_kv_tiles):
            xc = x_ref[0, c * Tk:(c + 1) * Tk, :]            # (Tk, E) bf16
            for h in range(H):
                kh = jnp.dot(xc, wk_ref[h], preferred_element_type=f32) + bk_ref[h]
                vh = jnp.dot(xc, wv_ref[h], preferred_element_type=f32) + bv_ref[h]
                k_scr[h, c * Tk:(c + 1) * Tk, :] = kh.astype(cd)
                v_scr[h, c * Tk:(c + 1) * Tk, :] = vh.astype(cd)

    # ---- Current query tile (sublane slice of the resident slab) ------------
    row0 = pl.multiple_of(qi * Tq, Tq)
    xq = x_ref[0, pl.ds(row0, Tq), :]                        # (Tq, E) bf16
    xq_f32 = xq.astype(f32)                                  # residual path

    inv_scale = 1.0 / math.sqrt(Dh)

    # ---- Attention: per-head, flash-style online softmax over KV chunks -----
    attn_out = jnp.zeros((Tq, E), f32)
    for h in range(H):
        q_h = (jnp.dot(xq, wq_ref[h], preferred_element_type=f32)
               + bq_ref[h]) * inv_scale                      # scale folded into Q
        q_h = q_h.astype(cd)                                 # (Tq, Dh)

        m_i = jnp.full((Tq, 1), -jnp.inf, f32)
        l_i = jnp.zeros((Tq, 1), f32)
        acc = jnp.zeros((Tq, Dh), f32)
        for c in range(num_kv_tiles):
            k_c = k_scr[h, c * Tk:(c + 1) * Tk, :]           # (Tk, Dh) bf16
            v_c = v_scr[h, c * Tk:(c + 1) * Tk, :]
            s = lax.dot_general(q_h, k_c, (((1,), (1,)), ((), ())),
                                preferred_element_type=f32)  # (Tq, Tk), no K^T materialized
            m_new = jnp.maximum(m_i, jnp.max(s, axis=-1, keepdims=True))
            alpha = jnp.exp(m_i - m_new)
            p = jnp.exp(s - m_new)
            l_i = alpha * l_i + jnp.sum(p, axis=-1, keepdims=True)
            acc = alpha * acc + jnp.dot(p.astype(cd), v_c,
                                        preferred_element_type=f32)
            m_i = m_new

        attn_h = acc / l_i                                   # exact fp32 softmax divide
        # Accumulated output projection: no (Tq, E) merge scratch, no lane
        # slices — per-head row-block of W_o is a head-major resident array.
        attn_out = attn_out + jnp.dot(attn_h.astype(cd), wo_ref[h],
                                      preferred_element_type=f32)
    attn_out = attn_out + bo_ref[...]

    # ---- Residual + LayerNorm 1 (fp32 vector math) ---------------------------
    x1 = _layernorm(xq_f32 + attn_out, ln1_g_ref[...], ln1_b_ref[...])

    # ---- Feed-forward (dropout == identity) ----------------------------------
    h1 = jnp.dot(x1.astype(cd), w1_ref[...], preferred_element_type=f32) + b1_ref[...]
    h1 = jnp.maximum(h1, 0.0)
    ff = jnp.dot(h1.astype(cd), w2_ref[...], preferred_element_type=f32) + b2_ref[...]

    # ---- Residual + LayerNorm 2 ----------------------------------------------
    x2 = _layernorm(x1 + ff, ln2_g_ref[...], ln2_b_ref[...])
    o_ref[0] = x2.astype(o_ref.dtype)


def _default_tile(seq_len, target):
    """Largest tile <= target that divides seq_len; prefer not going below 128."""
    if seq_len <= target:
        return seq_len
    for t in range(target, 127, -8):
        if seq_len % t == 0:
            return t
    # TODO(synk): for awkward sequence lengths, pad S in the wrapper instead of
    # shrinking tiles below 128.
    for t in range(target, 7, -8):
        if seq_len % t == 0:
            return t
    return seq_len


def _vmem_limit_bytes(S, E, F, H, Dh, q_tile, cd_bytes):
    """Estimate required VMEM and clamp vs. actual capacity (v7x headroom)."""
    lane = 128
    pad = lambda n: -(-n // lane) * lane
    weights = (3 * H * E * pad(Dh) + H * Dh * E + 2 * E * F) * cd_bytes \
        + (3 * H * pad(Dh) + 5 * E + F) * 4                  # biases / LN params
    x_slab = 2 * S * E * cd_bytes                            # double-buffered input slab
    out_tile = 2 * q_tile * E * 4                            # double-buffered output tile
    kv_scratch = 2 * H * S * pad(Dh) * cd_bytes
    working = 4 * q_tile * max(E, F) * 4                     # fp32 temporaries headroom
    est = weights + x_slab + out_tile + kv_scratch + working
    try:
        cap = int(getattr(pltpu.get_tpu_info(), "vmem_capacity_bytes", 64 << 20))
    except Exception:
        cap = 64 << 20
    ceiling = int(cap * 0.85)                                # leave compiler scratch headroom
    return max(1 << 20, min(max(32 << 20, int(est * 1.5) + (8 << 20)), ceiling))


def init_params(key, embed_dim, ff_dim):
    """Deterministic parameter init (Linear weights stored as (in, out), fp32)."""
    ks = jax.random.split(key, 8)

    def linear(k, fan_in, fan_out):
        bound = 1.0 / (fan_in ** 0.5)
        kw, kb = jax.random.split(k)
        w = jax.random.uniform(kw, (fan_in, fan_out), jnp.float32, -bound, bound)
        b = jax.random.uniform(kb, (1, fan_out), jnp.float32, -bound, bound)
        return w, b

    wq, bq = linear(ks[0], embed_dim, embed_dim)
    wk, bk = linear(ks[1], embed_dim, embed_dim)
    wv, bv = linear(ks[2], embed_dim, embed_dim)
    wo, bo = linear(ks[3], embed_dim, embed_dim)
    w1, b1 = linear(ks[4], embed_dim, ff_dim)
    w2, b2 = linear(ks[5], ff_dim, embed_dim)
    ones = jnp.ones((1, embed_dim), jnp.float32)
    zeros = jnp.zeros((1, embed_dim), jnp.float32)
    return dict(wq=wq, bq=bq, wk=wk, bk=bk, wv=wv, bv=bv, wo=wo, bo=bo,
                ln1_g=ones, ln1_b=zeros, w1=w1, b1=b1, w2=w2, b2=b2,
                ln2_g=ones, ln2_b=zeros)


def prepare_params(params, num_heads, compute_dtype=jnp.bfloat16):
    """Pre-cast matmul weights to the compute dtype ONCE and reshape attention
    projections head-major, so the kernel never lane-slices at non-128-aligned
    offsets and no per-call convert ops are emitted."""
    E = params["wq"].shape[0]
    assert E % num_heads == 0
    Dh = E // num_heads

    def qkv_w(w):   # (E, H*Dh) -> (H, E, Dh)
        return jnp.transpose(w.reshape(E, num_heads, Dh), (1, 0, 2)).astype(compute_dtype)

    def qkv_b(b):   # (1, H*Dh) -> (H, 1, Dh)
        return b.reshape(num_heads, 1, Dh).astype(jnp.float32)

    return dict(
        wq=qkv_w(params["wq"]), bq=qkv_b(params["bq"]),
        wk=qkv_w(params["wk"]), bk=qkv_b(params["bk"]),
        wv=qkv_w(params["wv"]), bv=qkv_b(params["bv"]),
        wo=params["wo"].reshape(num_heads, Dh, E).astype(compute_dtype),
        bo=params["bo"].astype(jnp.float32),
        ln1_g=params["ln1_g"].astype(jnp.float32),
        ln1_b=params["ln1_b"].astype(jnp.float32),
        w1=params["w1"].astype(compute_dtype), b1=params["b1"].astype(jnp.float32),
        w2=params["w2"].astype(compute_dtype), b2=params["b2"].astype(jnp.float32),
        ln2_g=params["ln2_g"].astype(jnp.float32),
        ln2_b=params["ln2_b"].astype(jnp.float32),
    )


def encoder_layer(x, prepped, num_heads, *, q_tile=None, kv_tile=None,
                  compute_dtype=jnp.bfloat16):
    B, S, E = x.shape
    H = num_heads
    Dh = prepped["wq"].shape[-1]
    F = prepped["w1"].shape[1]
    assert H * Dh == E

    if q_tile is None:
        q_tile = _default_tile(S, 256)
    if kv_tile is None:
        kv_tile = _default_tile(S, 512)
    assert S % q_tile == 0 and (q_tile == S or q_tile % 8 == 0), \
        "q_tile must divide seq_len and be a multiple of 8"
    assert S % kv_tile == 0, "kv_tile must divide seq_len"
    num_q_tiles = S // q_tile
    num_kv_tiles = S // kv_tile
    cd = compute_dtype
    cd_bytes = jnp.dtype(cd).itemsize

    # Weights/biases: whole-array VMEM residents (copied once, not
    # double-buffered by the pipeline).
    resident = pl.BlockSpec(memory_space=pltpu.MemorySpace.VMEM)
    in_specs = [
        # x: full (S, E) bf16 slab per batch element; block index is constant
        # over the q axis so it is only re-fetched when the batch changes.
        pl.BlockSpec((1, S, E), lambda b, q: (b, 0, 0)),
    ] + [resident] * 16

    kernel = functools.partial(
        encoder_layer_kernel, num_heads=H, head_dim=Dh,
        q_tile=q_tile, kv_tile=kv_tile, num_kv_tiles=num_kv_tiles)

    grid_spec = pltpu.PrefetchScalarGridSpec(
        num_scalar_prefetch=0,
        grid=(B, num_q_tiles),
        in_specs=in_specs,
        out_specs=pl.BlockSpec((1, q_tile, E), lambda b, q: (b, q, 0)),
        scratch_shapes=[
            pltpu.VMEM((H, S, Dh), cd),      # K per head (persistent per batch element)
            pltpu.VMEM((H, S, Dh), cd),      # V per head
        ],
    )

    flops = int(2 * B * S * (4 * E * E + 2 * S * E + 2 * E * F))
    bytes_accessed = int(B * S * E * (cd_bytes + 4)
                         + (4 * E * E + 2 * E * F) * cd_bytes)
    cost = pl.CostEstimate(flops=flops, transcendentals=int(B * H * S * S),
                           bytes_accessed=bytes_accessed)

    # TODO(synk): on v7x (2 TensorCores) with B == 1, restructure so the q axis
    # can be core-parallel; the K/V scratch persistence requires the q axis to
    # stay sequential ("arbitrary") on one core.
    return pl.pallas_call(
        kernel,
        out_shape=jax.ShapeDtypeStruct((B, S, E), x.dtype),
        grid_spec=grid_spec,
        compiler_params=pltpu.CompilerParams(
            dimension_semantics=("parallel", "arbitrary"),
            vmem_limit_bytes=_vmem_limit_bytes(S, E, F, H, Dh, q_tile, cd_bytes),
        ),
        cost_estimate=cost,
    )(x.astype(cd),
      prepped["wq"], prepped["bq"], prepped["wk"], prepped["bk"],
      prepped["wv"], prepped["bv"], prepped["wo"], prepped["bo"],
      prepped["ln1_g"], prepped["ln1_b"],
      prepped["w1"], prepped["b1"], prepped["w2"], prepped["b2"],
      prepped["ln2_g"], prepped["ln2_b"])


def encoder_layer_reference(x, params, num_heads):
    """Pure-JAX fp32 reference mirroring the PyTorch module (mask=None)."""
    B, S, E = x.shape
    Dh = E // num_heads

    q = x @ params["wq"] + params["bq"]
    k = x @ params["wk"] + params["bk"]
    v = x @ params["wv"] + params["bv"]

    def split(t):
        return t.reshape(B, S, num_heads, Dh).transpose(0, 2, 1, 3)

    qh, kh, vh = split(q), split(k), split(v)
    scores = jnp.einsum("bhqd,bhkd->bhqk", qh, kh) / (Dh ** 0.5)
    w = jax.nn.softmax(scores, axis=-1)
    attn = jnp.einsum("bhqk,bhkd->bhqd", w, vh)
    attn = attn.transpose(0, 2, 1, 3).reshape(B, S, E)
    attn = attn @ params["wo"] + params["bo"]

    def ln(t, g, b):
        m = jnp.mean(t, axis=-1, keepdims=True)
        var = jnp.mean((t - m) ** 2, axis=-1, keepdims=True)
        return (t - m) * lax.rsqrt(var + LN_EPS) * g + b

    x1 = ln(x + attn, params["ln1_g"], params["ln1_b"])
    h1 = jnp.maximum(x1 @ params["w1"] + params["b1"], 0.0)
    ff = h1 @ params["w2"] + params["b2"]
    return ln(x1 + ff, params["ln2_g"], params["ln2_b"])


if __name__ == "__main__":
    # Small, lane-friendly demo shapes: E and F multiples of 128; two query
    # tiles and two KV chunks per batch element so the @pl.when K/V scratch
    # persistence AND the online-softmax chunk loop are both exercised.
    B, S, E, H, F = 2, 32, 128, 4, 256
    key = jax.random.PRNGKey(0)
    kx, kp = jax.random.split(key)
    x = jax.random.normal(kx, (B, S, E), jnp.float32)
    params = init_params(kp, E, F)
    prepped = prepare_params(params, num_heads=H)

    out = encoder_layer(x, prepped, num_heads=H, q_tile=16, kv_tile=16)
    out = jax.block_until_ready(out)
    assert out.shape == (B, S, E) and out.dtype == jnp.float32

    # Loose tolerance: kernel feeds the MXU bf16 inputs (fp32 accumulation) and
    # the residual x is bf16-rounded at the kernel boundary.
    ref = encoder_layer_reference(x, params, num_heads=H)
    err = float(jnp.max(jnp.abs(out - ref)))
    assert err < 0.25, f"kernel/reference mismatch: max abs err = {err}"
    print("KERNEL_OK")
</pallas_src>

<mosaic_0001>
module attributes {stable_mosaic.version = 11 : i64} {
  func.func @encoder_layer_kernel(%arg0: i32, %arg1: i32, %arg2: memref<1x32x128xbf16, #tpu.memory_space<vmem>>, %arg3: memref<4x128x32xbf16, #tpu.memory_space<vmem>>, %arg4: memref<4x1x32xf32, #tpu.memory_space<vmem>>, %arg5: memref<4x128x32xbf16, #tpu.memory_space<vmem>>, %arg6: memref<4x1x32xf32, #tpu.memory_space<vmem>>, %arg7: memref<4x128x32xbf16, #tpu.memory_space<vmem>>, %arg8: memref<4x1x32xf32, #tpu.memory_space<vmem>>, %arg9: memref<4x32x128xbf16, #tpu.memory_space<vmem>>, %arg10: memref<1x128xf32, #tpu.memory_space<vmem>>, %arg11: memref<1x128xf32, #tpu.memory_space<vmem>>, %arg12: memref<1x128xf32, #tpu.memory_space<vmem>>, %arg13: memref<128x256xbf16, #tpu.memory_space<vmem>>, %arg14: memref<1x256xf32, #tpu.memory_space<vmem>>, %arg15: memref<256x128xbf16, #tpu.memory_space<vmem>>, %arg16: memref<1x128xf32, #tpu.memory_space<vmem>>, %arg17: memref<1x128xf32, #tpu.memory_space<vmem>>, %arg18: memref<1x128xf32, #tpu.memory_space<vmem>>, %arg19: memref<1x16x128xf32, #tpu.memory_space<vmem>>, %arg20: memref<4x32x32xbf16, #tpu.memory_space<vmem>>, %arg21: memref<4x32x32xbf16, #tpu.memory_space<vmem>>) attributes {dimension_semantics = [#tpu.dimension_semantics<parallel>, #tpu.dimension_semantics<arbitrary>], iteration_bounds = array<i64: 2, 2>, scalar_prefetch = 0 : i64, scratch_operands = 2 : i64, tpu.core_type = #tpu.core_type<tc>, window_params = [{transform_indices = @transform_0, window_bounds = array<i64: 1, 32, 128>}, {pipeline_mode = #tpu.pipeline_mode<synchronous>, transform_indices = @transform_1, window_bounds = array<i64: 4, 128, 32>}, {pipeline_mode = #tpu.pipeline_mode<synchronous>, transform_indices = @transform_2, window_bounds = array<i64: 4, 1, 32>}, {pipeline_mode = #tpu.pipeline_mode<synchronous>, transform_indices = @transform_3, window_bounds = array<i64: 4, 128, 32>}, {pipeline_mode = #tpu.pipeline_mode<synchronous>, transform_indices = @transform_4, window_bounds = array<i64: 4, 1, 32>}, {pipeline_mode = #tpu.pipeline_mode<synchronous>, transform_indices = @transform_5, window_bounds = array<i64: 4, 128, 32>}, {pipeline_mode = #tpu.pipeline_mode<synchronous>, transform_indices = @transform_6, window_bounds = array<i64: 4, 1, 32>}, {pipeline_mode = #tpu.pipeline_mode<synchronous>, transform_indices = @transform_7, window_bounds = array<i64: 4, 32, 128>}, {pipeline_mode = #tpu.pipeline_mode<synchronous>, transform_indices = @transform_8, window_bounds = array<i64: 1, 128>}, {pipeline_mode = #tpu.pipeline_mode<synchronous>, transform_indices = @transform_9, window_bounds = array<i64: 1, 128>}, {pipeline_mode = #tpu.pipeline_mode<synchronous>, transform_indices = @transform_10, window_bounds = array<i64: 1, 128>}, {pipeline_mode = #tpu.pipeline_mode<synchronous>, transform_indices = @transform_11, window_bounds = array<i64: 128, 256>}, {pipeline_mode = #tpu.pipeline_mode<synchronous>, transform_indices = @transform_12, window_bounds = array<i64: 1, 256>}, {pipeline_mode = #tpu.pipeline_mode<synchronous>, transform_indices = @transform_13, window_bounds = array<i64: 256, 128>}, {pipeline_mode = #tpu.pipeline_mode<synchronous>, transform_indices = @transform_14, window_bounds = array<i64: 1, 128>}, {pipeline_mode = #tpu.pipeline_mode<synchronous>, transform_indices = @transform_15, window_bounds = array<i64: 1, 128>}, {pipeline_mode = #tpu.pipeline_mode<synchronous>, transform_indices = @transform_16, window_bounds = array<i64: 1, 128>}, {transform_indices = @transform_17, window_bounds = array<i64: 1, 16, 128>}]} {
    %c0_i32 = arith.constant 0 : i32
    %0 = arith.cmpi eq, %arg1, %c0_i32 : i32
    %1 = arith.extui %0 : i1 to i32
    %c0_i32_0 = arith.constant 0 : i32
    %2 = arith.cmpi ne, %1, %c0_i32_0 : i32
    scf.if %2 {
      %c0_172 = arith.constant 0 : index
      %c0_173 = arith.constant 0 : index
      %c0_174 = arith.constant 0 : index
      %332 = vector.load %arg2[%c0_172, %c0_173, %c0_174] : memref<1x32x128xbf16, #tpu.memory_space<vmem>>, vector<1x16x128xbf16>
      %333 = vector.shape_cast %332 : vector<1x16x128xbf16> to vector<16x128xbf16>
      %c0_175 = arith.constant 0 : index
      %c0_176 = arith.constant 0 : index
      %c0_177 = arith.constant 0 : index
      %334 = vector.load %arg5[%c0_175, %c0_176, %c0_177] : memref<4x128x32xbf16, #tpu.memory_space<vmem>>, vector<1x128x32xbf16>
      %335 = vector.shape_cast %334 : vector<1x128x32xbf16> to vector<128x32xbf16>
      %cst_178 = arith.constant dense<0.000000e+00> : vector<16x32xf32>
      %336 = tpu.matmul %333, %335, %cst_178 {dimension_numbers = #tpu.dot_dimension_numbers<[1], [0], [0], [1], [0, 0, 1, 1], [], []>} : vector<16x128xbf16>, vector<128x32xbf16>, vector<16x32xf32> -> vector<16x32xf32>
      %c0_179 = arith.constant 0 : index
      %c0_180 = arith.constant 0 : index
      %c0_181 = arith.constant 0 : index
      %337 = vector.load %arg6[%c0_179, %c0_180, %c0_181] : memref<4x1x32xf32, #tpu.memory_space<vmem>>, vector<1x1x32xf32>
      %338 = vector.shape_cast %337 : vector<1x1x32xf32> to vector<1x32xf32>
      %339 = vector.broadcast %338 : vector<1x32xf32> to vector<16x32xf32>
      %340 = arith.addf %336, %339 : vector<16x32xf32>
      %c0_182 = arith.constant 0 : index
      %c0_183 = arith.constant 0 : index
      %c0_184 = arith.constant 0 : index
      %341 = vector.load %arg7[%c0_182, %c0_183, %c0_184] : memref<4x128x32xbf16, #tpu.memory_space<vmem>>, vector<1x128x32xbf16>
      %342 = vector.shape_cast %341 : vector<1x128x32xbf16> to vector<128x32xbf16>
      %cst_185 = arith.constant dense<0.000000e+00> : vector<16x32xf32>
      %343 = tpu.matmul %333, %342, %cst_185 {dimension_numbers = #tpu.dot_dimension_numbers<[1], [0], [0], [1], [0, 0, 1, 1], [], []>} : vector<16x128xbf16>, vector<128x32xbf16>, vector<16x32xf32> -> vector<16x32xf32>
      %c0_186 = arith.constant 0 : index
      %c0_187 = arith.constant 0 : index
      %c0_188 = arith.constant 0 : index
      %344 = vector.load %arg8[%c0_186, %c0_187, %c0_188] : memref<4x1x32xf32, #tpu.memory_space<vmem>>, vector<1x1x32xf32>
      %345 = vector.shape_cast %344 : vector<1x1x32xf32> to vector<1x32xf32>
      %346 = vector.broadcast %345 : vector<1x32xf32> to vector<16x32xf32>
      %347 = arith.addf %343, %346 : vector<16x32xf32>
      %348 = arith.truncf %340 : vector<16x32xf32> to vector<16x32xbf16>
      %c0_189 = arith.constant 0 : index
      %c0_190 = arith.constant 0 : index
      %c0_191 = arith.constant 0 : index
      %349 = vector.load %arg20[%c0_189, %c0_190, %c0_191] : memref<4x32x32xbf16, #tpu.memory_space<vmem>>, vector<1x16x32xbf16>
      %350 = vector.shape_cast %349 : vector<1x16x32xbf16> to vector<16x32xbf16>
      %351 = vector.shape_cast %348 : vector<16x32xbf16> to vector<1x16x32xbf16>
      tpu.vector_store %arg20[%c0_189, %c0_190, %c0_191], %351 {strides = array<i32>} : memref<4x32x32xbf16, #tpu.memory_space<vmem>>, vector<1x16x32xbf16>,
      %352 = arith.truncf %347 : vector<16x32xf32> to vector<16x32xbf16>
      %c0_192 = arith.constant 0 : index
      %c0_193 = arith.constant 0 : index
      %c0_194 = arith.constant 0 : index
      %353 = vector.load %arg21[%c0_192, %c0_193, %c0_194] : memref<4x32x32xbf16, #tpu.memory_space<vmem>>, vector<1x16x32xbf16>
      %354 = vector.shape_cast %353 : vector<1x16x32xbf16> to vector<16x32xbf16>
      %355 = vector.shape_cast %352 : vector<16x32xbf16> to vector<1x16x32xbf16>
      tpu.vector_store %arg21[%c0_192, %c0_193, %c0_194], %355 {strides = array<i32>} : memref<4x32x32xbf16, #tpu.memory_space<vmem>>, vector<1x16x32xbf16>,
      %c1_195 = arith.constant 1 : index
      %c0_196 = arith.constant 0 : index
      %c0_197 = arith.constant 0 : index
      %356 = vector.load %arg5[%c1_195, %c0_196, %c0_197] : memref<4x128x32xbf16, #tpu.memory_space<vmem>>, vector<1x128x32xbf16>
      %357 = vector.shape_cast %356 : vector<1x128x32xbf16> to vector<128x32xbf16>
      %cst_198 = arith.constant dense<0.000000e+00> : vector<16x32xf32>
      %358 = tpu.matmul %333, %357, %cst_198 {dimension_numbers = #tpu.dot_dimension_numbers<[1], [0], [0], [1], [0, 0, 1, 1], [], []>} : vector<16x128xbf16>, vector<128x32xbf16>, vector<16x32xf32> -> vector<16x32xf32>
      %c1_199 = arith.constant 1 : index
      %c0_200 = arith.constant 0 : index
      %c0_201 = arith.constant 0 : index
      %359 = vector.load %arg6[%c1_199, %c0_200, %c0_201] : memref<4x1x32xf32, #tpu.memory_space<vmem>>, vector<1x1x32xf32>
      %360 = vector.shape_cast %359 : vector<1x1x32xf32> to vector<1x32xf32>
      %361 = vector.broadcast %360 : vector<1x32xf32> to vector<16x32xf32>
      %362 = arith.addf %358, %361 : vector<16x32xf32>
      %c1_202 = arith.constant 1 : index
      %c0_203 = arith.constant 0 : index
      %c0_204 = arith.constant 0 : index
      %363 = vector.load %arg7[%c1_202, %c0_203, %c0_204] : memref<4x128x32xbf16, #tpu.memory_space<vmem>>, vector<1x128x32xbf16>
      %364 = vector.shape_cast %363 : vector<1x128x32xbf16> to vector<128x32xbf16>
      %cst_205 = arith.constant dense<0.000000e+00> : vector<16x32xf32>
      %365 = tpu.matmul %333, %364, %cst_205 {dimension_numbers = #tpu.dot_dimension_numbers<[1], [0], [0], [1], [0, 0, 1, 1], [], []>} : vector<16x128xbf16>, vector<128x32xbf16>, vector<16x32xf32> -> vector<16x32xf32>
      %c1_206 = arith.constant 1 : index
      %c0_207 = arith.constant 0 : index
      %c0_208 = arith.constant 0 : index
      %366 = vector.load %arg8[%c1_206, %c0_207, %c0_208] : memref<4x1x32xf32, #tpu.memory_space<vmem>>, vector<1x1x32xf32>
      %367 = vector.shape_cast %366 : vector<1x1x32xf32> to vector<1x32xf32>
      %368 = vector.broadcast %367 : vector<1x32xf32> to vector<16x32xf32>
      %369 = arith.addf %365, %368 : vector<16x32xf32>
      %370 = arith.truncf %362 : vector<16x32xf32> to vector<16x32xbf16>
      %c1_209 = arith.constant 1 : index
      %c0_210 = arith.constant 0 : index
      %c0_211 = arith.constant 0 : index
      %371 = vector.load %arg20[%c1_209, %c0_210, %c0_211] : memref<4x32x32xbf16, #tpu.memory_space<vmem>>, vector<1x16x32xbf16>
      %372 = vector.shape_cast %371 : vector<1x16x32xbf16> to vector<16x32xbf16>
      %373 = vector.shape_cast %370 : vector<16x32xbf16> to vector<1x16x32xbf16>
      tpu.vector_store %arg20[%c1_209, %c0_210, %c0_211], %373 {strides = array<i32>} : memref<4x32x32xbf16, #tpu.memory_space<vmem>>, vector<1x16x32xbf16>,
      %374 = arith.truncf %369 : vector<16x32xf32> to vector<16x32xbf16>
      %c1_212 = arith.constant 1 : index
      %c0_213 = arith.constant 0 : index
      %c0_214 = arith.constant 0 : index
      %375 = vector.load %arg21[%c1_212, %c0_213, %c0_214] : memref<4x32x32xbf16, #tpu.memory_space<vmem>>, vector<1x16x32xbf16>
      %376 = vector.shape_cast %375 : vector<1x16x32xbf16> to vector<16x32xbf16>
      %377 = vector.shape_cast %374 : vector<16x32xbf16> to vector<1x16x32xbf16>
      tpu.vector_store %arg21[%c1_212, %c0_213, %c0_214], %377 {strides = array<i32>} : memref<4x32x32xbf16, #tpu.memory_space<vmem>>, vector<1x16x32xbf16>,
      %c2_215 = arith.constant 2 : index
      %c0_216 = arith.constant 0 : index
      %c0_217 = arith.constant 0 : index
      %378 = vector.load %arg5[%c2_215, %c0_216, %c0_217] : memref<4x128x32xbf16, #tpu.memory_space<vmem>>, vector<1x128x32xbf16>
      %379 = vector.shape_cast %378 : vector<1x128x32xbf16> to vector<128x32xbf16>
      %cst_218 = arith.constant dense<0.000000e+00> : vector<16x32xf32>
      %380 = tpu.matmul %333, %379, %cst_218 {dimension_numbers = #tpu.dot_dimension_numbers<[1], [0], [0], [1], [0, 0, 1, 1], [], []>} : vector<16x128xbf16>, vector<128x32xbf16>, vector<16x32xf32> -> vector<16x32xf32>
      %c2_219 = arith.constant 2 : index
      %c0_220 = arith.constant 0 : index
      %c0_221 = arith.constant 0 : index
      %381 = vector.load %arg6[%c2_219, %c0_220, %c0_221] : memref<4x1x32xf32, #tpu.memory_space<vmem>>, vector<1x1x32xf32>
      %382 = vector.shape_cast %381 : vector<1x1x32xf32> to vector<1x32xf32>
      %383 = vector.broadcast %382 : vector<1x32xf32> to vector<16x32xf32>
      %384 = arith.addf %380, %383 : vector<16x32xf32>
      %c2_222 = arith.constant 2 : index
      %c0_223 = arith.constant 0 : index
      %c0_224 = arith.constant 0 : index
      %385 = vector.load %arg7[%c2_222, %c0_223, %c0_224] : memref<4x128x32xbf16, #tpu.memory_space<vmem>>, vector<1x128x32xbf16>
      %386 = vector.shape_cast %385 : vector<1x128x32xbf16> to vector<128x32xbf16>
      %cst_225 = arith.constant dense<0.000000e+00> : vector<16x32xf32>
      %387 = tpu.matmul %333, %386, %cst_225 {dimension_numbers = #tpu.dot_dimension_numbers<[1], [0], [0], [1], [0, 0, 1, 1], [], []>} : vector<16x128xbf16>, vector<128x32xbf16>, vector<16x32xf32> -> vector<16x32xf32>
      %c2_226 = arith.constant 2 : index
      %c0_227 = arith.constant 0 : index
      %c0_228 = arith.constant 0 : index
      %388 = vector.load %arg8[%c2_226, %c0_227, %c0_228] : memref<4x1x32xf32, #tpu.memory_space<vmem>>, vector<1x1x32xf32>
      %389 = vector.shape_cast %388 : vector<1x1x32xf32> to vector<1x32xf32>
      %390 = vector.broadcast %389 : vector<1x32xf32> to vector<16x32xf32>
      %391 = arith.addf %387, %390 : vector<16x32xf32>
      %392 = arith.truncf %384 : vector<16x32xf32> to vector<16x32xbf16>
      %c2_229 = arith.constant 2 : index
      %c0_230 = arith.constant 0 : index
      %c0_231 = arith.constant 0 : index
      %393 = vector.load %arg20[%c2_229, %c0_230, %c0_231] : memref<4x32x32xbf16, #tpu.memory_space<vmem>>, vector<1x16x32xbf16>
      %394 = vector.shape_cast %393 : vector<1x16x32xbf16> to vector<16x32xbf16>
      %395 = vector.shape_cast %392 : vector<16x32xbf16> to vector<1x16x32xbf16>
      tpu.vector_store %arg20[%c2_229, %c0_230, %c0_231], %395 {strides = array<i32>} : memref<4x32x32xbf16, #tpu.memory_space<vmem>>, vector<1x16x32xbf16>,
      %396 = arith.truncf %391 : vector<16x32xf32> to vector<16x32xbf16>
      %c2_232 = arith.constant 2 : index
      %c0_233 = arith.constant 0 : index
      %c0_234 = arith.constant 0 : index
      %397 = vector.load %arg21[%c2_232, %c0_233, %c0_234] : memref<4x32x32xbf16, #tpu.memory_space<vmem>>, vector<1x16x32xbf16>
      %398 = vector.shape_cast %397 : vector<1x16x32xbf16> to vector<16x32xbf16>
      %399 = vector.shape_cast %396 : vector<16x32xbf16> to vector<1x16x32xbf16>
      tpu.vector_store %arg21[%c2_232, %c0_233, %c0_234], %399 {strides = array<i32>} : memref<4x32x32xbf16, #tpu.memory_space<vmem>>, vector<1x16x32xbf16>,
      %c3_235 = arith.constant 3 : index
      %c0_236 = arith.constant 0 : index
      %c0_237 = arith.constant 0 : index
      %400 = vector.load %arg5[%c3_235, %c0_236, %c0_237] : memref<4x128x32xbf16, #tpu.memory_space<vmem>>, vector<1x128x32xbf16>
      %401 = vector.shape_cast %400 : vector<1x128x32xbf16> to vector<128x32xbf16>
      %cst_238 = arith.constant dense<0.000000e+00> : vector<16x32xf32>
      %402 = tpu.matmul %333, %401, %cst_238 {dimension_numbers = #tpu.dot_dimension_numbers<[1], [0], [0], [1], [0, 0, 1, 1], [], []>} : vector<16x128xbf16>, vector<128x32xbf16>, vector<16x32xf32> -> vector<16x32xf32>
      %c3_239 = arith.constant 3 : index
      %c0_240 = arith.constant 0 : index
      %c0_241 = arith.constant 0 : index
      %403 = vector.load %arg6[%c3_239, %c0_240, %c0_241] : memref<4x1x32xf32, #tpu.memory_space<vmem>>, vector<1x1x32xf32>
      %404 = vector.shape_cast %403 : vector<1x1x32xf32> to vector<1x32xf32>
      %405 = vector.broadcast %404 : vector<1x32xf32> to vector<16x32xf32>
      %406 = arith.addf %402, %405 : vector<16x32xf32>
      %c3_242 = arith.constant 3 : index
      %c0_243 = arith.constant 0 : index
      %c0_244 = arith.constant 0 : index
      %407 = vector.load %arg7[%c3_242, %c0_243, %c0_244] : memref<4x128x32xbf16, #tpu.memory_space<vmem>>, vector<1x128x32xbf16>
      %408 = vector.shape_cast %407 : vector<1x128x32xbf16> to vector<128x32xbf16>
      %cst_245 = arith.constant dense<0.000000e+00> : vector<16x32xf32>
      %409 = tpu.matmul %333, %408, %cst_245 {dimension_numbers = #tpu.dot_dimension_numbers<[1], [0], [0], [1], [0, 0, 1, 1], [], []>} : vector<16x128xbf16>, vector<128x32xbf16>, vector<16x32xf32> -> vector<16x32xf32>
      %c3_246 = arith.constant 3 : index
      %c0_247 = arith.constant 0 : index
      %c0_248 = arith.constant 0 : index
      %410 = vector.load %arg8[%c3_246, %c0_247, %c0_248] : memref<4x1x32xf32, #tpu.memory_space<vmem>>, vector<1x1x32xf32>
      %411 = vector.shape_cast %410 : vector<1x1x32xf32> to vector<1x32xf32>
      %412 = vector.broadcast %411 : vector<1x32xf32> to vector<16x32xf32>
      %413 = arith.addf %409, %412 : vector<16x32xf32>
      %414 = arith.truncf %406 : vector<16x32xf32> to vector<16x32xbf16>
      %c3_249 = arith.constant 3 : index
      %c0_250 = arith.constant 0 : index
      %c0_251 = arith.constant 0 : index
      %415 = vector.load %arg20[%c3_249, %c0_250, %c0_251] : memref<4x32x32xbf16, #tpu.memory_space<vmem>>, vector<1x16x32xbf16>
      %416 = vector.shape_cast %415 : vector<1x16x32xbf16> to vector<16x32xbf16>
      %417 = vector.shape_cast %414 : vector<16x32xbf16> to vector<1x16x32xbf16>
      tpu.vector_store %arg20[%c3_249, %c0_250, %c0_251], %417 {strides = array<i32>} : memref<4x32x32xbf16, #tpu.memory_space<vmem>>, vector<1x16x32xbf16>,
      %418 = arith.truncf %413 : vector<16x32xf32> to vector<16x32xbf16>
      %c3_252 = arith.constant 3 : index
      %c0_253 = arith.constant 0 : index
      %c0_254 = arith.constant 0 : index
      %419 = vector.load %arg21[%c3_252, %c0_253, %c0_254] : memref<4x32x32xbf16, #tpu.memory_space<vmem>>, vector<1x16x32xbf16>
      %420 = vector.shape_cast %419 : vector<1x16x32xbf16> to vector<16x32xbf16>
      %421 = vector.shape_cast %418 : vector<16x32xbf16> to vector<1x16x32xbf16>
      tpu.vector_store %arg21[%c3_252, %c0_253, %c0_254], %421 {strides = array<i32>} : memref<4x32x32xbf16, #tpu.memory_space<vmem>>, vector<1x16x32xbf16>,
      %c0_255 = arith.constant 0 : index
      %c16_256 = arith.constant 16 : index
      %c0_257 = arith.constant 0 : index
      %422 = vector.load %arg2[%c0_255, %c16_256, %c0_257] : memref<1x32x128xbf16, #tpu.memory_space<vmem>>, vector<1x16x128xbf16>
      %423 = vector.shape_cast %422 : vector<1x16x128xbf16> to vector<16x128xbf16>
      %c0_258 = arith.constant 0 : index
      %c0_259 = arith.constant 0 : index
      %c0_260 = arith.constant 0 : index
      %424 = vector.load %arg5[%c0_258, %c0_259, %c0_260] : memref<4x128x32xbf16, #tpu.memory_space<vmem>>, vector<1x128x32xbf16>
      %425 = vector.shape_cast %424 : vector<1x128x32xbf16> to vector<128x32xbf16>
      %cst_261 = arith.constant dense<0.000000e+00> : vector<16x32xf32>
      %426 = tpu.matmul %423, %425, %cst_261 {dimension_numbers = #tpu.dot_dimension_numbers<[1], [0], [0], [1], [0, 0, 1, 1], [], []>} : vector<16x128xbf16>, vector<128x32xbf16>, vector<16x32xf32> -> vector<16x32xf32>
      %c0_262 = arith.constant 0 : index
      %c0_263 = arith.constant 0 : index
      %c0_264 = arith.constant 0 : index
      %427 = vector.load %arg6[%c0_262, %c0_263, %c0_264] : memref<4x1x32xf32, #tpu.memory_space<vmem>>, vector<1x1x32xf32>
      %428 = vector.shape_cast %427 : vector<1x1x32xf32> to vector<1x32xf32>
      %429 = vector.broadcast %428 : vector<1x32xf32> to vector<16x32xf32>
      %430 = arith.addf %426, %429 : vector<16x32xf32>
      %c0_265 = arith.constant 0 : index
      %c0_266 = arith.constant 0 : index
      %c0_267 = arith.constant 0 : index
      %431 = vector.load %arg7[%c0_265, %c0_266, %c0_267] : memref<4x128x32xbf16, #tpu.memory_space<vmem>>, vector<1x128x32xbf16>
      %432 = vector.shape_cast %431 : vector<1x128x32xbf16> to vector<128x32xbf16>
      %cst_268 = arith.constant dense<0.000000e+00> : vector<16x32xf32>
      %433 = tpu.matmul %423, %432, %cst_268 {dimension_numbers = #tpu.dot_dimension_numbers<[1], [0], [0], [1], [0, 0, 1, 1], [], []>} : vector<16x128xbf16>, vector<128x32xbf16>, vector<16x32xf32> -> vector<16x32xf32>
      %c0_269 = arith.constant 0 : index
      %c0_270 = arith.constant 0 : index
      %c0_271 = arith.constant 0 : index
      %434 = vector.load %arg8[%c0_269, %c0_270, %c0_271] : memref<4x1x32xf32, #tpu.memory_space<vmem>>, vector<1x1x32xf32>
      %435 = vector.shape_cast %434 : vector<1x1x32xf32> to vector<1x32xf32>
      %436 = vector.broadcast %435 : vector<1x32xf32> to vector<16x32xf32>
      %437 = arith.addf %433, %436 : vector<16x32xf32>
      %438 = arith.truncf %430 : vector<16x32xf32> to vector<16x32xbf16>
      %c0_272 = arith.constant 0 : index
      %c16_273 = arith.constant 16 : index
      %c0_274 = arith.constant 0 : index
      %439 = vector.load %arg20[%c0_272, %c16_273, %c0_274] : memref<4x32x32xbf16, #tpu.memory_space<vmem>>, vector<1x16x32xbf16>
      %440 = vector.shape_cast %439 : vector<1x16x32xbf16> to vector<16x32xbf16>
      %441 = vector.shape_cast %438 : vector<16x32xbf16> to vector<1x16x32xbf16>
      tpu.vector_store %arg20[%c0_272, %c16_273, %c0_274], %441 {strides = array<i32>} : memref<4x32x32xbf16, #tpu.memory_space<vmem>>, vector<1x16x32xbf16>,
      %442 = arith.truncf %437 : vector<16x32xf32> to vector<16x32xbf16>
      %c0_275 = arith.constant 0 : index
      %c16_276 = arith.constant 16 : index
      %c0_277 = arith.constant 0 : index
      %443 = vector.load %arg21[%c0_275, %c16_276, %c0_277] : memref<4x32x32xbf16, #tpu.memory_space<vmem>>, vector<1x16x32xbf16>
      %444 = vector.shape_cast %443 : vector<1x16x32xbf16> to vector<16x32xbf16>
      %445 = vector.shape_cast %442 : vector<16x32xbf16> to vector<1x16x32xbf16>
      tpu.vector_store %arg21[%c0_275, %c16_276, %c0_277], %445 {strides = array<i32>} : memref<4x32x32xbf16, #tpu.memory_space<vmem>>, vector<1x16x32xbf16>,
      %c1_278 = arith.constant 1 : index
      %c0_279 = arith.constant 0 : index
      %c0_280 = arith.constant 0 : index
      %446 = vector.load %arg5[%c1_278, %c0_279, %c0_280] : memref<4x128x32xbf16, #tpu.memory_space<vmem>>, vector<1x128x32xbf16>
      %447 = vector.shape_cast %446 : vector<1x128x32xbf16> to vector<128x32xbf16>
      %cst_281 = arith.constant dense<0.000000e+00> : vector<16x32xf32>
      %448 = tpu.matmul %423, %447, %cst_281 {dimension_numbers = #tpu.dot_dimension_numbers<[1], [0], [0], [1], [0, 0, 1, 1], [], []>} : vector<16x128xbf16>, vector<128x32xbf16>, vector<16x32xf32> -> vector<16x32xf32>
      %c1_282 = arith.constant 1 : index
      %c0_283 = arith.constant 0 : index
      %c0_284 = arith.constant 0 : index
      %449 = vector.load %arg6[%c1_282, %c0_283, %c0_284] : memref<4x1x32xf32, #tpu.memory_space<vmem>>, vector<1x1x32xf32>
      %450 = vector.shape_cast %449 : vector<1x1x32xf32> to vector<1x32xf32>
      %451 = vector.broadcast %450 : vector<1x32xf32> to vector<16x32xf32>
      %452 = arith.addf %448, %451 : vector<16x32xf32>
      %c1_285 = arith.constant 1 : index
      %c0_286 = arith.constant 0 : index
      %c0_287 = arith.constant 0 : index
      %453 = vector.load %arg7[%c1_285, %c0_286, %c0_287] : memref<4x128x32xbf16, #tpu.memory_space<vmem>>, vector<1x128x32xbf16>
      %454 = vector.shape_cast %453 : vector<1x128x32xbf16> to vector<128x32xbf16>
      %cst_288 = arith.constant dense<0.000000e+00> : vector<16x32xf32>
      %455 = tpu.matmul %423, %454, %cst_288 {dimension_numbers = #tpu.dot_dimension_numbers<[1], [0], [0], [1], [0, 0, 1, 1], [], []>} : vector<16x128xbf16>, vector<128x32xbf16>, vector<16x32xf32> -> vector<16x32xf32>
      %c1_289 = arith.constant 1 : index
      %c0_290 = arith.constant 0 : index
      %c0_291 = arith.constant 0 : index
      %456 = vector.load %arg8[%c1_289, %c0_290, %c0_291] : memref<4x1x32xf32, #tpu.memory_space<vmem>>, vector<1x1x32xf32>
      %457 = vector.shape_cast %456 : vector<1x1x32xf32> to vector<1x32xf32>
      %458 = vector.broadcast %457 : vector<1x32xf32> to vector<16x32xf32>
      %459 = arith.addf %455, %458 : vector<16x32xf32>
      %460 = arith.truncf %452 : vector<16x32xf32> to vector<16x32xbf16>
      %c1_292 = arith.constant 1 : index
      %c16_293 = arith.constant 16 : index
      %c0_294 = arith.constant 0 : index
      %461 = vector.load %arg20[%c1_292, %c16_293, %c0_294] : memref<4x32x32xbf16, #tpu.memory_space<vmem>>, vector<1x16x32xbf16>
      %462 = vector.shape_cast %461 : vector<1x16x32xbf16> to vector<16x32xbf16>
      %463 = vector.shape_cast %460 : vector<16x32xbf16> to vector<1x16x32xbf16>
      tpu.vector_store %arg20[%c1_292, %c16_293, %c0_294], %463 {strides = array<i32>} : memref<4x32x32xbf16, #tpu.memory_space<vmem>>, vector<1x16x32xbf16>,
      %464 = arith.truncf %459 : vector<16x32xf32> to vector<16x32xbf16>
      %c1_295 = arith.constant 1 : index
      %c16_296 = arith.constant 16 : index
      %c0_297 = arith.constant 0 : index
      %465 = vector.load %arg21[%c1_295, %c16_296, %c0_297] : memref<4x32x32xbf16, #tpu.memory_space<vmem>>, vector<1x16x32xbf16>
      %466 = vector.shape_cast %465 : vector<1x16x32xbf16> to vector<16x32xbf16>
      %467 = vector.shape_cast %464 : vector<16x32xbf16> to vector<1x16x32xbf16>
      tpu.vector_store %arg21[%c1_295, %c16_296, %c0_297], %467 {strides = array<i32>} : memref<4x32x32xbf16, #tpu.memory_space<vmem>>, vector<1x16x32xbf16>,
      %c2_298 = arith.constant 2 : index
      %c0_299 = arith.constant 0 : index
      %c0_300 = arith.constant 0 : index
      %468 = vector.load %arg5[%c2_298, %c0_299, %c0_300] : memref<4x128x32xbf16, #tpu.memory_space<vmem>>, vector<1x128x32xbf16>
      %469 = vector.shape_cast %468 : vector<1x128x32xbf16> to vector<128x32xbf16>
      %cst_301 = arith.constant dense<0.000000e+00> : vector<16x32xf32>
      %470 = tpu.matmul %423, %469, %cst_301 {dimension_numbers = #tpu.dot_dimension_numbers<[1], [0], [0], [1], [0, 0, 1, 1], [], []>} : vector<16x128xbf16>, vector<128x32xbf16>, vector<16x32xf32> -> vector<16x32xf32>
      %c2_302 = arith.constant 2 : index
      %c0_303 = arith.constant 0 : index
      %c0_304 = arith.constant 0 : index
      %471 = vector.load %arg6[%c2_302, %c0_303, %c0_304] : memref<4x1x32xf32, #tpu.memory_space<vmem>>, vector<1x1x32xf32>
      %472 = vector.shape_cast %471 : vector<1x1x32xf32> to vector<1x32xf32>
      %473 = vector.broadcast %472 : vector<1x32xf32> to vector<16x32xf32>
      %474 = arith.addf %470, %473 : vector<16x32xf32>
      %c2_305 = arith.constant 2 : index
      %c0_306 = arith.constant 0 : index
      %c0_307 = arith.constant 0 : index
      %475 = vector.load %arg7[%c2_305, %c0_306, %c0_307] : memref<4x128x32xbf16, #tpu.memory_space<vmem>>, vector<1x128x32xbf16>
      %476 = vector.shape_cast %475 : vector<1x128x32xbf16> to vector<128x32xbf16>
      %cst_308 = arith.constant dense<0.000000e+00> : vector<16x32xf32>
      %477 = tpu.matmul %423, %476, %cst_308 {dimension_numbers = #tpu.dot_dimension_numbers<[1], [0], [0], [1], [0, 0, 1, 1], [], []>} : vector<16x128xbf16>, vector<128x32xbf16>, vector<16x32xf32> -> vector<16x32xf32>
      %c2_309 = arith.constant 2 : index
      %c0_310 = arith.constant 0 : index
      %c0_311 = arith.constant 0 : index
      %478 = vector.load %arg8[%c2_309, %c0_310, %c0_311] : memref<4x1x32xf32, #tpu.memory_space<vmem>>, vector<1x1x32xf32>
      %479 = vector.shape_cast %478 : vector<1x1x32xf32> to vector<1x32xf32>
      %480 = vector.broadcast %479 : vector<1x32xf32> to vector<16x32xf32>
      %481 = arith.addf %477, %480 : vector<16x32xf32>
      %482 = arith.truncf %474 : vector<16x32xf32> to vector<16x32xbf16>
      %c2_312 = arith.constant 2 : index
      %c16_313 = arith.constant 16 : index
      %c0_314 = arith.constant 0 : index
      %483 = vector.load %arg20[%c2_312, %c16_313, %c0_314] : memref<4x32x32xbf16, #tpu.memory_space<vmem>>, vector<1x16x32xbf16>
      %484 = vector.shape_cast %483 : vector<1x16x32xbf16> to vector<16x32xbf16>
      %485 = vector.shape_cast %482 : vector<16x32xbf16> to vector<1x16x32xbf16>
      tpu.vector_store %arg20[%c2_312, %c16_313, %c0_314], %485 {strides = array<i32>} : memref<4x32x32xbf16, #tpu.memory_space<vmem>>, vector<1x16x32xbf16>,
      %486 = arith.truncf %481 : vector<16x32xf32> to vector<16x32xbf16>
      %c2_315 = arith.constant 2 : index
      %c16_316 = arith.constant 16 : index
      %c0_317 = arith.constant 0 : index
      %487 = vector.load %arg21[%c2_315, %c16_316, %c0_317] : memref<4x32x32xbf16, #tpu.memory_space<vmem>>, vector<1x16x32xbf16>
      %488 = vector.shape_cast %487 : vector<1x16x32xbf16> to vector<16x32xbf16>
      %489 = vector.shape_cast %486 : vector<16x32xbf16> to vector<1x16x32xbf16>
      tpu.vector_store %arg21[%c2_315, %c16_316, %c0_317], %489 {strides = array<i32>} : memref<4x32x32xbf16, #tpu.memory_space<vmem>>, vector<1x16x32xbf16>,
      %c3_318 = arith.constant 3 : index
      %c0_319 = arith.constant 0 : index
      %c0_320 = arith.constant 0 : index
      %490 = vector.load %arg5[%c3_318, %c0_319, %c0_320] : memref<4x128x32xbf16, #tpu.memory_space<vmem>>, vector<1x128x32xbf16>
      %491 = vector.shape_cast %490 : vector<1x128x32xbf16> to vector<128x32xbf16>
      %cst_321 = arith.constant dense<0.000000e+00> : vector<16x32xf32>
      %492 = tpu.matmul %423, %491, %cst_321 {dimension_numbers = #tpu.dot_dimension_numbers<[1], [0], [0], [1], [0, 0, 1, 1], [], []>} : vector<16x128xbf16>, vector<128x32xbf16>, vector<16x32xf32> -> vector<16x32xf32>
      %c3_322 = arith.constant 3 : index
      %c0_323 = arith.constant 0 : index
      %c0_324 = arith.constant 0 : index
      %493 = vector.load %arg6[%c3_322, %c0_323, %c0_324] : memref<4x1x32xf32, #tpu.memory_space<vmem>>, vector<1x1x32xf32>
      %494 = vector.shape_cast %493 : vector<1x1x32xf32> to vector<1x32xf32>
      %495 = vector.broadcast %494 : vector<1x32xf32> to vector<16x32xf32>
      %496 = arith.addf %492, %495 : vector<16x32xf32>
      %c3_325 = arith.constant 3 : index
      %c0_326 = arith.constant 0 : index
      %c0_327 = arith.constant 0 : index
      %497 = vector.load %arg7[%c3_325, %c0_326, %c0_327] : memref<4x128x32xbf16, #tpu.memory_space<vmem>>, vector<1x128x32xbf16>
      %498 = vector.shape_cast %497 : vector<1x128x32xbf16> to vector<128x32xbf16>
      %cst_328 = arith.constant dense<0.000000e+00> : vector<16x32xf32>
      %499 = tpu.matmul %423, %498, %cst_328 {dimension_numbers = #tpu.dot_dimension_numbers<[1], [0], [0], [1], [0, 0, 1, 1], [], []>} : vector<16x128xbf16>, vector<128x32xbf16>, vector<16x32xf32> -> vector<16x32xf32>
      %c3_329 = arith.constant 3 : index
      %c0_330 = arith.constant 0 : index
      %c0_331 = arith.constant 0 : index
      %500 = vector.load %arg8[%c3_329, %c0_330, %c0_331] : memref<4x1x32xf32, #tpu.memory_space<vmem>>, vector<1x1x32xf32>
      %501 = vector.shape_cast %500 : vector<1x1x32xf32> to vector<1x32xf32>
      %502 = vector.broadcast %501 : vector<1x32xf32> to vector<16x32xf32>
      %503 = arith.addf %499, %502 : vector<16x32xf32>
      %504 = arith.truncf %496 : vector<16x32xf32> to vector<16x32xbf16>
      %c3_332 = arith.constant 3 : index
      %c16_333 = arith.constant 16 : index
      %c0_334 = arith.constant 0 : index
      %505 = vector.load %arg20[%c3_332, %c16_333, %c0_334] : memref<4x32x32xbf16, #tpu.memory_space<vmem>>, vector<1x16x32xbf16>
      %506 = vector.shape_cast %505 : vector<1x16x32xbf16> to vector<16x32xbf16>
      %507 = vector.shape_cast %504 : vector<16x32xbf16> to vector<1x16x32xbf16>
      tpu.vector_store %arg20[%c3_332, %c16_333, %c0_334], %507 {strides = array<i32>} : memref<4x32x32xbf16, #tpu.memory_space<vmem>>, vector<1x16x32xbf16>,
      %508 = arith.truncf %503 : vector<16x32xf32> to vector<16x32xbf16>
      %c3_335 = arith.constant 3 : index
      %c16_336 = arith.constant 16 : index
      %c0_337 = arith.constant 0 : index
      %509 = vector.load %arg21[%c3_335, %c16_336, %c0_337] : memref<4x32x32xbf16, #tpu.memory_space<vmem>>, vector<1x16x32xbf16>
      %510 = vector.shape_cast %509 : vector<1x16x32xbf16> to vector<16x32xbf16>
      %511 = vector.shape_cast %508 : vector<16x32xbf16> to vector<1x16x32xbf16>
      tpu.vector_store %arg21[%c3_335, %c16_336, %c0_337], %511 {strides = array<i32>} : memref<4x32x32xbf16, #tpu.memory_space<vmem>>, vector<1x16x32xbf16>,
    } else {
    }
    %c16_i32 = arith.constant 16 : i32
    %3 = arith.muli %arg1, %c16_i32 : i32
    %4 = tpu.assume_multiple %3, 16 : i32
    %c0 = arith.constant 0 : index
    %5 = arith.index_cast %4 : i32 to index
    %c0_1 = arith.constant 0 : index
    %6 = vector.load %arg2[%c0, %5, %c0_1] : memref<1x32x128xbf16, #tpu.memory_space<vmem>>, vector<1x16x128xbf16>
    %7 = vector.shape_cast %6 : vector<1x16x128xbf16> to vector<16x128xbf16>
    %8 = arith.extf %7 : vector<16x128xbf16> to vector<16x128xf32>
    %cst = arith.constant 0.000000e+00 : f32
    %9 = vector.broadcast %cst : f32 to vector<16x128xf32>
    %c0_2 = arith.constant 0 : index
    %c0_3 = arith.constant 0 : index
    %c0_4 = arith.constant 0 : index
    %10 = vector.load %arg3[%c0_2, %c0_3, %c0_4] : memref<4x128x32xbf16, #tpu.memory_space<vmem>>, vector<1x128x32xbf16>
    %11 = vector.shape_cast %10 : vector<1x128x32xbf16> to vector<128x32xbf16>
    %cst_5 = arith.constant dense<0.000000e+00> : vector<16x32xf32>
    %12 = tpu.matmul %7, %11, %cst_5 {dimension_numbers = #tpu.dot_dimension_numbers<[1], [0], [0], [1], [0, 0, 1, 1], [], []>} : vector<16x128xbf16>, vector<128x32xbf16>, vector<16x32xf32> -> vector<16x32xf32>
    %c0_6 = arith.constant 0 : index
    %c0_7 = arith.constant 0 : index
    %c0_8 = arith.constant 0 : index
    %13 = vector.load %arg4[%c0_6, %c0_7, %c0_8] : memref<4x1x32xf32, #tpu.memory_space<vmem>>, vector<1x1x32xf32>
    %14 = vector.shape_cast %13 : vector<1x1x32xf32> to vector<1x32xf32>
    %15 = vector.broadcast %14 : vector<1x32xf32> to vector<16x32xf32>
    %16 = arith.addf %12, %15 : vector<16x32xf32>
    %cst_9 = arith.constant 0.176776692 : f32
    %17 = vector.broadcast %cst_9 : f32 to vector<16x32xf32>
    %18 = arith.mulf %16, %17 : vector<16x32xf32>
    %19 = arith.truncf %18 : vector<16x32xf32> to vector<16x32xbf16>
    %cst_10 = arith.constant 0xFF800000 : f32
    %20 = vector.broadcast %cst_10 : f32 to vector<16x1xf32>
    %cst_11 = arith.constant 0.000000e+00 : f32
    %21 = vector.broadcast %cst_11 : f32 to vector<16x1xf32>
    %cst_12 = arith.constant 0.000000e+00 : f32
    %22 = vector.broadcast %cst_12 : f32 to vector<16x32xf32>
    %c0_13 = arith.constant 0 : index
    %c0_14 = arith.constant 0 : index
    %c0_15 = arith.constant 0 : index
    %23 = vector.load %arg20[%c0_13, %c0_14, %c0_15] : memref<4x32x32xbf16, #tpu.memory_space<vmem>>, vector<1x16x32xbf16>
    %24 = vector.shape_cast %23 : vector<1x16x32xbf16> to vector<16x32xbf16>
    %c0_16 = arith.constant 0 : index
    %c0_17 = arith.constant 0 : index
    %c0_18 = arith.constant 0 : index
    %25 = vector.load %arg21[%c0_16, %c0_17, %c0_18] : memref<4x32x32xbf16, #tpu.memory_space<vmem>>, vector<1x16x32xbf16>
    %26 = vector.shape_cast %25 : vector<1x16x32xbf16> to vector<16x32xbf16>
    %cst_19 = arith.constant dense<0.000000e+00> : vector<16x16xf32>
    %27 = tpu.matmul %19, %24, %cst_19 {dimension_numbers = #tpu.dot_dimension_numbers<[1], [1], [0], [0], [0, 0, 1, 0], [], []>} : vector<16x32xbf16>, vector<16x32xbf16>, vector<16x16xf32> -> vector<16x16xf32>
    %cst_20 = arith.constant dense<0xFF800000> : vector<16xf32>
    %28 = vector.multi_reduction <maximumf>, %27, %cst_20 [1] : vector<16x16xf32> to vector<16xf32>
    %29 = vector.shape_cast %28 : vector<16xf32> to vector<16x1xf32>
    %30 = arith.maximumf %20, %29 : vector<16x1xf32>
    %31 = arith.subf %20, %30 : vector<16x1xf32>
    %32 = math.exp %31 : vector<16x1xf32>
    %33 = vector.broadcast %30 : vector<16x1xf32> to vector<16x16xf32>
    %34 = arith.subf %27, %33 : vector<16x16xf32>
    %35 = math.exp %34 : vector<16x16xf32>
    %36 = arith.mulf %32, %21 : vector<16x1xf32>
    %cst_21 = arith.constant dense<0.000000e+00> : vector<16xf32>
    %37 = vector.multi_reduction <add>, %35, %cst_21 [1] : vector<16x16xf32> to vector<16xf32>
    %38 = vector.shape_cast %37 : vector<16xf32> to vector<16x1xf32>
    %39 = arith.addf %36, %38 : vector<16x1xf32>
    %40 = vector.broadcast %32 : vector<16x1xf32> to vector<16x32xf32>
    %41 = arith.mulf %40, %22 : vector<16x32xf32>
    %42 = arith.truncf %35 : vector<16x16xf32> to vector<16x16xbf16>
    %cst_22 = arith.constant dense<0.000000e+00> : vector<16x32xf32>
    %43 = tpu.matmul %42, %26, %cst_22 {dimension_numbers = #tpu.dot_dimension_numbers<[1], [0], [0], [1], [0, 0, 1, 1], [], []>} : vector<16x16xbf16>, vector<16x32xbf16>, vector<16x32xf32> -> vector<16x32xf32>
    %44 = arith.addf %41, %43 : vector<16x32xf32>
    %c0_23 = arith.constant 0 : index
    %c16 = arith.constant 16 : index
    %c0_24 = arith.constant 0 : index
    %45 = vector.load %arg20[%c0_23, %c16, %c0_24] : memref<4x32x32xbf16, #tpu.memory_space<vmem>>, vector<1x16x32xbf16>
    %46 = vector.shape_cast %45 : vector<1x16x32xbf16> to vector<16x32xbf16>
    %c0_25 = arith.constant 0 : index
    %c16_26 = arith.constant 16 : index
    %c0_27 = arith.constant 0 : index
    %47 = vector.load %arg21[%c0_25, %c16_26, %c0_27] : memref<4x32x32xbf16, #tpu.memory_space<vmem>>, vector<1x16x32xbf16>
    %48 = vector.shape_cast %47 : vector<1x16x32xbf16> to vector<16x32xbf16>
    %cst_28 = arith.constant dense<0.000000e+00> : vector<16x16xf32>
    %49 = tpu.matmul %19, %46, %cst_28 {dimension_numbers = #tpu.dot_dimension_numbers<[1], [1], [0], [0], [0, 0, 1, 0], [], []>} : vector<16x32xbf16>, vector<16x32xbf16>, vector<16x16xf32> -> vector<16x16xf32>
    %cst_29 = arith.constant dense<0xFF800000> : vector<16xf32>
    %50 = vector.multi_reduction <maximumf>, %49, %cst_29 [1] : vector<16x16xf32> to vector<16xf32>
    %51 = vector.shape_cast %50 : vector<16xf32> to vector<16x1xf32>
    %52 = arith.maximumf %30, %51 : vector<16x1xf32>
    %53 = arith.subf %30, %52 : vector<16x1xf32>
    %54 = math.exp %53 : vector<16x1xf32>
    %55 = vector.broadcast %52 : vector<16x1xf32> to vector<16x16xf32>
    %56 = arith.subf %49, %55 : vector<16x16xf32>
    %57 = math.exp %56 : vector<16x16xf32>
    %58 = arith.mulf %54, %39 : vector<16x1xf32>
    %cst_30 = arith.constant dense<0.000000e+00> : vector<16xf32>
    %59 = vector.multi_reduction <add>, %57, %cst_30 [1] : vector<16x16xf32> to vector<16xf32>
    %60 = vector.shape_cast %59 : vector<16xf32> to vector<16x1xf32>
    %61 = arith.addf %58, %60 : vector<16x1xf32>
    %62 = vector.broadcast %54 : vector<16x1xf32> to vector<16x32xf32>
    %63 = arith.mulf %62, %44 : vector<16x32xf32>
    %64 = arith.truncf %57 : vector<16x16xf32> to vector<16x16xbf16>
    %cst_31 = arith.constant dense<0.000000e+00> : vector<16x32xf32>
    %65 = tpu.matmul %64, %48, %cst_31 {dimension_numbers = #tpu.dot_dimension_numbers<[1], [0], [0], [1], [0, 0, 1, 1], [], []>} : vector<16x16xbf16>, vector<16x32xbf16>, vector<16x32xf32> -> vector<16x32xf32>
    %66 = arith.addf %63, %65 : vector<16x32xf32>
    %67 = vector.broadcast %61 : vector<16x1xf32> to vector<16x32xf32>
    %68 = arith.divf %66, %67 : vector<16x32xf32>
    %69 = arith.truncf %68 : vector<16x32xf32> to vector<16x32xbf16>
    %c0_32 = arith.constant 0 : index
    %c0_33 = arith.constant 0 : index
    %c0_34 = arith.constant 0 : index
    %70 = vector.load %arg9[%c0_32, %c0_33, %c0_34] : memref<4x32x128xbf16, #tpu.memory_space<vmem>>, vector<1x32x128xbf16>
    %71 = vector.shape_cast %70 : vector<1x32x128xbf16> to vector<32x128xbf16>
    %cst_35 = arith.constant dense<0.000000e+00> : vector<16x128xf32>
    %72 = tpu.matmul %69, %71, %cst_35 {dimension_numbers = #tpu.dot_dimension_numbers<[1], [0], [0], [1], [0, 0, 1, 1], [], []>} : vector<16x32xbf16>, vector<32x128xbf16>, vector<16x128xf32> -> vector<16x128xf32>
    %73 = arith.addf %9, %72 : vector<16x128xf32>
    %c1 = arith.constant 1 : index
    %c0_36 = arith.constant 0 : index
    %c0_37 = arith.constant 0 : index
    %74 = vector.load %arg3[%c1, %c0_36, %c0_37] : memref<4x128x32xbf16, #tpu.memory_space<vmem>>, vector<1x128x32xbf16>
    %75 = vector.shape_cast %74 : vector<1x128x32xbf16> to vector<128x32xbf16>
    %cst_38 = arith.constant dense<0.000000e+00> : vector<16x32xf32>
    %76 = tpu.matmul %7, %75, %cst_38 {dimension_numbers = #tpu.dot_dimension_numbers<[1], [0], [0], [1], [0, 0, 1, 1], [], []>} : vector<16x128xbf16>, vector<128x32xbf16>, vector<16x32xf32> -> vector<16x32xf32>
    %c1_39 = arith.constant 1 : index
    %c0_40 = arith.constant 0 : index
    %c0_41 = arith.constant 0 : index
    %77 = vector.load %arg4[%c1_39, %c0_40, %c0_41] : memref<4x1x32xf32, #tpu.memory_space<vmem>>, vector<1x1x32xf32>
    %78 = vector.shape_cast %77 : vector<1x1x32xf32> to vector<1x32xf32>
    %79 = vector.broadcast %78 : vector<1x32xf32> to vector<16x32xf32>
    %80 = arith.addf %76, %79 : vector<16x32xf32>
    %cst_42 = arith.constant 0.176776692 : f32
    %81 = vector.broadcast %cst_42 : f32 to vector<16x32xf32>
    %82 = arith.mulf %80, %81 : vector<16x32xf32>
    %83 = arith.truncf %82 : vector<16x32xf32> to vector<16x32xbf16>
    %cst_43 = arith.constant 0xFF800000 : f32
    %84 = vector.broadcast %cst_43 : f32 to vector<16x1xf32>
    %cst_44 = arith.constant 0.000000e+00 : f32
    %85 = vector.broadcast %cst_44 : f32 to vector<16x1xf32>
    %cst_45 = arith.constant 0.000000e+00 : f32
    %86 = vector.broadcast %cst_45 : f32 to vector<16x32xf32>
    %c1_46 = arith.constant 1 : index
    %c0_47 = arith.constant 0 : index
    %c0_48 = arith.constant 0 : index
    %87 = vector.load %arg20[%c1_46, %c0_47, %c0_48] : memref<4x32x32xbf16, #tpu.memory_space<vmem>>, vector<1x16x32xbf16>
    %88 = vector.shape_cast %87 : vector<1x16x32xbf16> to vector<16x32xbf16>
    %c1_49 = arith.constant 1 : index
    %c0_50 = arith.constant 0 : index
    %c0_51 = arith.constant 0 : index
    %89 = vector.load %arg21[%c1_49, %c0_50, %c0_51] : memref<4x32x32xbf16, #tpu.memory_space<vmem>>, vector<1x16x32xbf16>
    %90 = vector.shape_cast %89 : vector<1x16x32xbf16> to vector<16x32xbf16>
    %cst_52 = arith.constant dense<0.000000e+00> : vector<16x16xf32>
    %91 = tpu.matmul %83, %88, %cst_52 {dimension_numbers = #tpu.dot_dimension_numbers<[1], [1], [0], [0], [0, 0, 1, 0], [], []>} : vector<16x32xbf16>, vector<16x32xbf16>, vector<16x16xf32> -> vector<16x16xf32>
    %cst_53 = arith.constant dense<0xFF800000> : vector<16xf32>
    %92 = vector.multi_reduction <maximumf>, %91, %cst_53 [1] : vector<16x16xf32> to vector<16xf32>
    %93 = vector.shape_cast %92 : vector<16xf32> to vector<16x1xf32>
    %94 = arith.maximumf %84, %93 : vector<16x1xf32>
    %95 = arith.subf %84, %94 : vector<16x1xf32>
    %96 = math.exp %95 : vector<16x1xf32>
    %97 = vector.broadcast %94 : vector<16x1xf32> to vector<16x16xf32>
    %98 = arith.subf %91, %97 : vector<16x16xf32>
    %99 = math.exp %98 : vector<16x16xf32>
    %100 = arith.mulf %96, %85 : vector<16x1xf32>
    %cst_54 = arith.constant dense<0.000000e+00> : vector<16xf32>
    %101 = vector.multi_reduction <add>, %99, %cst_54 [1] : vector<16x16xf32> to vector<16xf32>
    %102 = vector.shape_cast %101 : vector<16xf32> to vector<16x1xf32>
    %103 = arith.addf %100, %102 : vector<16x1xf32>
    %104 = vector.broadcast %96 : vector<16x1xf32> to vector<16x32xf32>
    %105 = arith.mulf %104, %86 : vector<16x32xf32>
    %106 = arith.truncf %99 : vector<16x16xf32> to vector<16x16xbf16>
    %cst_55 = arith.constant dense<0.000000e+00> : vector<16x32xf32>
    %107 = tpu.matmul %106, %90, %cst_55 {dimension_numbers = #tpu.dot_dimension_numbers<[1], [0], [0], [1], [0, 0, 1, 1], [], []>} : vector<16x16xbf16>, vector<16x32xbf16>, vector<16x32xf32> -> vector<16x32xf32>
    %108 = arith.addf %105, %107 : vector<16x32xf32>
    %c1_56 = arith.constant 1 : index
    %c16_57 = arith.constant 16 : index
    %c0_58 = arith.constant 0 : index
    %109 = vector.load %arg20[%c1_56, %c16_57, %c0_58] : memref<4x32x32xbf16, #tpu.memory_space<vmem>>, vector<1x16x32xbf16>
    %110 = vector.shape_cast %109 : vector<1x16x32xbf16> to vector<16x32xbf16>
    %c1_59 = arith.constant 1 : index
    %c16_60 = arith.constant 16 : index
    %c0_61 = arith.constant 0 : index
    %111 = vector.load %arg21[%c1_59, %c16_60, %c0_61] : memref<4x32x32xbf16, #tpu.memory_space<vmem>>, vector<1x16x32xbf16>
    %112 = vector.shape_cast %111 : vector<1x16x32xbf16> to vector<16x32xbf16>
    %cst_62 = arith.constant dense<0.000000e+00> : vector<16x16xf32>
    %113 = tpu.matmul %83, %110, %cst_62 {dimension_numbers = #tpu.dot_dimension_numbers<[1], [1], [0], [0], [0, 0, 1, 0], [], []>} : vector<16x32xbf16>, vector<16x32xbf16>, vector<16x16xf32> -> vector<16x16xf32>
    %cst_63 = arith.constant dense<0xFF800000> : vector<16xf32>
    %114 = vector.multi_reduction <maximumf>, %113, %cst_63 [1] : vector<16x16xf32> to vector<16xf32>
    %115 = vector.shape_cast %114 : vector<16xf32> to vector<16x1xf32>
    %116 = arith.maximumf %94, %115 : vector<16x1xf32>
    %117 = arith.subf %94, %116 : vector<16x1xf32>
    %118 = math.exp %117 : vector<16x1xf32>
    %119 = vector.broadcast %116 : vector<16x1xf32> to vector<16x16xf32>
    %120 = arith.subf %113, %119 : vector<16x16xf32>
    %121 = math.exp %120 : vector<16x16xf32>
    %122 = arith.mulf %118, %103 : vector<16x1xf32>
    %cst_64 = arith.constant dense<0.000000e+00> : vector<16xf32>
    %123 = vector.multi_reduction <add>, %121, %cst_64 [1] : vector<16x16xf32> to vector<16xf32>
    %124 = vector.shape_cast %123 : vector<16xf32> to vector<16x1xf32>
    %125 = arith.addf %122, %124 : vector<16x1xf32>
    %126 = vector.broadcast %118 : vector<16x1xf32> to vector<16x32xf32>
    %127 = arith.mulf %126, %108 : vector<16x32xf32>
    %128 = arith.truncf %121 : vector<16x16xf32> to vector<16x16xbf16>
    %cst_65 = arith.constant dense<0.000000e+00> : vector<16x32xf32>
    %129 = tpu.matmul %128, %112, %cst_65 {dimension_numbers = #tpu.dot_dimension_numbers<[1], [0], [0], [1], [0, 0, 1, 1], [], []>} : vector<16x16xbf16>, vector<16x32xbf16>, vector<16x32xf32> -> vector<16x32xf32>
    %130 = arith.addf %127, %129 : vector<16x32xf32>
    %131 = vector.broadcast %125 : vector<16x1xf32> to vector<16x32xf32>
    %132 = arith.divf %130, %131 : vector<16x32xf32>
    %133 = arith.truncf %132 : vector<16x32xf32> to vector<16x32xbf16>
    %c1_66 = arith.constant 1 : index
    %c0_67 = arith.constant 0 : index
    %c0_68 = arith.constant 0 : index
    %134 = vector.load %arg9[%c1_66, %c0_67, %c0_68] : memref<4x32x128xbf16, #tpu.memory_space<vmem>>, vector<1x32x128xbf16>
    %135 = vector.shape_cast %134 : vector<1x32x128xbf16> to vector<32x128xbf16>
    %cst_69 = arith.constant dense<0.000000e+00> : vector<16x128xf32>
    %136 = tpu.matmul %133, %135, %cst_69 {dimension_numbers = #tpu.dot_dimension_numbers<[1], [0], [0], [1], [0, 0, 1, 1], [], []>} : vector<16x32xbf16>, vector<32x128xbf16>, vector<16x128xf32> -> vector<16x128xf32>
    %137 = arith.addf %73, %136 : vector<16x128xf32>
    %c2 = arith.constant 2 : index
    %c0_70 = arith.constant 0 : index
    %c0_71 = arith.constant 0 : index
    %138 = vector.load %arg3[%c2, %c0_70, %c0_71] : memref<4x128x32xbf16, #tpu.memory_space<vmem>>, vector<1x128x32xbf16>
    %139 = vector.shape_cast %138 : vector<1x128x32xbf16> to vector<128x32xbf16>
    %cst_72 = arith.constant dense<0.000000e+00> : vector<16x32xf32>
    %140 = tpu.matmul %7, %139, %cst_72 {dimension_numbers = #tpu.dot_dimension_numbers<[1], [0], [0], [1], [0, 0, 1, 1], [], []>} : vector<16x128xbf16>, vector<128x32xbf16>, vector<16x32xf32> -> vector<16x32xf32>
    %c2_73 = arith.constant 2 : index
    %c0_74 = arith.constant 0 : index
    %c0_75 = arith.constant 0 : index
    %141 = vector.load %arg4[%c2_73, %c0_74, %c0_75] : memref<4x1x32xf32, #tpu.memory_space<vmem>>, vector<1x1x32xf32>
    %142 = vector.shape_cast %141 : vector<1x1x32xf32> to vector<1x32xf32>
    %143 = vector.broadcast %142 : vector<1x32xf32> to vector<16x32xf32>
    %144 = arith.addf %140, %143 : vector<16x32xf32>
    %cst_76 = arith.constant 0.176776692 : f32
    %145 = vector.broadcast %cst_76 : f32 to vector<16x32xf32>
    %146 = arith.mulf %144, %145 : vector<16x32xf32>
    %147 = arith.truncf %146 : vector<16x32xf32> to vector<16x32xbf16>
    %cst_77 = arith.constant 0xFF800000 : f32
    %148 = vector.broadcast %cst_77 : f32 to vector<16x1xf32>
    %cst_78 = arith.constant 0.000000e+00 : f32
    %149 = vector.broadcast %cst_78 : f32 to vector<16x1xf32>
    %cst_79 = arith.constant 0.000000e+00 : f32
    %150 = vector.broadcast %cst_79 : f32 to vector<16x32xf32>
    %c2_80 = arith.constant 2 : index
    %c0_81 = arith.constant 0 : index
    %c0_82 = arith.constant 0 : index
    %151 = vector.load %arg20[%c2_80, %c0_81, %c0_82] : memref<4x32x32xbf16, #tpu.memory_space<vmem>>, vector<1x16x32xbf16>
    %152 = vector.shape_cast %151 : vector<1x16x32xbf16> to vector<16x32xbf16>
    %c2_83 = arith.constant 2 : index
    %c0_84 = arith.constant 0 : index
    %c0_85 = arith.constant 0 : index
    %153 = vector.load %arg21[%c2_83, %c0_84, %c0_85] : memref<4x32x32xbf16, #tpu.memory_space<vmem>>, vector<1x16x32xbf16>
    %154 = vector.shape_cast %153 : vector<1x16x32xbf16> to vector<16x32xbf16>
    %cst_86 = arith.constant dense<0.000000e+00> : vector<16x16xf32>
    %155 = tpu.matmul %147, %152, %cst_86 {dimension_numbers = #tpu.dot_dimension_numbers<[1], [1], [0], [0], [0, 0, 1, 0], [], []>} : vector<16x32xbf16>, vector<16x32xbf16>, vector<16x16xf32> -> vector<16x16xf32>
    %cst_87 = arith.constant dense<0xFF800000> : vector<16xf32>
    %156 = vector.multi_reduction <maximumf>, %155, %cst_87 [1] : vector<16x16xf32> to vector<16xf32>
    %157 = vector.shape_cast %156 : vector<16xf32> to vector<16x1xf32>
    %158 = arith.maximumf %148, %157 : vector<16x1xf32>
    %159 = arith.subf %148, %158 : vector<16x1xf32>
    %160 = math.exp %159 : vector<16x1xf32>
    %161 = vector.broadcast %158 : vector<16x1xf32> to vector<16x16xf32>
    %162 = arith.subf %155, %161 : vector<16x16xf32>
    %163 = math.exp %162 : vector<16x16xf32>
    %164 = arith.mulf %160, %149 : vector<16x1xf32>
    %cst_88 = arith.constant dense<0.000000e+00> : vector<16xf32>
    %165 = vector.multi_reduction <add>, %163, %cst_88 [1] : vector<16x16xf32> to vector<16xf32>
    %166 = vector.shape_cast %165 : vector<16xf32> to vector<16x1xf32>
    %167 = arith.addf %164, %166 : vector<16x1xf32>
    %168 = vector.broadcast %160 : vector<16x1xf32> to vector<16x32xf32>
    %169 = arith.mulf %168, %150 : vector<16x32xf32>
    %170 = arith.truncf %163 : vector<16x16xf32> to vector<16x16xbf16>
    %cst_89 = arith.constant dense<0.000000e+00> : vector<16x32xf32>
    %171 = tpu.matmul %170, %154, %cst_89 {dimension_numbers = #tpu.dot_dimension_numbers<[1], [0], [0], [1], [0, 0, 1, 1], [], []>} : vector<16x16xbf16>, vector<16x32xbf16>, vector<16x32xf32> -> vector<16x32xf32>
    %172 = arith.addf %169, %171 : vector<16x32xf32>
    %c2_90 = arith.constant 2 : index
    %c16_91 = arith.constant 16 : index
    %c0_92 = arith.constant 0 : index
    %173 = vector.load %arg20[%c2_90, %c16_91, %c0_92] : memref<4x32x32xbf16, #tpu.memory_space<vmem>>, vector<1x16x32xbf16>
    %174 = vector.shape_cast %173 : vector<1x16x32xbf16> to vector<16x32xbf16>
    %c2_93 = arith.constant 2 : index
    %c16_94 = arith.constant 16 : index
    %c0_95 = arith.constant 0 : index
    %175 = vector.load %arg21[%c2_93, %c16_94, %c0_95] : memref<4x32x32xbf16, #tpu.memory_space<vmem>>, vector<1x16x32xbf16>
    %176 = vector.shape_cast %175 : vector<1x16x32xbf16> to vector<16x32xbf16>
    %cst_96 = arith.constant dense<0.000000e+00> : vector<16x16xf32>
    %177 = tpu.matmul %147, %174, %cst_96 {dimension_numbers = #tpu.dot_dimension_numbers<[1], [1], [0], [0], [0, 0, 1, 0], [], []>} : vector<16x32xbf16>, vector<16x32xbf16>, vector<16x16xf32> -> vector<16x16xf32>
    %cst_97 = arith.constant dense<0xFF800000> : vector<16xf32>
    %178 = vector.multi_reduction <maximumf>, %177, %cst_97 [1] : vector<16x16xf32> to vector<16xf32>
    %179 = vector.shape_cast %178 : vector<16xf32> to vector<16x1xf32>
    %180 = arith.maximumf %158, %179 : vector<16x1xf32>
    %181 = arith.subf %158, %180 : vector<16x1xf32>
    %182 = math.exp %181 : vector<16x1xf32>
    %183 = vector.broadcast %180 : vector<16x1xf32> to vector<16x16xf32>
    %184 = arith.subf %177, %183 : vector<16x16xf32>
    %185 = math.exp %184 : vector<16x16xf32>
    %186 = arith.mulf %182, %167 : vector<16x1xf32>
    %cst_98 = arith.constant dense<0.000000e+00> : vector<16xf32>
    %187 = vector.multi_reduction <add>, %185, %cst_98 [1] : vector<16x16xf32> to vector<16xf32>
    %188 = vector.shape_cast %187 : vector<16xf32> to vector<16x1xf32>
    %189 = arith.addf %186, %188 : vector<16x1xf32>
    %190 = vector.broadcast %182 : vector<16x1xf32> to vector<16x32xf32>
    %191 = arith.mulf %190, %172 : vector<16x32xf32>
    %192 = arith.truncf %185 : vector<16x16xf32> to vector<16x16xbf16>
    %cst_99 = arith.constant dense<0.000000e+00> : vector<16x32xf32>
    %193 = tpu.matmul %192, %176, %cst_99 {dimension_numbers = #tpu.dot_dimension_numbers<[1], [0], [0], [1], [0, 0, 1, 1], [], []>} : vector<16x16xbf16>, vector<16x32xbf16>, vector<16x32xf32> -> vector<16x32xf32>
    %194 = arith.addf %191, %193 : vector<16x32xf32>
    %195 = vector.broadcast %189 : vector<16x1xf32> to vector<16x32xf32>
    %196 = arith.divf %194, %195 : vector<16x32xf32>
    %197 = arith.truncf %196 : vector<16x32xf32> to vector<16x32xbf16>
    %c2_100 = arith.constant 2 : index
    %c0_101 = arith.constant 0 : index
    %c0_102 = arith.constant 0 : index
    %198 = vector.load %arg9[%c2_100, %c0_101, %c0_102] : memref<4x32x128xbf16, #tpu.memory_space<vmem>>, vector<1x32x128xbf16>
    %199 = vector.shape_cast %198 : vector<1x32x128xbf16> to vector<32x128xbf16>
    %cst_103 = arith.constant dense<0.000000e+00> : vector<16x128xf32>
    %200 = tpu.matmul %197, %199, %cst_103 {dimension_numbers = #tpu.dot_dimension_numbers<[1], [0], [0], [1], [0, 0, 1, 1], [], []>} : vector<16x32xbf16>, vector<32x128xbf16>, vector<16x128xf32> -> vector<16x128xf32>
    %201 = arith.addf %137, %200 : vector<16x128xf32>
    %c3 = arith.constant 3 : index
    %c0_104 = arith.constant 0 : index
    %c0_105 = arith.constant 0 : index
    %202 = vector.load %arg3[%c3, %c0_104, %c0_105] : memref<4x128x32xbf16, #tpu.memory_space<vmem>>, vector<1x128x32xbf16>
    %203 = vector.shape_cast %202 : vector<1x128x32xbf16> to vector<128x32xbf16>
    %cst_106 = arith.constant dense<0.000000e+00> : vector<16x32xf32>
    %204 = tpu.matmul %7, %203, %cst_106 {dimension_numbers = #tpu.dot_dimension_numbers<[1], [0], [0], [1], [0, 0, 1, 1], [], []>} : vector<16x128xbf16>, vector<128x32xbf16>, vector<16x32xf32> -> vector<16x32xf32>
    %c3_107 = arith.constant 3 : index
    %c0_108 = arith.constant 0 : index
    %c0_109 = arith.constant 0 : index
    %205 = vector.load %arg4[%c3_107, %c0_108, %c0_109] : memref<4x1x32xf32, #tpu.memory_space<vmem>>, vector<1x1x32xf32>
    %206 = vector.shape_cast %205 : vector<1x1x32xf32> to vector<1x32xf32>
    %207 = vector.broadcast %206 : vector<1x32xf32> to vector<16x32xf32>
    %208 = arith.addf %204, %207 : vector<16x32xf32>
    %cst_110 = arith.constant 0.176776692 : f32
    %209 = vector.broadcast %cst_110 : f32 to vector<16x32xf32>
    %210 = arith.mulf %208, %209 : vector<16x32xf32>
    %211 = arith.truncf %210 : vector<16x32xf32> to vector<16x32xbf16>
    %cst_111 = arith.constant 0xFF800000 : f32
    %212 = vector.broadcast %cst_111 : f32 to vector<16x1xf32>
    %cst_112 = arith.constant 0.000000e+00 : f32
    %213 = vector.broadcast %cst_112 : f32 to vector<16x1xf32>
    %cst_113 = arith.constant 0.000000e+00 : f32
    %214 = vector.broadcast %cst_113 : f32 to vector<16x32xf32>
    %c3_114 = arith.constant 3 : index
    %c0_115 = arith.constant 0 : index
    %c0_116 = arith.constant 0 : index
    %215 = vector.load %arg20[%c3_114, %c0_115, %c0_116] : memref<4x32x32xbf16, #tpu.memory_space<vmem>>, vector<1x16x32xbf16>
    %216 = vector.shape_cast %215 : vector<1x16x32xbf16> to vector<16x32xbf16>
    %c3_117 = arith.constant 3 : index
    %c0_118 = arith.constant 0 : index
    %c0_119 = arith.constant 0 : index
    %217 = vector.load %arg21[%c3_117, %c0_118, %c0_119] : memref<4x32x32xbf16, #tpu.memory_space<vmem>>, vector<1x16x32xbf16>
    %218 = vector.shape_cast %217 : vector<1x16x32xbf16> to vector<16x32xbf16>
    %cst_120 = arith.constant dense<0.000000e+00> : vector<16x16xf32>
    %219 = tpu.matmul %211, %216, %cst_120 {dimension_numbers = #tpu.dot_dimension_numbers<[1], [1], [0], [0], [0, 0, 1, 0], [], []>} : vector<16x32xbf16>, vector<16x32xbf16>, vector<16x16xf32> -> vector<16x16xf32>
    %cst_121 = arith.constant dense<0xFF800000> : vector<16xf32>
    %220 = vector.multi_reduction <maximumf>, %219, %cst_121 [1] : vector<16x16xf32> to vector<16xf32>
    %221 = vector.shape_cast %220 : vector<16xf32> to vector<16x1xf32>
    %222 = arith.maximumf %212, %221 : vector<16x1xf32>
    %223 = arith.subf %212, %222 : vector<16x1xf32>
    %224 = math.exp %223 : vector<16x1xf32>
    %225 = vector.broadcast %222 : vector<16x1xf32> to vector<16x16xf32>
    %226 = arith.subf %219, %225 : vector<16x16xf32>
    %227 = math.exp %226 : vector<16x16xf32>
    %228 = arith.mulf %224, %213 : vector<16x1xf32>
    %cst_122 = arith.constant dense<0.000000e+00> : vector<16xf32>
    %229 = vector.multi_reduction <add>, %227, %cst_122 [1] : vector<16x16xf32> to vector<16xf32>
    %230 = vector.shape_cast %229 : vector<16xf32> to vector<16x1xf32>
    %231 = arith.addf %228, %230 : vector<16x1xf32>
    %232 = vector.broadcast %224 : vector<16x1xf32> to vector<16x32xf32>
    %233 = arith.mulf %232, %214 : vector<16x32xf32>
    %234 = arith.truncf %227 : vector<16x16xf32> to vector<16x16xbf16>
    %cst_123 = arith.constant dense<0.000000e+00> : vector<16x32xf32>
    %235 = tpu.matmul %234, %218, %cst_123 {dimension_numbers = #tpu.dot_dimension_numbers<[1], [0], [0], [1], [0, 0, 1, 1], [], []>} : vector<16x16xbf16>, vector<16x32xbf16>, vector<16x32xf32> -> vector<16x32xf32>
    %236 = arith.addf %233, %235 : vector<16x32xf32>
    %c3_124 = arith.constant 3 : index
    %c16_125 = arith.constant 16 : index
    %c0_126 = arith.constant 0 : index
    %237 = vector.load %arg20[%c3_124, %c16_125, %c0_126] : memref<4x32x32xbf16, #tpu.memory_space<vmem>>, vector<1x16x32xbf16>
    %238 = vector.shape_cast %237 : vector<1x16x32xbf16> to vector<16x32xbf16>
    %c3_127 = arith.constant 3 : index
    %c16_128 = arith.constant 16 : index
    %c0_129 = arith.constant 0 : index
    %239 = vector.load %arg21[%c3_127, %c16_128, %c0_129] : memref<4x32x32xbf16, #tpu.memory_space<vmem>>, vector<1x16x32xbf16>
    %240 = vector.shape_cast %239 : vector<1x16x32xbf16> to vector<16x32xbf16>
    %cst_130 = arith.constant dense<0.000000e+00> : vector<16x16xf32>
    %241 = tpu.matmul %211, %238, %cst_130 {dimension_numbers = #tpu.dot_dimension_numbers<[1], [1], [0], [0], [0, 0, 1, 0], [], []>} : vector<16x32xbf16>, vector<16x32xbf16>, vector<16x16xf32> -> vector<16x16xf32>
    %cst_131 = arith.constant dense<0xFF800000> : vector<16xf32>
    %242 = vector.multi_reduction <maximumf>, %241, %cst_131 [1] : vector<16x16xf32> to vector<16xf32>
    %243 = vector.shape_cast %242 : vector<16xf32> to vector<16x1xf32>
    %244 = arith.maximumf %222, %243 : vector<16x1xf32>
    %245 = arith.subf %222, %244 : vector<16x1xf32>
    %246 = math.exp %245 : vector<16x1xf32>
    %247 = vector.broadcast %244 : vector<16x1xf32> to vector<16x16xf32>
    %248 = arith.subf %241, %247 : vector<16x16xf32>
    %249 = math.exp %248 : vector<16x16xf32>
    %250 = arith.mulf %246, %231 : vector<16x1xf32>
    %cst_132 = arith.constant dense<0.000000e+00> : vector<16xf32>
    %251 = vector.multi_reduction <add>, %249, %cst_132 [1] : vector<16x16xf32> to vector<16xf32>
    %252 = vector.shape_cast %251 : vector<16xf32> to vector<16x1xf32>
    %253 = arith.addf %250, %252 : vector<16x1xf32>
    %254 = vector.broadcast %246 : vector<16x1xf32> to vector<16x32xf32>
    %255 = arith.mulf %254, %236 : vector<16x32xf32>
    %256 = arith.truncf %249 : vector<16x16xf32> to vector<16x16xbf16>
    %cst_133 = arith.constant dense<0.000000e+00> : vector<16x32xf32>
    %257 = tpu.matmul %256, %240, %cst_133 {dimension_numbers = #tpu.dot_dimension_numbers<[1], [0], [0], [1], [0, 0, 1, 1], [], []>} : vector<16x16xbf16>, vector<16x32xbf16>, vector<16x32xf32> -> vector<16x32xf32>
    %258 = arith.addf %255, %257 : vector<16x32xf32>
    %259 = vector.broadcast %253 : vector<16x1xf32> to vector<16x32xf32>
    %260 = arith.divf %258, %259 : vector<16x32xf32>
    %261 = arith.truncf %260 : vector<16x32xf32> to vector<16x32xbf16>
    %c3_134 = arith.constant 3 : index
    %c0_135 = arith.constant 0 : index
    %c0_136 = arith.constant 0 : index
    %262 = vector.load %arg9[%c3_134, %c0_135, %c0_136] : memref<4x32x128xbf16, #tpu.memory_space<vmem>>, vector<1x32x128xbf16>
    %263 = vector.shape_cast %262 : vector<1x32x128xbf16> to vector<32x128xbf16>
    %cst_137 = arith.constant dense<0.000000e+00> : vector<16x128xf32>
    %264 = tpu.matmul %261, %263, %cst_137 {dimension_numbers = #tpu.dot_dimension_numbers<[1], [0], [0], [1], [0, 0, 1, 1], [], []>} : vector<16x32xbf16>, vector<32x128xbf16>, vector<16x128xf32> -> vector<16x128xf32>
    %265 = arith.addf %201, %264 : vector<16x128xf32>
    %c0_138 = arith.constant 0 : index
    %c0_139 = arith.constant 0 : index
    %266 = vector.load %arg10[%c0_138, %c0_139] : memref<1x128xf32, #tpu.memory_space<vmem>>, vector<1x128xf32>
    %267 = vector.broadcast %266 : vector<1x128xf32> to vector<16x128xf32>
    %268 = arith.addf %265, %267 : vector<16x128xf32>
    %269 = arith.addf %8, %268 : vector<16x128xf32>
    %c0_140 = arith.constant 0 : index
    %c0_141 = arith.constant 0 : index
    %270 = vector.load %arg11[%c0_140, %c0_141] : memref<1x128xf32, #tpu.memory_space<vmem>>, vector<1x128xf32>
    %c0_142 = arith.constant 0 : index
    %c0_143 = arith.constant 0 : index
    %271 = vector.load %arg12[%c0_142, %c0_143] : memref<1x128xf32, #tpu.memory_space<vmem>>, vector<1x128xf32>
    %cst_144 = arith.constant dense<0.000000e+00> : vector<16xf32>
    %272 = vector.multi_reduction <add>, %269, %cst_144 [1] : vector<16x128xf32> to vector<16xf32>
    %273 = vector.shape_cast %272 : vector<16xf32> to vector<16x1xf32>
    %cst_145 = arith.constant 1.280000e+02 : f32
    %274 = vector.broadcast %cst_145 : f32 to vector<16x1xf32>
    %275 = arith.divf %273, %274 : vector<16x1xf32>
    %276 = vector.broadcast %275 : vector<16x1xf32> to vector<16x128xf32>
    %277 = arith.subf %269, %276 : vector<16x128xf32>
    %278 = arith.mulf %277, %277 : vector<16x128xf32>
    %cst_146 = arith.constant dense<0.000000e+00> : vector<16xf32>
    %279 = vector.multi_reduction <add>, %278, %cst_146 [1] : vector<16x128xf32> to vector<16xf32>
    %280 = vector.shape_cast %279 : vector<16xf32> to vector<16x1xf32>
    %cst_147 = arith.constant 1.280000e+02 : f32
    %281 = vector.broadcast %cst_147 : f32 to vector<16x1xf32>
    %282 = arith.divf %280, %281 : vector<16x1xf32>
    %cst_148 = arith.constant 9.99999974E-6 : f32
    %283 = vector.broadcast %cst_148 : f32 to vector<16x1xf32>
    %284 = arith.addf %282, %283 : vector<16x1xf32>
    %285 = math.rsqrt %284 : vector<16x1xf32>
    %286 = vector.broadcast %285 : vector<16x1xf32> to vector<16x128xf32>
    %287 = arith.mulf %277, %286 : vector<16x128xf32>
    %288 = vector.broadcast %270 : vector<1x128xf32> to vector<16x128xf32>
    %289 = arith.mulf %287, %288 : vector<16x128xf32>
    %290 = vector.broadcast %271 : vector<1x128xf32> to vector<16x128xf32>
    %291 = arith.addf %289, %290 : vector<16x128xf32>
    %292 = arith.truncf %291 : vector<16x128xf32> to vector<16x128xbf16>
    %c0_149 = arith.constant 0 : index
    %c0_150 = arith.constant 0 : index
    %293 = vector.load %arg13[%c0_149, %c0_150] : memref<128x256xbf16, #tpu.memory_space<vmem>>, vector<128x256xbf16>
    %cst_151 = arith.constant dense<0.000000e+00> : vector<16x256xf32>
    %294 = tpu.matmul %292, %293, %cst_151 {dimension_numbers = #tpu.dot_dimension_numbers<[1], [0], [0], [1], [0, 0, 1, 1], [], []>} : vector<16x128xbf16>, vector<128x256xbf16>, vector<16x256xf32> -> vector<16x256xf32>
    %c0_152 = arith.constant 0 : index
    %c0_153 = arith.constant 0 : index
    %295 = vector.load %arg14[%c0_152, %c0_153] : memref<1x256xf32, #tpu.memory_space<vmem>>, vector<1x256xf32>
    %296 = vector.broadcast %295 : vector<1x256xf32> to vector<16x256xf32>
    %297 = arith.addf %294, %296 : vector<16x256xf32>
    %cst_154 = arith.constant 0.000000e+00 : f32
    %298 = vector.broadcast %cst_154 : f32 to vector<16x256xf32>
    %299 = arith.maximumf %297, %298 : vector<16x256xf32>
    %300 = arith.truncf %299 : vector<16x256xf32> to vector<16x256xbf16>
    %c0_155 = arith.constant 0 : index
    %c0_156 = arith.constant 0 : index
    %301 = vector.load %arg15[%c0_155, %c0_156] : memref<256x128xbf16, #tpu.memory_space<vmem>>, vector<256x128xbf16>
    %cst_157 = arith.constant dense<0.000000e+00> : vector<16x128xf32>
    %302 = tpu.matmul %300, %301, %cst_157 {dimension_numbers = #tpu.dot_dimension_numbers<[1], [0], [0], [1], [0, 0, 1, 1], [], []>} : vector<16x256xbf16>, vector<256x128xbf16>, vector<16x128xf32> -> vector<16x128xf32>
    %c0_158 = arith.constant 0 : index
    %c0_159 = arith.constant 0 : index
    %303 = vector.load %arg16[%c0_158, %c0_159] : memref<1x128xf32, #tpu.memory_space<vmem>>, vector<1x128xf32>
    %304 = vector.broadcast %303 : vector<1x128xf32> to vector<16x128xf32>
    %305 = arith.addf %302, %304 : vector<16x128xf32>
    %306 = arith.addf %291, %305 : vector<16x128xf32>
    %c0_160 = arith.constant 0 : index
    %c0_161 = arith.constant 0 : index
    %307 = vector.load %arg17[%c0_160, %c0_161] : memref<1x128xf32, #tpu.memory_space<vmem>>, vector<1x128xf32>
    %c0_162 = arith.constant 0 : index
    %c0_163 = arith.constant 0 : index
    %308 = vector.load %arg18[%c0_162, %c0_163] : memref<1x128xf32, #tpu.memory_space<vmem>>, vector<1x128xf32>
    %cst_164 = arith.constant dense<0.000000e+00> : vector<16xf32>
    %309 = vector.multi_reduction <add>, %306, %cst_164 [1] : vector<16x128xf32> to vector<16xf32>
    %310 = vector.shape_cast %309 : vector<16xf32> to vector<16x1xf32>
    %cst_165 = arith.constant 1.280000e+02 : f32
    %311 = vector.broadcast %cst_165 : f32 to vector<16x1xf32>
    %312 = arith.divf %310, %311 : vector<16x1xf32>
    %313 = vector.broadcast %312 : vector<16x1xf32> to vector<16x128xf32>
    %314 = arith.subf %306, %313 : vector<16x128xf32>
    %315 = arith.mulf %314, %314 : vector<16x128xf32>
    %cst_166 = arith.constant dense<0.000000e+00> : vector<16xf32>
    %316 = vector.multi_reduction <add>, %315, %cst_166 [1] : vector<16x128xf32> to vector<16xf32>
    %317 = vector.shape_cast %316 : vector<16xf32> to vector<16x1xf32>
    %cst_167 = arith.constant 1.280000e+02 : f32
    %318 = vector.broadcast %cst_167 : f32 to vector<16x1xf32>
    %319 = arith.divf %317, %318 : vector<16x1xf32>
    %cst_168 = arith.constant 9.99999974E-6 : f32
    %320 = vector.broadcast %cst_168 : f32 to vector<16x1xf32>
    %321 = arith.addf %319, %320 : vector<16x1xf32>
    %322 = math.rsqrt %321 : vector<16x1xf32>
    %323 = vector.broadcast %322 : vector<16x1xf32> to vector<16x128xf32>
    %324 = arith.mulf %314, %323 : vector<16x128xf32>
    %325 = vector.broadcast %307 : vector<1x128xf32> to vector<16x128xf32>
    %326 = arith.mulf %324, %325 : vector<16x128xf32>
    %327 = vector.broadcast %308 : vector<1x128xf32> to vector<16x128xf32>
    %328 = arith.addf %326, %327 : vector<16x128xf32>
    %c0_169 = arith.constant 0 : index
    %c0_170 = arith.constant 0 : index
    %c0_171 = arith.constant 0 : index
    %329 = vector.load %arg19[%c0_169, %c0_170, %c0_171] : memref<1x16x128xf32, #tpu.memory_space<vmem>>, vector<1x16x128xf32>
    %330 = vector.shape_cast %329 : vector<1x16x128xf32> to vector<16x128xf32>
    %331 = vector.shape_cast %328 : vector<16x128xf32> to vector<1x16x128xf32>
    tpu.vector_store %arg19[%c0_169, %c0_170, %c0_171], %331 {strides = array<i32>} : memref<1x16x128xf32, #tpu.memory_space<vmem>>, vector<1x16x128xf32>,
    return
  }
  func.func @transform_0(%arg0: i32, %arg1: i32) -> (i32, i32, i32) {
    %c0_i32 = arith.constant 0 : i32
    %c0_i32_0 = arith.constant 0 : i32
    %c0_i32_1 = arith.constant 0 : i32
    return %arg0, %c0_i32, %c0_i32_0 : i32, i32, i32
  }
  func.func @transform_1(%arg0: i32, %arg1: i32) -> (i32, i32, i32) {
    %c0_i32 = arith.constant 0 : i32
    %c0_i32_0 = arith.constant 0 : i32
    %c0_i32_1 = arith.constant 0 : i32
    %c0_i32_2 = arith.constant 0 : i32
    return %c0_i32, %c0_i32_0, %c0_i32_1 : i32, i32, i32
  }
  func.func @transform_2(%arg0: i32, %arg1: i32) -> (i32, i32, i32) {
    %c0_i32 = arith.constant 0 : i32
    %c0_i32_0 = arith.constant 0 : i32
    %c0_i32_1 = arith.constant 0 : i32
    %c0_i32_2 = arith.constant 0 : i32
    return %c0_i32, %c0_i32_0, %c0_i32_1 : i32, i32, i32
  }
  func.func @transform_3(%arg0: i32, %arg1: i32) -> (i32, i32, i32) {
    %c0_i32 = arith.constant 0 : i32
    %c0_i32_0 = arith.constant 0 : i32
    %c0_i32_1 = arith.constant 0 : i32
    %c0_i32_2 = arith.constant 0 : i32
    return %c0_i32, %c0_i32_0, %c0_i32_1 : i32, i32, i32
  }
  func.func @transform_4(%arg0: i32, %arg1: i32) -> (i32, i32, i32) {
    %c0_i32 = arith.constant 0 : i32
    %c0_i32_0 = arith.constant 0 : i32
    %c0_i32_1 = arith.constant 0 : i32
    %c0_i32_2 = arith.constant 0 : i32
    return %c0_i32, %c0_i32_0, %c0_i32_1 : i32, i32, i32
  }
  func.func @transform_5(%arg0: i32, %arg1: i32) -> (i32, i32, i32) {
    %c0_i32 = arith.constant 0 : i32
    %c0_i32_0 = arith.constant 0 : i32
    %c0_i32_1 = arith.constant 0 : i32
    %c0_i32_2 = arith.constant 0 : i32
    return %c0_i32, %c0_i32_0, %c0_i32_1 : i32, i32, i32
  }
  func.func @transform_6(%arg0: i32, %arg1: i32) -> (i32, i32, i32) {
    %c0_i32 = arith.constant 0 : i32
    %c0_i32_0 = arith.constant 0 : i32
    %c0_i32_1 = arith.constant 0 : i32
    %c0_i32_2 = arith.constant 0 : i32
    return %c0_i32, %c0_i32_0, %c0_i32_1 : i32, i32, i32
  }
  func.func @transform_7(%arg0: i32, %arg1: i32) -> (i32, i32, i32) {
    %c0_i32 = arith.constant 0 : i32
    %c0_i32_0 = arith.constant 0 : i32
    %c0_i32_1 = arith.constant 0 : i32
    %c0_i32_2 = arith.constant 0 : i32
    return %c0_i32, %c0_i32_0, %c0_i32_1 : i32, i32, i32
  }
  func.func @transform_8(%arg0: i32, %arg1: i32) -> (i32, i32) {
    %c0_i32 = arith.constant 0 : i32
    %c0_i32_0 = arith.constant 0 : i32
    %c0_i32_1 = arith.constant 0 : i32
    return %c0_i32, %c0_i32_0 : i32, i32
  }
  func.func @transform_9(%arg0: i32, %arg1: i32) -> (i32, i32) {
    %c0_i32 = arith.constant 0 : i32
    %c0_i32_0 = arith.constant 0 : i32
    %c0_i32_1 = arith.constant 0 : i32
    return %c0_i32, %c0_i32_0 : i32, i32
  }
  func.func @transform_10(%arg0: i32, %arg1: i32) -> (i32, i32) {
    %c0_i32 = arith.constant 0 : i32
    %c0_i32_0 = arith.constant 0 : i32
    %c0_i32_1 = arith.constant 0 : i32
    return %c0_i32, %c0_i32_0 : i32, i32
  }
  func.func @transform_11(%arg0: i32, %arg1: i32) -> (i32, i32) {
    %c0_i32 = arith.constant 0 : i32
    %c0_i32_0 = arith.constant 0 : i32
    %c0_i32_1 = arith.constant 0 : i32
    return %c0_i32, %c0_i32_0 : i32, i32
  }
  func.func @transform_12(%arg0: i32, %arg1: i32) -> (i32, i32) {
    %c0_i32 = arith.constant 0 : i32
    %c0_i32_0 = arith.constant 0 : i32
    %c0_i32_1 = arith.constant 0 : i32
    return %c0_i32, %c0_i32_0 : i32, i32
  }
  func.func @transform_13(%arg0: i32, %arg1: i32) -> (i32, i32) {
    %c0_i32 = arith.constant 0 : i32
    %c0_i32_0 = arith.constant 0 : i32
    %c0_i32_1 = arith.constant 0 : i32
    return %c0_i32, %c0_i32_0 : i32, i32
  }
  func.func @transform_14(%arg0: i32, %arg1: i32) -> (i32, i32) {
    %c0_i32 = arith.constant 0 : i32
    %c0_i32_0 = arith.constant 0 : i32
    %c0_i32_1 = arith.constant 0 : i32
    return %c0_i32, %c0_i32_0 : i32, i32
  }
  func.func @transform_15(%arg0: i32, %arg1: i32) -> (i32, i32) {
    %c0_i32 = arith.constant 0 : i32
    %c0_i32_0 = arith.constant 0 : i32
    %c0_i32_1 = arith.constant 0 : i32
    return %c0_i32, %c0_i32_0 : i32, i32
  }
  func.func @transform_16(%arg0: i32, %arg1: i32) -> (i32, i32) {
    %c0_i32 = arith.constant 0 : i32
    %c0_i32_0 = arith.constant 0 : i32
    %c0_i32_1 = arith.constant 0 : i32
    return %c0_i32, %c0_i32_0 : i32, i32
  }
  func.func @transform_17(%arg0: i32, %arg1: i32) -> (i32, i32, i32) {
    %c0_i32 = arith.constant 0 : i32
    %c0_i32_0 = arith.constant 0 : i32
    return %arg0, %arg1, %c0_i32 : i32, i32, i32
  }
}

</mosaic_0001>

<bundles_post_ra>
// kernel: tpu_custom_call.1
= control target key start
LH: loop header
LB: loop body
LE: loop exit
PB: predicated region body
PF: predicated region fallthrough
CT: control target
= control target key end

     0   :  { %s6659_s0 = inlined_call_operand.vmem [shape: bf16[2,32,128], index: 0, kind: input, shape index: {}]   ;;  %s6660_s1 = inlined_call_operand.vmem [shape: bf16[4,128,32], index: 1, kind: input, shape index: {}]   ;;  %s6661_s2 = inlined_call_operand.vmem [shape: f32[4,1,32], index: 2, kind: input, shape index: {}]   ;;  %s6662_s3 = inlined_call_operand.vmem [shape: bf16[4,128,32], index: 3, kind: input, shape index: {}]   ;;  %s6663_s4 = inlined_call_operand.vmem [shape: f32[4,1,32], index: 4, kind: input, shape index: {}]   ;;  %s6664_s5 = inlined_call_operand.vmem [shape: bf16[4,128,32], index: 5, kind: input, shape index: {}]   ;;  %s6665_s6 = inlined_call_operand.vmem [shape: f32[4,1,32], index: 6, kind: input, shape index: {}]   ;;  %s6666_s7 = inlined_call_operand.vmem [shape: bf16[4,32,128], index: 7, kind: input, shape index: {}]   ;;  %s6667_s8 = inlined_call_operand.vmem [shape: f32[1,128], index: 8, kind: input, shape index: {}]   ;;  %s6668_s9 = inlined_call_operand.vmem [shape: f32[1,128], index: 9, kind: input, shape index: {}]   ;;  %s6669_s10 = inlined_call_operand.vmem [shape: f32[1,128], index: 10, kind: input, shape index: {}]   ;;  %s6670_s11 = inlined_call_operand.vmem [shape: bf16[128,256], index: 11, kind: input, shape index: {}]   ;;  %s6671_s12 = inlined_call_operand.vmem [shape: f32[1,256], index: 12, kind: input, shape index: {}]   ;;  %s6672_s13 = inlined_call_operand.vmem [shape: bf16[256,128], index: 13, kind: input, shape index: {}]   ;;  %s6673_s14 = inlined_call_operand.vmem [shape: f32[1,128], index: 14, kind: input, shape index: {}]   ;;  %s6674_s15 = inlined_call_operand.vmem [shape: f32[1,128], index: 15, kind: input, shape index: {}]   ;;  %s6675_s16 = inlined_call_operand.vmem [shape: f32[1,128], index: 16, kind: input, shape index: {}]   ;;  %s6676_s17 = inlined_call_operand.hbm [shape: f32[2,32,128], index: 17, kind: output, shape index: {}]  }
   0x1   :  { %6691 = sst [smem:[#allocation17_spill]] %s6659_s0 }
   0x2   :  { %6692 = sst [smem:[#allocation18_spill]] %s6660_s1 }
   0x3   :  { %6693 = sst [smem:[#allocation19_spill]] %s6661_s2 }
   0x4   :  { %6694 = sst [smem:[#allocation20_spill]] %s6662_s3 }
   0x5   :  { %6695 = sst [smem:[#allocation21_spill]] %s6675_s16 }
   0x6   :  { %6696 = sst [smem:[#allocation22_spill]] %s6676_s17 }
   0x7   :  { %22 = vsyncpa [#allocation5], 0 }
   0x8   :  { %24 = vsyncpa [#allocation5 + $0x1], 0  ;;  %s5573_s24 = smov 0   ;;  %s5575_s25 = smov 0  }
   0x9   :  { %s5577_s26 = smov 0   ;;  %s5579_s27 = smov 0  }
   0xa   :  { %s5581_s28 = smov 0   ;;  %s5583_s29 = smov 0  }
   0xb   :  { %s5585_s0 = smov 0   ;;  %s5587_s30 = smov 0  }
   0xc LB: > { %6697 = sst [smem:[#allocation7_spill]] %s5450_s24  ;;  %s3794_s18 = sadd.s32 4294967295, %s5478_s30   ;;  %s5478_s30 = sphi %s5587_s30, %s30_s30   ;;  %s5474_s0 = sphi %s5585_s0, %s6727_s0   ;;  %s5470_s29 = sphi %s5583_s29, %s6726_s29   ;;  %s5466_s28 = sphi %s5581_s28, %s6725_s28   ;;  %s5462_s27 = sphi %s5579_s27, %s6724_s27   ;;  %s5458_s26 = sphi %s5577_s26, %s6723_s26   ;;  %s5454_s25 = sphi %s5575_s25, %s6729_s25   ;;  %s5450_s24 = sphi %s5573_s24, %s6728_s24  }
   0xd   : > { %6698 = sst [smem:[#allocation8_spill]] %s5458_s26  ;;  %s3795_s19 = sadd.s32 4294967294, %s5478_s30  }
   0xe   : > { %6699 = sst [smem:[#allocation9_spill]] %s5470_s29  ;;  %s39_s1 = sadd.s32 1, %s5470_s29 }
   0xf   : > { %6700 = sst [smem:[#allocation10_spill]] %s5474_s0  ;;  %p40_p0 = scmp.ge.s32.totalorder %s39_s1, 2 }
  0x10   : > { %6701 = sst [smem:[#allocation11_spill]] %s5478_s30  ;;  %s42_s20 = sadd.s32 1, %s5474_s0 }
  0x11   : > { %p423_p1 = scmp.ne.s32.totalorder %s5458_s26, %s5454_s25  ;;  %p424_p2 = scmp.eq.s32.totalorder %s3794_s18, 3 }
  0x12   : > { %s6731_s1 = smov (%p40_p0, %s39_s1), 0  ;;  %s6733_s20 = smov (!%p40_p0, %s42_s20), %s5474_s0 }
  0x13   : > { %6702 = sst [smem:[#allocation12_spill]] %s6731_s1  ;;  %s409_s21 = ssub.s32 %s5470_s29, %s6731_s1 }
  0x14   : > { %p5624_p3 = por %p424_p2, %p423_p1  ;;  %p44_p4 = scmp.ge.s32.totalorder %s6733_s20, 2 }
  0x15   : > { %p429_p5 = scmp.ne.s32.totalorder %s5454_s25, %s5450_s24  ;;  %p430_p6 = scmp.eq.s32.totalorder %s3795_s19, 3 }
  0x16   : > { %s6703_s22 = scalar_select %p5624_p3, 1, 0 }
  0x17   : > { %p3798_p7 = scmp.ge.s32.totalorder %s5478_s30, 1  ;;  %s6735_s20 = smov (%p44_p4, %s6733_s20), 0 }
  0x18   : > { %6704 = sst [smem:[#allocation13_spill]] %s6703_s22  ;;  %p5633_p8 = por %p430_p6, %p429_p5 }
  0x19   : > { %6705 = sst [smem:[#allocation14_spill]] %s6735_s20  ;;  %p504_p9 = scmp.lt.s32.totalorder %s5478_s30, 5 }
  0x1a   : > { %s6706_s23 = scalar_select %p5633_p8, 1, 0 }
  0x1b   : > { %s408_s18 = ssub.s32 %s5474_s0, %s6735_s20  ;;  %s413_s17 = sadd.s32 1, %s5458_s26 }
  0x1c   : > { %6707 = sst [smem:[#allocation15_spill]] %s6706_s23  ;;  %s410_s16 = sor.u32 %s409_s21, %s408_s18 }
  0x1d   : > { %p505_p10 = pnand %p3798_p7, %p504_p9  ;;  %p411_p11 = scmp.eq.s32.totalorder %s410_s16, 0 }
  0x1e   : > { %s6689_s19 = sand.u32 (!%p505_p10), 1, %s5454_s25   ;;  %p556_p12 = scmp.lt.s32.totalorder (!%p505_p10), %s5466_s28, 1 }
  0x1f   : > { %s5642_s1 = scalar_select %p411_p11, %s5458_s26, %s413_s17  }
  0x20   : > { %508 = sbr.rel (%p505_p10) target bundleno = 2775 (0xad7), region = 88  ;;  %s3799_s29 = sshll.u32 (!%p505_p10), %s6689_s19, 4 }
  0x21   : > { %6708 = sst [smem:[#allocation16_spill]] %s5642_s1  ;;  %s5654_s21 = scalar_lea.vmem (!%p505_p10), [#allocation4], %s3799_s29 }
  0x22   : > { %s6709_s20 = sld [smem:[#allocation17_spill]] (!%p505_p10)  ;;  %p3802_p13 = scmp.ne.s32.totalorder (!%p505_p10), %s5462_s27, 0 }
  0x25   : > { %s557_s24 = scalar_select %p556_p12, %s5466_s28, 1 }
  0x26   : > { %566 = sbr.rel (%p3802_p13) target bundleno = 319 (0x13f), region = 92  ;;  %s6710_s3 = sld [smem:[#allocation20_spill]] (!%p3802_p13) }
  0x27   : > { %s4974_s22 = sshll.u32 %s557_s24, 4 }
  0x28   : > { %s5652_s0 = scalar_lea.vmem %s6709_s20, %s4974_s22 }
  0x2b   : > { %v4991_v1 = vld [vmem:[%s6664_s5 + $0x38] sm:$0xff]  ;;  %v4990_v5 = vld [vmem:[%s6664_s5 + $0x30] sm:$0xff]  ;;  %v4989_v9 = vld [vmem:[%s6664_s5 + $0x28] sm:$0xff]  ;;  %vm741_vm0 = vcmask 257024  }
  0x2c   : > { %v4983_v0 = vld [vmem:[%s6710_s3 + $0x38] sm:$0xff]  ;;  %725 = vmatpush.bf16.msra.mxu1 %v4991_v1  ;;  %v4982_v4 = vld [vmem:[%s6710_s3 + $0x30] sm:$0xff]  ;;  %v4981_v8 = vld [vmem:[%s6710_s3 + $0x28] sm:$0xff] }
  0x2d   : > { %v4999_v2 = vld [vmem:[%s6710_s3 + $0x78] sm:$0xff]  ;;  %643 = vmatpush.bf16.msra.mxu0 %v4983_v0  ;;  %v4998_v6 = vld [vmem:[%s6710_s3 + $0x70] sm:$0xff]  ;;  %v4997_v10 = vld [vmem:[%s6710_s3 + $0x68] sm:$0xff] }
  0x2e   : > { %v5007_v3 = vld [vmem:[%s6664_s5 + $0x78] sm:$0xff]  ;;  %818 = vmatpush.bf16.msra.mxu2 %v4999_v2  ;;  %v5006_v7 = vld [vmem:[%s6664_s5 + $0x70] sm:$0xff]  ;;  %v5005_v11 = vld [vmem:[%s6664_s5 + $0x68] sm:$0xff] }
  0x2f   : > { %902 = vmatpush.bf16.msra.mxu3 %v5007_v3  ;;  %v4980_v12 = vld [vmem:[%s6710_s3 + $0x20] sm:$0xff]  ;;  %v4979_v16 = vld [vmem:[%s6710_s3 + $0x18] sm:$0xff]  ;;  %v4978_v20 = vld [vmem:[%s6710_s3 + $0x10] sm:$0xff] }
  0x30   : > { %726 = vmatpush.bf16.msra.mxu1 %v4990_v5  ;;  %v4988_v13 = vld [vmem:[%s6664_s5 + $0x20] sm:$0xff]  ;;  %v4987_v17 = vld [vmem:[%s6664_s5 + $0x18] sm:$0xff]  ;;  %v4986_v21 = vld [vmem:[%s6664_s5 + $0x10] sm:$0xff] }
  0x31   : > { %644 = vmatpush.bf16.msra.mxu0 %v4982_v4  ;;  %v4996_v14 = vld [vmem:[%s6710_s3 + $0x60] sm:$0xff]  ;;  %v4995_v18 = vld [vmem:[%s6710_s3 + $0x58] sm:$0xff]  ;;  %v4994_v22 = vld [vmem:[%s6710_s3 + $0x50] sm:$0xff] }
  0x32   : > { %819 = vmatpush.bf16.msra.mxu2 %v4998_v6  ;;  %v5004_v15 = vld [vmem:[%s6664_s5 + $0x60] sm:$0xff]  ;;  %v5003_v19 = vld [vmem:[%s6664_s5 + $0x58] sm:$0xff]  ;;  %v5002_v23 = vld [vmem:[%s6664_s5 + $0x50] sm:$0xff] }
  0x33   : > { %903 = vmatpush.bf16.msra.mxu3 %v5006_v7  ;;  %v4977_v24 = vld [vmem:[%s6710_s3 + $0x8] sm:$0xff]  ;;  %v4976_v28 = vld [vmem:[%s6710_s3] sm:$0xff]  ;;  %v5015_v32 = vld [vmem:[%s6710_s3 + $0xb8] sm:$0xff] }
  0x34   : > { %727 = vmatpush.bf16.msra.mxu1 %v4989_v9  ;;  %v4985_v25 = vld [vmem:[%s6664_s5 + $0x8] sm:$0xff]  ;;  %v4984_v29 = vld [vmem:[%s6664_s5] sm:$0xff]  ;;  %v5023_v33 = vld [vmem:[%s6664_s5 + $0xb8] sm:$0xff] }
  0x35   : > { %645 = vmatpush.bf16.msra.mxu0 %v4981_v8  ;;  %v4993_v26 = vld [vmem:[%s6710_s3 + $0x48] sm:$0xff]  ;;  %v4992_v30 = vld [vmem:[%s6710_s3 + $0x40] sm:$0xff]  ;;  %v5031_v34 = vld [vmem:[%s6710_s3 + $0xf8] sm:$0xff] }
  0x36   : > { %820 = vmatpush.bf16.msra.mxu2 %v4997_v10  ;;  %v5001_v27 = vld [vmem:[%s6664_s5 + $0x48] sm:$0xff]  ;;  %v5000_v31 = vld [vmem:[%s6664_s5 + $0x40] sm:$0xff]  ;;  %v5039_v35 = vld [vmem:[%s6664_s5 + $0xf8] sm:$0xff] }
  0x37   : > { %904 = vmatpush.bf16.msra.mxu3 %v5005_v11  ;;  %v5766_v36 = vld [vmem:[%s5652_s0] sm:$0xff]  ;;  %v5014_v37 = vld [vmem:[%s6710_s3 + $0xb0] sm:$0xff]  ;;  %v5013_v41 = vld [vmem:[%s6710_s3 + $0xa8] sm:$0xff] }
  0x38   : > { %728 = vmatpush.bf16.msra.mxu1 %v4988_v13  ;;  %v5022_v38 = vld [vmem:[%s6664_s5 + $0xb0] sm:$0xff]  ;;  %v5021_v42 = vld [vmem:[%s6664_s5 + $0xa8] sm:$0xff]  ;;  %v5012_v45 = vld [vmem:[%s6710_s3 + $0xa0] sm:$0xff] }
  0x39   : > { %646 = vmatpush.bf16.msra.mxu0 %v4980_v12  ;;  %v5030_v39 = vld [vmem:[%s6710_s3 + $0xf0] sm:$0xff]  ;;  %v5029_v43 = vld [vmem:[%s6710_s3 + $0xe8] sm:$0xff]  ;;  %v5020_v46 = vld [vmem:[%s6664_s5 + $0xa0] sm:$0xff] }
  0x3a   : > { %821 = vmatpush.bf16.msra.mxu2 %v4996_v14  ;;  %v5038_v40 = vld [vmem:[%s6664_s5 + $0xf0] sm:$0xff]  ;;  %v5037_v44 = vld [vmem:[%s6664_s5 + $0xe8] sm:$0xff]  ;;  %v5028_v47 = vld [vmem:[%s6710_s3 + $0xe0] sm:$0xff] }
  0x3b   : > { %905 = vmatpush.bf16.msra.mxu3 %v5004_v15  ;;  %v5036_v48 = vld [vmem:[%s6664_s5 + $0xe0] sm:$0xff]  ;;  %v5011_v49 = vld [vmem:[%s6710_s3 + $0x98] sm:$0xff]  ;;  %v5010_v53 = vld [vmem:[%s6710_s3 + $0x90] sm:$0xff] }
  0x3c   : > { %729 = vmatpush.bf16.msra.mxu1 %v4987_v17  ;;  %v5019_v50 = vld [vmem:[%s6664_s5 + $0x98] sm:$0xff]  ;;  %v5018_v54 = vld [vmem:[%s6664_s5 + $0x90] sm:$0xff]  ;;  %v5009_v57 = vld [vmem:[%s6710_s3 + $0x88] sm:$0xff] }
  0x3d   : > { %647 = vmatpush.bf16.msra.mxu0 %v4979_v16  ;;  %v5027_v51 = vld [vmem:[%s6710_s3 + $0xd8] sm:$0xff]  ;;  %v5026_v55 = vld [vmem:[%s6710_s3 + $0xd0] sm:$0xff]  ;;  %v5017_v58 = vld [vmem:[%s6664_s5 + $0x88] sm:$0xff] }
  0x3e   : > { %822 = vmatpush.bf16.msra.mxu2 %v4995_v18  ;;  %v5035_v52 = vld [vmem:[%s6664_s5 + $0xd8] sm:$0xff]  ;;  %v5034_v56 = vld [vmem:[%s6664_s5 + $0xd0] sm:$0xff]  ;;  %v5025_v59 = vld [vmem:[%s6710_s3 + $0xc8] sm:$0xff] }
  0x3f   : > { %906 = vmatpush.bf16.msra.mxu3 %v5003_v19  ;;  %v5033_v60 = vld [vmem:[%s6664_s5 + $0xc8] sm:$0xff]  ;;  %v5008_v61 = vld [vmem:[%s6710_s3 + $0x80] sm:$0xff]  ;;  %v5048_v1 = vld [vmem:[%s6710_s3 + $0x38] sm:$0xff] }
  0x40   : > { %730 = vmatpush.bf16.msra.mxu1 %v4986_v21  ;;  %v5016_v62 = vld [vmem:[%s6664_s5 + $0x80] sm:$0xff]  ;;  %v5056_v2 = vld [vmem:[%s6664_s5 + $0x38] sm:$0xff]  ;;  %v5047_v5 = vld [vmem:[%s6710_s3 + $0x30] sm:$0xff] }
  0x41   : > { %648 = vmatpush.bf16.msra.mxu0 %v4978_v20  ;;  %v5024_v63 = vld [vmem:[%s6710_s3 + $0xc0] sm:$0xff]  ;;  %v5064_v3 = vld [vmem:[%s6710_s3 + $0x78] sm:$0xff]  ;;  %v5055_v6 = vld [vmem:[%s6664_s5 + $0x30] sm:$0xff] }
  0x42   : > { %823 = vmatpush.bf16.msra.mxu2 %v4994_v22  ;;  %v5032_v0 = vld [vmem:[%s6664_s5 + $0xc0] sm:$0xff]  ;;  %v5072_v4 = vld [vmem:[%s6664_s5 + $0x78] sm:$0xff]  ;;  %v5063_v7 = vld [vmem:[%s6710_s3 + $0x70] sm:$0xff] }
  0x43   : > { %907 = vmatpush.bf16.msra.mxu3 %v5002_v23  ;;  %v5071_v8 = vld [vmem:[%s6664_s5 + $0x70] sm:$0xff]  ;;  %v5046_v9 = vld [vmem:[%s6710_s3 + $0x28] sm:$0xff]  ;;  %v5045_v13 = vld [vmem:[%s6710_s3 + $0x20] sm:$0xff] }
  0x44   : > { %731 = vmatpush.bf16.msra.mxu1 %v4985_v25  ;;  %v5054_v10 = vld [vmem:[%s6664_s5 + $0x28] sm:$0xff]  ;;  %v5053_v14 = vld [vmem:[%s6664_s5 + $0x20] sm:$0xff]  ;;  %v5044_v17 = vld [vmem:[%s6710_s3 + $0x18] sm:$0xff] }
  0x45   : > { %649 = vmatpush.bf16.msra.mxu0 %v4977_v24  ;;  %v5062_v11 = vld [vmem:[%s6710_s3 + $0x68] sm:$0xff]  ;;  %v5061_v15 = vld [vmem:[%s6710_s3 + $0x60] sm:$0xff]  ;;  %v5052_v18 = vld [vmem:[%s6664_s5 + $0x18] sm:$0xff] }
  0x46   : > { %824 = vmatpush.bf16.msra.mxu2 %v4993_v26  ;;  %v5070_v12 = vld [vmem:[%s6664_s5 + $0x68] sm:$0xff]  ;;  %v5069_v16 = vld [vmem:[%s6664_s5 + $0x60] sm:$0xff]  ;;  %v5060_v19 = vld [vmem:[%s6710_s3 + $0x58] sm:$0xff] }
  0x47   : > { %908 = vmatpush.bf16.msra.mxu3 %v5001_v27  ;;  %v5068_v20 = vld [vmem:[%s6664_s5 + $0x58] sm:$0xff]  ;;  %v5043_v21 = vld [vmem:[%s6710_s3 + $0x10] sm:$0xff]  ;;  %v5042_v25 = vld [vmem:[%s6710_s3 + $0x8] sm:$0xff] }
  0x48   : > { %732 = vmatpush.bf16.msra.mxu1 %v4984_v29  ;;  %v5051_v22 = vld [vmem:[%s6664_s5 + $0x10] sm:$0xff]  ;;  %v5050_v26 = vld [vmem:[%s6664_s5 + $0x8] sm:$0xff]  ;;  %v5041_v29 = vld [vmem:[%s6710_s3] sm:$0xff] }
  0x49   : > { %650 = vmatpush.bf16.msra.mxu0 %v4976_v28  ;;  %v5059_v23 = vld [vmem:[%s6710_s3 + $0x50] sm:$0xff]  ;;  %v5058_v27 = vld [vmem:[%s6710_s3 + $0x48] sm:$0xff] }
  0x4a   : > { %825 = vmatpush.bf16.msra.mxu2 %v4992_v30  ;;  %v5067_v24 = vld [vmem:[%s6664_s5 + $0x50] sm:$0xff]  ;;  %v5066_v28 = vld [vmem:[%s6664_s5 + $0x48] sm:$0xff]  ;;  %v5049_v30 = vld [vmem:[%s6664_s5] sm:$0xff] }
  0x4b   : > { %909 = vmatpush.bf16.msra.mxu3 %v5000_v31  ;;  %733 = vmatmul.bf16.vlgmr.msra.gmra.mxu1 %v5766_v36  ;;  %v5057_v31 = vld [vmem:[%s6710_s3 + $0x40] sm:$0xff] }
  0x4c   : > { %1080 = vmatpush.bf16.msrb.mxu1 %v5023_v33  ;;  %651 = vmatmul.bf16.vlgmr.msra.gmra.mxu0 %v5766_v36  ;;  %v5080_v33 = vld [vmem:[%s6710_s3 + $0xb8] sm:$0xff] }
  0x4d   : > { %996 = vmatpush.bf16.msrb.mxu0 %v5015_v32  ;;  %826 = vmatmul.bf16.vlgmr.msra.gmra.mxu2 %v5766_v36  ;;  %v5065_v32 = vld [vmem:[%s6664_s5 + $0x40] sm:$0xff] }
  0x4e   : > { %1174 = vmatpush.bf16.msrb.mxu2 %v5031_v34  ;;  %910 = vmatmul.bf16.vlgmr.msra.gmra.mxu3 %v5766_v36  ;;  %v5088_v34 = vld [vmem:[%s6664_s5 + $0xb8] sm:$0xff] }
  0x4f   : > { %1258 = vmatpush.bf16.msrb.mxu3 %v5039_v35  ;;  %v5096_v35 = vld [vmem:[%s6710_s3 + $0xf8] sm:$0xff] }
  0x50   : > { %1081 = vmatpush.bf16.msrb.mxu1 %v5022_v38  ;;  %v5079_v38 = vld [vmem:[%s6710_s3 + $0xb0] sm:$0xff] }
  0x51   : > { %997 = vmatpush.bf16.msrb.mxu0 %v5014_v37  ;;  %v5969_v37 = vld [vmem:[%s5652_s0 + $0x8] sm:$0xff] }
  0x52   : > { %1175 = vmatpush.bf16.msrb.mxu2 %v5030_v39  ;;  %v5087_v39 = vld [vmem:[%s6664_s5 + $0xb0] sm:$0xff] }
  0x53   : > { %1259 = vmatpush.bf16.msrb.mxu3 %v5038_v40  ;;  %v5095_v40 = vld [vmem:[%s6710_s3 + $0xf0] sm:$0xff] }
  0x54   : > { %1082 = vmatpush.bf16.msrb.mxu1 %v5021_v42  ;;  %v5078_v42 = vld [vmem:[%s6710_s3 + $0xa8] sm:$0xff] }
  0x55   : > { %998 = vmatpush.bf16.msrb.mxu0 %v5013_v41  ;;  %v5103_v41 = vld [vmem:[%s6664_s5 + $0xf0] sm:$0xff] }
  0x56   : > { %1176 = vmatpush.bf16.msrb.mxu2 %v5029_v43  ;;  %v5086_v43 = vld [vmem:[%s6664_s5 + $0xa8] sm:$0xff] }
  0x57   : > { %1260 = vmatpush.bf16.msrb.mxu3 %v5037_v44  ;;  %v5094_v44 = vld [vmem:[%s6710_s3 + $0xe8] sm:$0xff] }
  0x58   : > { %1083 = vmatpush.bf16.msrb.mxu1 %v5020_v46  ;;  %v5077_v46 = vld [vmem:[%s6710_s3 + $0xa0] sm:$0xff] }
  0x59   : > { %999 = vmatpush.bf16.msrb.mxu0 %v5012_v45  ;;  %v5102_v45 = vld [vmem:[%s6664_s5 + $0xe8] sm:$0xff] }
  0x5a   : > { %1177 = vmatpush.bf16.msrb.mxu2 %v5028_v47  ;;  %v5085_v47 = vld [vmem:[%s6664_s5 + $0xa0] sm:$0xff] }
  0x5b   : > { %1261 = vmatpush.bf16.msrb.mxu3 %v5036_v48  ;;  %v5093_v48 = vld [vmem:[%s6710_s3 + $0xe0] sm:$0xff] }
  0x5c   : > { %1084 = vmatpush.bf16.msrb.mxu1 %v5019_v50  ;;  %v5076_v50 = vld [vmem:[%s6710_s3 + $0x98] sm:$0xff] }
  0x5d   : > { %1000 = vmatpush.bf16.msrb.mxu0 %v5011_v49  ;;  %v5101_v49 = vld [vmem:[%s6664_s5 + $0xe0] sm:$0xff] }
  0x5e   : > { %1178 = vmatpush.bf16.msrb.mxu2 %v5027_v51  ;;  %v5084_v51 = vld [vmem:[%s6664_s5 + $0x98] sm:$0xff] }
  0x5f   : > { %1262 = vmatpush.bf16.msrb.mxu3 %v5035_v52  ;;  %v5092_v52 = vld [vmem:[%s6710_s3 + $0xd8] sm:$0xff] }
  0x60   : > { %1085 = vmatpush.bf16.msrb.mxu1 %v5018_v54  ;;  %v5075_v54 = vld [vmem:[%s6710_s3 + $0x90] sm:$0xff] }
  0x61   : > { %1001 = vmatpush.bf16.msrb.mxu0 %v5010_v53  ;;  %v5100_v53 = vld [vmem:[%s6664_s5 + $0xd8] sm:$0xff] }
  0x62   : > { %1179 = vmatpush.bf16.msrb.mxu2 %v5026_v55  ;;  %v5083_v55 = vld [vmem:[%s6664_s5 + $0x90] sm:$0xff] }
  0x63   : > { %1263 = vmatpush.bf16.msrb.mxu3 %v5034_v56  ;;  %v5091_v56 = vld [vmem:[%s6710_s3 + $0xd0] sm:$0xff] }
  0x64   : > { %1086 = vmatpush.bf16.msrb.mxu1 %v5017_v58  ;;  %v5074_v58 = vld [vmem:[%s6710_s3 + $0x88] sm:$0xff] }
  0x65   : > { %1002 = vmatpush.bf16.msrb.mxu0 %v5009_v57  ;;  %v5099_v57 = vld [vmem:[%s6664_s5 + $0xd0] sm:$0xff] }
  0x66   : > { %1180 = vmatpush.bf16.msrb.mxu2 %v5025_v59  ;;  %v5082_v59 = vld [vmem:[%s6664_s5 + $0x88] sm:$0xff] }
  0x67   : > { %1264 = vmatpush.bf16.msrb.mxu3 %v5033_v60  ;;  %v5090_v60 = vld [vmem:[%s6710_s3 + $0xc8] sm:$0xff] }
  0x68   : > { %1087 = vmatpush.bf16.msrb.mxu1 %v5016_v62  ;;  %v5073_v62 = vld [vmem:[%s6710_s3 + $0x80] sm:$0xff] }
  0x69   : > { %1003 = vmatpush.bf16.msrb.mxu0 %v5008_v61  ;;  %v5098_v61 = vld [vmem:[%s6664_s5 + $0xc8] sm:$0xff] }
  0x6a   : > { %1181 = vmatpush.bf16.msrb.mxu2 %v5024_v63  ;;  %v5081_v63 = vld [vmem:[%s6664_s5 + $0x80] sm:$0xff] }
  0x6b   : > { %1265 = vmatpush.bf16.msrb.mxu3 %v5032_v0  ;;  %1088 = vmatmul.bf16.vlgmr.msrb.gmra.mxu1 %v5766_v36  ;;  %v5089_v0 = vld [vmem:[%s6710_s3 + $0xc0] sm:$0xff] }
  0x6c   : > { %1440 = vmatpush.bf16.msra.mxu1 %v5056_v2  ;;  %1004 = vmatmul.bf16.vlgmr.msrb.gmra.mxu0 %v5766_v36  ;;  %v5268_v2 = vld [vmem:[%s6663_s4] ss:$0 sm:$0xff] }
  0x6d   : > { %1358 = vmatpush.bf16.msra.mxu0 %v5048_v1  ;;  %1182 = vmatmul.bf16.vlgmr.msrb.gmra.mxu2 %v5766_v36  ;;  %v5097_v1 = vld [vmem:[%s6664_s5 + $0xc0] sm:$0xff] }
  0x6e   : > { %1530 = vmatpush.bf16.msra.mxu2 %v5064_v3  ;;  %1266 = vmatmul.bf16.vlgmr.msrb.gmra.mxu3 %v5766_v36  ;;  %v5104_v36 = vld [vmem:[%s6664_s5 + $0xf8] sm:$0xff]  ;;  %v5269_v3 = vld [vmem:[%s6665_s6] ss:$0 sm:$0xff] }
  0x6f   : > { %1612 = vmatpush.bf16.msra.mxu3 %v5072_v4 }
  0x70   : > { %1441 = vmatpush.bf16.msra.mxu1 %v5055_v6 }
  0x71   : > { %1359 = vmatpush.bf16.msra.mxu0 %v5047_v5 }
  0x72   : > { %1531 = vmatpush.bf16.msra.mxu2 %v5063_v7 }
  0x73   : > { %1613 = vmatpush.bf16.msra.mxu3 %v5071_v8  ;;  %v5270_v8 = vld [vmem:[%s6663_s4 + $0x1] ss:$0 sm:$0xff] }
  0x74   : > { %1442 = vmatpush.bf16.msra.mxu1 %v5054_v10 }
  0x75   : > { %1360 = vmatpush.bf16.msra.mxu0 %v5046_v9  ;;  %v5271_v9 = vld [vmem:[%s6665_s6 + $0x1] ss:$0 sm:$0xff] }
  0x76   : > { %1532 = vmatpush.bf16.msra.mxu2 %v5062_v11 }
  0x77   : > { %1614 = vmatpush.bf16.msra.mxu3 %v5070_v12 }
  0x78   : > { %1443 = vmatpush.bf16.msra.mxu1 %v5053_v14 }
  0x79   : > { %1361 = vmatpush.bf16.msra.mxu0 %v5045_v13 }
  0x7a   : > { %1533 = vmatpush.bf16.msra.mxu2 %v5061_v15 }
  0x7b   : > { %1615 = vmatpush.bf16.msra.mxu3 %v5069_v16 }
  0x7c   : > { %1444 = vmatpush.bf16.msra.mxu1 %v5052_v18 }
  0x7d   : > { %1362 = vmatpush.bf16.msra.mxu0 %v5044_v17 }
  0x7e   : > { %1534 = vmatpush.bf16.msra.mxu2 %v5060_v19 }
  0x7f   : > { %1616 = vmatpush.bf16.msra.mxu3 %v5068_v20 }
  0x80   : > { %1445 = vmatpush.bf16.msra.mxu1 %v5051_v22 }
  0x81   : > { %1363 = vmatpush.bf16.msra.mxu0 %v5043_v21 }
  0x82   : > { %1535 = vmatpush.bf16.msra.mxu2 %v5059_v23 }
  0x83   : > { %1617 = vmatpush.bf16.msra.mxu3 %v5067_v24 }
  0x84   : > { %1446 = vmatpush.bf16.msra.mxu1 %v5050_v26 }
  0x85   : > { %1364 = vmatpush.bf16.msra.mxu0 %v5042_v25 }
  0x86   : > { %1536 = vmatpush.bf16.msra.mxu2 %v5058_v27 }
  0x87   : > { %1618 = vmatpush.bf16.msra.mxu3 %v5066_v28 }
  0x88   : > { %1447 = vmatpush.bf16.msra.mxu1 %v5049_v30  ;;  %v5272_v30 = vld [vmem:[%s6663_s4 + $0x2] ss:$0 sm:$0xff] }
  0x89   : > { %1365 = vmatpush.bf16.msra.mxu0 %v5041_v29 }
  0x8a   : > { %1537 = vmatpush.bf16.msra.mxu2 %v5057_v31  ;;  %v5273_v31 = vld [vmem:[%s6665_s6 + $0x2] ss:$0 sm:$0xff] }
  0x8b   : > { %1619 = vmatpush.bf16.msra.mxu3 %v5065_v32  ;;  %1448 = vmatmul.bf16.vlgmr.msra.gmra.mxu1 %v5969_v37 }
  0x8c   : > { %1784 = vmatpush.bf16.msrb.mxu1 %v5088_v34  ;;  %1366 = vmatmul.bf16.vlgmr.msra.gmra.mxu0 %v5969_v37 }
  0x8d   : > { %1702 = vmatpush.bf16.msrb.mxu0 %v5080_v33  ;;  %1538 = vmatmul.bf16.vlgmr.msra.gmra.mxu2 %v5969_v37 }
  0x8e   : > { %1874 = vmatpush.bf16.msrb.mxu2 %v5096_v35  ;;  %1620 = vmatmul.bf16.vlgmr.msra.gmra.mxu3 %v5969_v37 }
  0x8f   : > { %1956 = vmatpush.bf16.msrb.mxu3 %v5104_v36  ;;  %v5274_v36 = vld [vmem:[%s6663_s4 + $0x3] ss:$0 sm:$0xff] }
  0x90   : > { %1785 = vmatpush.bf16.msrb.mxu1 %v5087_v39 }
  0x91   : > { %1703 = vmatpush.bf16.msrb.mxu0 %v5079_v38 }
  0x92   : > { %1875 = vmatpush.bf16.msrb.mxu2 %v5095_v40 }
  0x93   : > { %1957 = vmatpush.bf16.msrb.mxu3 %v5103_v41 }
  0x94   : > { %1786 = vmatpush.bf16.msrb.mxu1 %v5086_v43 }
  0x95   : > { %1704 = vmatpush.bf16.msrb.mxu0 %v5078_v42 }
  0x96   : > { %1876 = vmatpush.bf16.msrb.mxu2 %v5094_v44 }
  0x97   : > { %1958 = vmatpush.bf16.msrb.mxu3 %v5102_v45 }
  0x98   : > { %1787 = vmatpush.bf16.msrb.mxu1 %v5085_v47 }
  0x99   : > { %1705 = vmatpush.bf16.msrb.mxu0 %v5077_v46 }
  0x9a   : > { %1877 = vmatpush.bf16.msrb.mxu2 %v5093_v48 }
  0x9b   : > { %1959 = vmatpush.bf16.msrb.mxu3 %v5101_v49 }
  0x9c   : > { %1788 = vmatpush.bf16.msrb.mxu1 %v5084_v51 }
  0x9d   : > { %1706 = vmatpush.bf16.msrb.mxu0 %v5076_v50 }
  0x9e   : > { %1878 = vmatpush.bf16.msrb.mxu2 %v5092_v52 }
  0x9f   : > { %1960 = vmatpush.bf16.msrb.mxu3 %v5100_v53 }
  0xa0   : > { %1789 = vmatpush.bf16.msrb.mxu1 %v5083_v55 }
  0xa1   : > { %1707 = vmatpush.bf16.msrb.mxu0 %v5075_v54 }
  0xa2   : > { %1879 = vmatpush.bf16.msrb.mxu2 %v5091_v56 }
  0xa3   : > { %1961 = vmatpush.bf16.msrb.mxu3 %v5099_v57 }
  0xa4   : > { %1790 = vmatpush.bf16.msrb.mxu1 %v5082_v59  ;;  %v5277_v59 = vld [vmem:[%s6665_s6] ss:$0 sm:$0xff] }
  0xa5   : > { %1708 = vmatpush.bf16.msrb.mxu0 %v5074_v58  ;;  %v5276_v58 = vld [vmem:[%s6663_s4] ss:$0 sm:$0xff] }
  0xa6   : > { %1880 = vmatpush.bf16.msrb.mxu2 %v5090_v60 }
  0xa7   : > { %1962 = vmatpush.bf16.msrb.mxu3 %v5098_v61 }
  0xa8   : > { %1791 = vmatpush.bf16.msrb.mxu1 %v5081_v63 }
  0xa9   : > { %1709 = vmatpush.bf16.msrb.mxu0 %v5073_v62 }
  0xaa   : > { %1881 = vmatpush.bf16.msrb.mxu2 %v5089_v0  ;;  %v5278_v0 = vld [vmem:[%s6663_s4 + $0x1] ss:$0 sm:$0xff] }
  0xab   : > { %1963 = vmatpush.bf16.msrb.mxu3 %v5097_v1  ;;  %1792 = vmatmul.bf16.vlgmr.msrb.gmra.mxu1 %v5969_v37  ;;  %v5279_v1 = vld [vmem:[%s6665_s6 + $0x1] ss:$0 sm:$0xff] }
  0xac   : > { %1710 = vmatmul.bf16.vlgmr.msrb.gmra.mxu0 %v5969_v37 }
  0xad   : > { %1882 = vmatmul.bf16.vlgmr.msrb.gmra.mxu2 %v5969_v37 }
  0xae   : > { %1964 = vmatmul.bf16.vlgmr.msrb.gmra.mxu3 %v5969_v37  ;;  %v5275_v37 = vld [vmem:[%s6665_s6 + $0x3] ss:$0 sm:$0xff] }
  0xc8   : > { %v734_v5 = vpop.f32.mrf.mxu1 }
  0xc9   : > { %v652_v4 = vpop.f32.mrf.mxu0  ;;  %v735_v7 = vadd.f32 %v5269_v3, %v734_v5 }
  0xca   : > { %v653_v6 = vadd.f32 %v5268_v2, %v652_v4 }
  0xcb   : > { %v744_v11 = vpack.c.bf16 %v735_v7, %v735_v7 }
  0xcc   : > { %v739_v10 = vpack.c.bf16 %v653_v6, %v653_v6 }
  0xcd   : > { %746 = vst.msk [vmem:[#allocation3] sm:$0xf] %vm741_vm0, %v744_v11 }
  0xce   : > { %742 = vst.msk [vmem:[#allocation2] sm:$0xf] %vm741_vm0, %v739_v10 }
  0xd0   : > { %v827_v12 = vpop.f32.mrf.mxu2  ;;  %v736_v19 = vpop.f32.mrf.mxu1 }
  0xd1   : > { %v911_v13 = vpop.f32.mrf.mxu3  ;;  %v828_v14 = vadd.f32 %v5270_v8, %v827_v12  ;;  %v654_v18 = vpop.f32.mrf.mxu0  ;;  %v737_v21 = vadd.f32 %v5269_v3, %v736_v19 }
  0xd2   : > { %v912_v15 = vadd.f32 %v5271_v9, %v911_v13  ;;  %v655_v20 = vadd.f32 %v5268_v2, %v654_v18 }
  0xd3   : > { %v916_v16 = vpack.c.bf16 %v828_v14, %v828_v14  ;;  %v745_v23 = vpack.c.bf16 %v737_v21, %v737_v21 }
  0xd4   : > { %v921_v17 = vpack.c.bf16 %v912_v15, %v912_v15  ;;  %v740_v22 = vpack.c.bf16 %v655_v20, %v655_v20 }
  0xd5   : > { %919 = vst.msk [vmem:[#allocation2 + $0x10] sm:$0xf] %vm741_vm0, %v916_v16 }
  0xd6   : > { %924 = vst.msk [vmem:[#allocation3 + $0x10] sm:$0xf] %vm741_vm0, %v921_v17 }
  0xd7   : > { %743 = vst.msk [vmem:[#allocation2 + $0x4] sm:$0xf] %vm741_vm0, %v740_v22  ;;  %v5280_v22 = vld [vmem:[%s6663_s4 + $0x2] ss:$0 sm:$0xff] }
  0xd8   : > { %v829_v24 = vpop.f32.mrf.mxu2  ;;  %747 = vst.msk [vmem:[#allocation3 + $0x4] sm:$0xf] %vm741_vm0, %v745_v23  ;;  %v5281_v23 = vld [vmem:[%s6665_s6 + $0x2] ss:$0 sm:$0xff] }
  0xd9   : > { %v913_v25 = vpop.f32.mrf.mxu3  ;;  %v830_v26 = vadd.f32 %v5270_v8, %v829_v24 }
  0xda   : > { %v914_v27 = vadd.f32 %v5271_v9, %v913_v25 }
  0xdb   : > { %v917_v28 = vpack.c.bf16 %v830_v26, %v830_v26 }
  0xdc   : > { %v922_v29 = vpack.c.bf16 %v914_v27, %v914_v27 }
  0xdd   : > { %920 = vst.msk [vmem:[#allocation2 + $0x14] sm:$0xf] %vm741_vm0, %v917_v28 }
  0xde   : > { %925 = vst.msk [vmem:[#allocation3 + $0x14] sm:$0xf] %vm741_vm0, %v922_v29 }
  0xe8   : > { %v1089_v33 = vpop.f32.mrf.mxu1 }
  0xe9   : > { %v1005_v32 = vpop.f32.mrf.mxu0  ;;  %v1090_v35 = vadd.f32 %v5273_v31, %v1089_v33 }
  0xea   : > { %v1006_v34 = vadd.f32 %v5272_v30, %v1005_v32 }
  0xeb   : > { %v1099_v39 = vpack.c.bf16 %v1090_v35, %v1090_v35 }
  0xec   : > { %v1094_v38 = vpack.c.bf16 %v1006_v34, %v1006_v34 }
  0xed   : > { %1102 = vst.msk [vmem:[#allocation3 + $0x20] sm:$0xf] %vm741_vm0, %v1099_v39 }
  0xee   : > { %1097 = vst.msk [vmem:[#allocation2 + $0x20] sm:$0xf] %vm741_vm0, %v1094_v38 }
  0xf0   : > { %v1183_v40 = vpop.f32.mrf.mxu2  ;;  %v1091_v47 = vpop.f32.mrf.mxu1 }
  0xf1   : > { %v1267_v41 = vpop.f32.mrf.mxu3  ;;  %v1184_v42 = vadd.f32 %v5274_v36, %v1183_v40  ;;  %v1007_v46 = vpop.f32.mrf.mxu0  ;;  %v1092_v49 = vadd.f32 %v5273_v31, %v1091_v47  ;;  %v5283_v31 = vld [vmem:[%s6665_s6 + $0x3] ss:$0 sm:$0xff] }
  0xf2   : > { %v1268_v43 = vadd.f32 %v5275_v37, %v1267_v41  ;;  %v1008_v48 = vadd.f32 %v5272_v30, %v1007_v46  ;;  %v5282_v30 = vld [vmem:[%s6663_s4 + $0x3] ss:$0 sm:$0xff] }
  0xf3   : > { %v1272_v44 = vpack.c.bf16 %v1184_v42, %v1184_v42  ;;  %v1100_v51 = vpack.c.bf16 %v1092_v49, %v1092_v49 }
  0xf4   : > { %v1277_v45 = vpack.c.bf16 %v1268_v43, %v1268_v43  ;;  %v1095_v50 = vpack.c.bf16 %v1008_v48, %v1008_v48 }
  0xf5   : > { %1275 = vst.msk [vmem:[#allocation2 + $0x30] sm:$0xf] %vm741_vm0, %v1272_v44 }
  0xf6   : > { %1280 = vst.msk [vmem:[#allocation3 + $0x30] sm:$0xf] %vm741_vm0, %v1277_v45 }
  0xf7   : > { %1098 = vst.msk [vmem:[#allocation2 + $0x24] sm:$0xf] %vm741_vm0, %v1095_v50 }
  0xf8   : > { %v1185_v52 = vpop.f32.mrf.mxu2  ;;  %1103 = vst.msk [vmem:[#allocation3 + $0x24] sm:$0xf] %vm741_vm0, %v1100_v51 }
  0xf9   : > { %v1269_v53 = vpop.f32.mrf.mxu3  ;;  %v1186_v54 = vadd.f32 %v5274_v36, %v1185_v52 }
  0xfa   : > { %v1270_v55 = vadd.f32 %v5275_v37, %v1269_v53 }
  0xfb   : > { %v1273_v56 = vpack.c.bf16 %v1186_v54, %v1186_v54 }
  0xfc   : > { %v1278_v57 = vpack.c.bf16 %v1270_v55, %v1270_v55 }
  0xfd   : > { %1276 = vst.msk [vmem:[#allocation2 + $0x34] sm:$0xf] %vm741_vm0, %v1273_v56 }
  0xfe   : > { %1281 = vst.msk [vmem:[#allocation3 + $0x34] sm:$0xf] %vm741_vm0, %v1278_v57 }
 0x108   : > { %v1449_v61 = vpop.f32.mrf.mxu1 }
 0x109   : > { %v1367_v60 = vpop.f32.mrf.mxu0  ;;  %v1450_v63 = vadd.f32 %v5277_v59, %v1449_v61 }
 0x10a   : > { %v1368_v62 = vadd.f32 %v5276_v58, %v1367_v60 }
 0x10b   : > { %v1458_v3 = vpack.c.bf16 %v1450_v63, %v1450_v63 }
 0x10c   : > { %v1454_v2 = vpack.c.bf16 %v1368_v62, %v1368_v62 }
 0x10d   : > { %1460 = vst.msk [vmem:[#allocation3 + $0x8] sm:$0xf] %vm741_vm0, %v1458_v3 }
 0x10e   : > { %1456 = vst.msk [vmem:[#allocation2 + $0x8] sm:$0xf] %vm741_vm0, %v1454_v2 }
 0x110   : > { %v1539_v4 = vpop.f32.mrf.mxu2  ;;  %v1451_v11 = vpop.f32.mrf.mxu1 }
 0x111   : > { %v1621_v5 = vpop.f32.mrf.mxu3  ;;  %v1540_v6 = vadd.f32 %v5278_v0, %v1539_v4  ;;  %v1369_v10 = vpop.f32.mrf.mxu0  ;;  %v1452_v13 = vadd.f32 %v5277_v59, %v1451_v11 }
 0x112   : > { %v1622_v7 = vadd.f32 %v5279_v1, %v1621_v5  ;;  %v1370_v12 = vadd.f32 %v5276_v58, %v1369_v10 }
 0x113   : > { %v1626_v8 = vpack.c.bf16 %v1540_v6, %v1540_v6  ;;  %v1459_v15 = vpack.c.bf16 %v1452_v13, %v1452_v13 }
 0x114   : > { %v1630_v9 = vpack.c.bf16 %v1622_v7, %v1622_v7  ;;  %v1455_v14 = vpack.c.bf16 %v1370_v12, %v1370_v12 }
 0x115   : > { %1628 = vst.msk [vmem:[#allocation2 + $0x18] sm:$0xf] %vm741_vm0, %v1626_v8 }
 0x116   : > { %1632 = vst.msk [vmem:[#allocation3 + $0x18] sm:$0xf] %vm741_vm0, %v1630_v9 }
 0x117   : > { %1457 = vst.msk [vmem:[#allocation2 + $0xc] sm:$0xf] %vm741_vm0, %v1455_v14 }
 0x118   : > { %v1541_v16 = vpop.f32.mrf.mxu2  ;;  %1461 = vst.msk [vmem:[#allocation3 + $0xc] sm:$0xf] %vm741_vm0, %v1459_v15 }
 0x119   : > { %v1623_v17 = vpop.f32.mrf.mxu3  ;;  %v1542_v18 = vadd.f32 %v5278_v0, %v1541_v16 }
 0x11a   : > { %v1624_v19 = vadd.f32 %v5279_v1, %v1623_v17 }
 0x11b   : > { %v1627_v20 = vpack.c.bf16 %v1542_v18, %v1542_v18 }
 0x11c   : > { %v1631_v21 = vpack.c.bf16 %v1624_v19, %v1624_v19 }
 0x11d   : > { %1629 = vst.msk [vmem:[#allocation2 + $0x1c] sm:$0xf] %vm741_vm0, %v1627_v20 }
 0x11e   : > { %1633 = vst.msk [vmem:[#allocation3 + $0x1c] sm:$0xf] %vm741_vm0, %v1631_v21 }
 0x128   : > { %v1793_v25 = vpop.f32.mrf.mxu1 }
 0x129   : > { %v1711_v24 = vpop.f32.mrf.mxu0  ;;  %v1794_v27 = vadd.f32 %v5281_v23, %v1793_v25 }
 0x12a   : > { %v1712_v26 = vadd.f32 %v5280_v22, %v1711_v24 }
 0x12b   : > { %v1802_v29 = vpack.c.bf16 %v1794_v27, %v1794_v27 }
 0x12c   : > { %v1798_v28 = vpack.c.bf16 %v1712_v26, %v1712_v26 }
 0x12d   : > { %1804 = vst.msk [vmem:[#allocation3 + $0x28] sm:$0xf] %vm741_vm0, %v1802_v29 }
 0x12e   : > { %1800 = vst.msk [vmem:[#allocation2 + $0x28] sm:$0xf] %vm741_vm0, %v1798_v28 }
 0x130   : > { %v1883_v32 = vpop.f32.mrf.mxu2  ;;  %v1795_v37 = vpop.f32.mrf.mxu1 }
 0x131   : > { %v1965_v33 = vpop.f32.mrf.mxu3  ;;  %v1884_v34 = vadd.f32 %v5282_v30, %v1883_v32  ;;  %v1713_v36 = vpop.f32.mrf.mxu0  ;;  %v1796_v39 = vadd.f32 %v5281_v23, %v1795_v37 }
 0x132   : > { %v1966_v35 = vadd.f32 %v5283_v31, %v1965_v33  ;;  %v1714_v38 = vadd.f32 %v5280_v22, %v1713_v36 }
 0x133   : > { %v1970_v40 = vpack.c.bf16 %v1884_v34, %v1884_v34  ;;  %v1803_v43 = vpack.c.bf16 %v1796_v39, %v1796_v39 }
 0x134   : > { %v1974_v41 = vpack.c.bf16 %v1966_v35, %v1966_v35  ;;  %v1799_v42 = vpack.c.bf16 %v1714_v38, %v1714_v38 }
 0x135   : > { %1972 = vst.msk [vmem:[#allocation2 + $0x38] sm:$0xf] %vm741_vm0, %v1970_v40 }
 0x136   : > { %1976 = vst.msk [vmem:[#allocation3 + $0x38] sm:$0xf] %vm741_vm0, %v1974_v41 }
 0x137   : > { %1801 = vst.msk [vmem:[#allocation2 + $0x2c] sm:$0xf] %vm741_vm0, %v1799_v42 }
 0x138   : > { %1805 = vst.msk [vmem:[#allocation3 + $0x2c] sm:$0xf] %vm741_vm0, %v1803_v43  ;;  %v1885_v44 = vpop.f32.mrf.mxu2 }
 0x139   : > { %v1967_v45 = vpop.f32.mrf.mxu3  ;;  %v1886_v46 = vadd.f32 %v5282_v30, %v1885_v44 }
 0x13a   : > { %v1968_v47 = vadd.f32 %v5283_v31, %v1967_v45 }
 0x13b   : > { %v1971_v48 = vpack.c.bf16 %v1886_v46, %v1886_v46 }
 0x13c   : > { %v1975_v49 = vpack.c.bf16 %v1968_v47, %v1968_v47 }
 0x13d   : > { %1973 = vst.msk [vmem:[#allocation2 + $0x3c] sm:$0xf] %vm741_vm0, %v1971_v48 }
 0x13e   : > { %1977 = vst.msk [vmem:[#allocation3 + $0x3c] sm:$0xf] %vm741_vm0, %v1975_v49 }
 0x13f PF: > { %s6711_s20 = sld [smem:[#allocation18_spill]]  ;;  %vm2087_vm1 = vcmask 261120   ;;  %v5114_v52 = vld [vmem:[#allocation2] sm:$0xff]  ;;  %s4527_s18 = sshll.u32 %s5462_s27, 4  ;;  %v5116_v63 = vld [vmem:[#allocation2 + $0x8] sm:$0xff]  ;;  %v5128_v15 = vld [vmem:[#allocation2 + $0x10] sm:$0xff] }
 0x140   : > { %v2092_v54 = vsel %vm2087_vm1, %v5114_v52, 0  ;;  %s1979_s29 = sshra.s32 %s4527_s18, 3  ;;  %v2173_v1 = vsel %vm2087_vm1, %v5116_v63, 0  ;;  %s6712_s2 = sld [smem:[#allocation19_spill]]  ;;  %v2384_v16 = vsel %vm2087_vm1, %v5128_v15, 0  ;;  %vm2108_vm2 = vcmask 130048  }
 0x141   : > { %2101 = vmatpush.bf16.xpose.msra.mxu1 %v2092_v54  ;;  %s4528_s23 = sshll.u32 %s1979_s29, 2  ;;  %2182 = vmatpush.bf16.xpose.msra.mxu3 %v2173_v1  ;;  %v5130_v17 = vld [vmem:[#allocation2 + $0x18] sm:$0xff]  ;;  %v5115_v35 = vld [vmem:[#allocation3] sm:$0xff]  ;;  %v5117_v39 = vld [vmem:[#allocation3 + $0x8] sm:$0xff]  ;;  %s4969_s29 = sshll.u32 %s5462_s27, 1 }
 0x142   : > { %s6170_s17 = scalar_lea.vmem %s5652_s0, %s4528_s23  ;;  %v2464_v20 = vsel %vm2087_vm1, %v5130_v17, 0  ;;  %2154 = vmatpush.bf16.msra.mxu2 %v5115_v35  ;;  %s4970_s0 = sshll.u32 %s5466_s28, 2 }
 0x143   : > { %v6173_v60 = vld [vmem:[%s6170_s17] sm:$0xff]  ;;  %s6715_s1 = sld [smem:[#allocation21_spill]]  ;;  %s6718_s26 = sand.u32 1, %s5454_s25  }
 0x144   : > { %s6716_s18 = sld [smem:[#allocation22_spill]]  ;;  %s3699_s22 = scalar_lea.sflag [#allocation5], %s6718_s26 }
 0x145   : > { %v5113_v50 = vld [vmem:[%s6711_s20 + $0x38] sm:$0xff]  ;;  %v5112_v51 = vld [vmem:[%s6711_s20 + $0x30] sm:$0xff]  ;;  %v5111_v53 = vld [vmem:[%s6711_s20 + $0x28] sm:$0xff] }
 0x146   : > { %2061 = vmatpush.bf16.msra.mxu0 %v5113_v50  ;;  %v5110_v55 = vld [vmem:[%s6711_s20 + $0x20] sm:$0xff]  ;;  %v5109_v56 = vld [vmem:[%s6711_s20 + $0x18] sm:$0xff]  ;;  %v5108_v57 = vld [vmem:[%s6711_s20 + $0x10] sm:$0xff]  ;;  %2238 = vmatpush.bf16.msrb.mxu2 %v5117_v39 }
 0x147   : > { %v5107_v58 = vld [vmem:[%s6711_s20 + $0x8] sm:$0xff]  ;;  %v5106_v59 = vld [vmem:[%s6711_s20] sm:$0xff]  ;;  %v5127_v61 = vld [vmem:[%s6711_s20 + $0x78] sm:$0xff] }
 0x148   : > { %v5126_v62 = vld [vmem:[%s6711_s20 + $0x70] sm:$0xff]  ;;  %v5125_v0 = vld [vmem:[%s6711_s20 + $0x68] sm:$0xff]  ;;  %v5124_v2 = vld [vmem:[%s6711_s20 + $0x60] sm:$0xff] }
 0x149   : > { %2352 = vmatpush.bf16.msrb.mxu1 %v5127_v61  ;;  %v5123_v3 = vld [vmem:[%s6711_s20 + $0x58] sm:$0xff]  ;;  %v5122_v4 = vld [vmem:[%s6711_s20 + $0x50] sm:$0xff]  ;;  %v5121_v5 = vld [vmem:[%s6711_s20 + $0x48] sm:$0xff]  ;;  %2393 = vmatpush.bf16.xpose.msrb.mxu3 %v2384_v16 }
 0x14a   : > { %2062 = vmatpush.bf16.msra.mxu0 %v5112_v51  ;;  %v5120_v6 = vld [vmem:[%s6711_s20 + $0x40] sm:$0xff]  ;;  %v5141_v36 = vld [vmem:[%s6711_s20 + $0xb8] sm:$0xff]  ;;  %v5140_v37 = vld [vmem:[%s6711_s20 + $0xb0] sm:$0xff] }
 0x14b   : > { %v5284_v8 = vld [vmem:[%s6712_s2] ss:$0 sm:$0xff]  ;;  %v5285_v28 = vld [vmem:[%s6712_s2 + $0x1] ss:$0 sm:$0xff]  ;;  %v5139_v38 = vld [vmem:[%s6711_s20 + $0xa8] sm:$0xff] }
 0x14c   : > { %v5138_v42 = vld [vmem:[%s6711_s20 + $0xa0] sm:$0xff]  ;;  %v5137_v47 = vld [vmem:[%s6711_s20 + $0x98] sm:$0xff]  ;;  %v5129_v39 = vld [vmem:[#allocation3 + $0x10] sm:$0xff] }
 0x14d   : > { %2353 = vmatpush.bf16.msrb.mxu1 %v5126_v62  ;;  %v5134_v1 = vld [vmem:[%s6711_s20 + $0x80] sm:$0xff] }
 0x14e   : > { %2063 = vmatpush.bf16.msra.mxu0 %v5111_v53 }
 0x151   : > { %2354 = vmatpush.bf16.msrb.mxu1 %v5125_v0 }
 0x152   : > { %2064 = vmatpush.bf16.msra.mxu0 %v5110_v55  ;;  %v5136_v55 = vld [vmem:[%s6711_s20 + $0x90] sm:$0xff] }
 0x155   : > { %2355 = vmatpush.bf16.msrb.mxu1 %v5124_v2 }
 0x156   : > { %2065 = vmatpush.bf16.msra.mxu0 %v5109_v56 }
 0x159   : > { %2356 = vmatpush.bf16.msrb.mxu1 %v5123_v3 }
 0x15a   : > { %2066 = vmatpush.bf16.msra.mxu0 %v5108_v57 }
 0x15d   : > { %2357 = vmatpush.bf16.msrb.mxu1 %v5122_v4 }
 0x15e   : > { %2067 = vmatpush.bf16.msra.mxu0 %v5107_v58  ;;  %v5135_v58 = vld [vmem:[%s6711_s20 + $0x88] sm:$0xff] }
 0x161   : > { %2358 = vmatpush.bf16.msrb.mxu1 %v5121_v5 }
 0x162   : > { %2068 = vmatpush.bf16.msra.mxu0 %v5106_v59 }
 0x165   : > { %2069 = vmatmul.bf16.vlgmr.msra.gmra.mxu0 %v6173_v60  ;;  %2359 = vmatpush.bf16.msrb.mxu1 %v5120_v6 }
 0x1e2   : > { %v2070_v7 = vpop.f32.mrf.mxu0 }
 0x1e3   : > { %v2071_v9 = vadd.f32 %v5284_v8, %v2070_v7 }
 0x1e5   : > { %v2075_v12 = vmul.f32 0.17677669, %v2071_v9 }
 0x1ea   : > { %v2072_v10 = vpop.f32.mrf.mxu0 }
 0x1eb   : > { %v2073_v11 = vadd.f32 %v5284_v8, %v2072_v10 }
 0x1ed   : > { %v2076_v13 = vmul.f32 0.17677669, %v2073_v11 }
 0x1ef   : > { %v2077_v14 = vpack.c.bf16 %v2076_v13, %v2075_v12 }
 0x1f1   : > { %4569 = vmatmul.msk.bf16.vlgmr.msra.gmra.mxu1 %vm2087_vm1, %v2077_v14  ;;  %4579 = vmatmul.msk.bf16.vlgmr.msra.gmra.mxu3 %vm2087_vm1, %v2077_v14 }
 0x1f2   : > { %2473 = vmatpush.bf16.xpose.msra.mxu3 %v2464_v20 }
 0x201   : > { %2360 = vmatmul.bf16.vlgmr.msrb.gmra.mxu1 %v6173_v60 }
 0x26e   : > { %v2103_v18 = vpop.f32.mrf.mxu1 }
 0x26f   : > { %v2109_v19 = vsel %vm2108_vm2, %v2103_v18, -inf }
 0x270   : > { %2110 = vmax.xlane.f32.xlu0 %v2109_v19 }
 0x274   : > { %v2184_v21 = vpop.f32.mrf.mxu3 }
 0x275   : > { %v2189_v22 = vsel %vm2108_vm2, %v2184_v21, -inf }
 0x276   : > { %2190 = vmax.xlane.f32.xlu1 %v2189_v22  ;;  %v2105_v23 = vpop.f32.mrf.mxu1 }
 0x277   : > { %v2112_v24 = vsel %vm2108_vm2, %v2105_v23, -inf }
 0x278   : > { %2113 = vmax.xlane.f32.xlu0 %v2112_v24 }
 0x27c   : > { %v2186_v25 = vpop.f32.mrf.mxu3 }
 0x27d   : > { %v2192_v26 = vsel %vm2108_vm2, %v2186_v25, -inf }
 0x27e   : > { %2193 = vmax.xlane.f32.xlu1 %v2192_v26  ;;  %v2361_v27 = vpop.f32.mrf.mxu1 }
 0x27f   : > { %v2362_v29 = vadd.f32 %v5285_v28, %v2361_v27 }
 0x281   : > { %v2366_v32 = vmul.f32 0.17677669, %v2362_v29 }
 0x286   : > { %v2363_v30 = vpop.f32.mrf.mxu1 }
 0x287   : > { %v2364_v31 = vadd.f32 %v5285_v28, %v2363_v30 }
 0x289   : > { %v2367_v33 = vmul.f32 0.17677669, %v2364_v31 }
 0x28b   : > { %v2368_v34 = vpack.c.bf16 %v2367_v33, %v2366_v32 }
 0x28d   : > { %4638 = vmatmul.msk.bf16.vlgmr.msrb.gmra.mxu3 %vm2087_vm1, %v2368_v34 }
 0x28e   : > { %2702 = vmatpush.bf16.msrb.mxu3 %v5141_v36  ;;  %v5119_v36 = vld [vmem:[%s6666_s7 + $0x8] sm:$0xff] }
 0x28f   : > { %2624 = vmatpush.bf16.msra.mxu1 %v5119_v36  ;;  %v5286_v36 = vld [vmem:[%s6712_s2 + $0x2] ss:$0 sm:$0xff] }
 0x292   : > { %2703 = vmatpush.bf16.msrb.mxu3 %v5140_v37 }
 0x296   : > { %2704 = vmatpush.bf16.msrb.mxu3 %v5139_v38 }
 0x29a   : > { %2705 = vmatpush.bf16.msrb.mxu3 %v5138_v42 }
 0x29d   : > { %4648 = vmatmul.msk.bf16.vlgmr.msra.gmra.mxu3 %vm2087_vm1, %v2368_v34 }
 0x29e   : > { %2706 = vmatpush.bf16.msrb.mxu3 %v5137_v47 }
 0x2a2   : > { %2707 = vmatpush.bf16.msrb.mxu3 %v5136_v55 }
 0x2a6   : > { %2708 = vmatpush.bf16.msrb.mxu3 %v5135_v58 }
 0x2aa   : > { %2709 = vmatpush.bf16.msrb.mxu3 %v5134_v1 }
 0x2ad   : > { %2710 = vmatmul.bf16.vlgmr.msrb.gmra.mxu3 %v6173_v60 }
 0x2e3   : > { %v6227_v40 = vpop.xlane.xlu0 %2110 }
 0x2e4   : > { %v2121_v41 = vsub.f32 %v2103_v18, %v6227_v40  ;;  %v2115_v15 = vsub.f32 -inf, %v6227_v40 }
 0x2e6   : > { %v2123_v43 = vmul.f32 1.442695, %v2121_v41  ;;  %v2117_v16 = vmul.f32 1.442695, %v2115_v15 }
 0x2e8   : > { %5294 = vpow2.f32 %v2123_v43  ;;  %v5131_v43 = vld [vmem:[#allocation3 + $0x18] sm:$0xff] }
 0x2e9   : > { %v2191_v44 = vpop.xlane.xlu1 %2190  ;;  %2529 = vmatpush.bf16.msrb.mxu0 %v5131_v43 }
 0x2ea   : > { %v2195_v45 = vmax.f32 %v6227_v40, %v2191_v44 }
 0x2eb   : > { %v6234_v46 = vpop.xlane.xlu0 %2113 }
 0x2ec   : > { %v2197_v48 = vsub.f32 %v6227_v40, %v2195_v45  ;;  %v2203_v49 = vsub.f32 %v2184_v21, %v2195_v45  ;;  %v2122_v50 = vsub.f32 %v2105_v23, %v6234_v46  ;;  %v2116_v19 = vsub.f32 -inf, %v6234_v46  ;;  %v5118_v40 = vld [vmem:[%s6666_s7] sm:$0xff] }
 0x2ed   : > { %2625 = vmatpush.bf16.msra.mxu1 %v5118_v40 }
 0x2ee   : > { %v5295_v51 = vpop.eup %5294  ;;  %v2205_v52 = vmul.f32 1.442695, %v2203_v49  ;;  %v2125_v53 = vmul.f32 1.442695, %v2122_v50  ;;  %v2199_v17 = vmul.f32 1.442695, %v2197_v48 }
 0x2ef   : > { %v2129_v54 = vsel %vm2108_vm2, %v5295_v51, 0.0  ;;  %v2119_v22 = vmul.f32 1.442695, %v2116_v19 }
 0x2f0   : > { %2130 = vadd.xlane.f32.xlu2 %v2129_v54  ;;  %5296 = vpow2.f32 %v2205_v52  ;;  %v5144_v52 = vld [vmem:[#allocation2 + $0x28] sm:$0xff] }
 0x2f1   : > { %v2194_v56 = vpop.xlane.xlu1 %2193  ;;  %5298 = vpow2.f32 %v2125_v53  ;;  %v2814_v55 = vsel %vm2087_vm1, %v5144_v52, 0 }
 0x2f2   : > { %v2196_v57 = vmax.f32 %v6234_v46, %v2194_v56  ;;  %2823 = vmatpush.bf16.xpose.msrb.mxu1 %v2814_v55 }
 0x2f4   : > { %v2204_v59 = vsub.f32 %v2186_v25, %v2196_v57  ;;  %v2198_v26 = vsub.f32 %v6234_v46, %v2196_v57 }
 0x2f6   : > { %v2207_v61 = vmul.f32 1.442695, %v2204_v59  ;;  %v5297_v62 = vpop.eup %5296  ;;  %v2201_v27 = vmul.f32 1.442695, %v2198_v26 }
 0x2f7   : > { %v5299_v63 = vpop.eup %5298  ;;  %v2211_v0 = vsel %vm2108_vm2, %v5297_v62, 0.0 }
 0x2f8   : > { %5300 = vpow2.f32 %v2207_v61  ;;  %2212 = vadd.xlane.f32.xlu0 %v2211_v0  ;;  %v2132_v2 = vsel %vm2108_vm2, %v5299_v63, 0.0  ;;  %v2137_v3 = vpack.c.bf16 %v5299_v63, %v5295_v51 }
 0x2f9   : > { %2133 = vadd.xlane.f32.xlu2 %v2132_v2  ;;  %5302 = vpow2.f32 %v2117_v16 }
 0x2fa   : > { %4574 = vmatmul.msk.bf16.vlgmr.msra.gmra.mxu2 %vm2108_vm2, %v2137_v3  ;;  %5304 = vpow2.f32 %v2199_v17 }
 0x2fb   : > { %5306 = vpow2.f32 %v2119_v22  ;;  %2445 = vmatpush.bf16.msra.mxu2 %v5129_v39 }
 0x2fc   : > { %5308 = vpow2.f32 %v2201_v27 }
 0x2fe   : > { %v5301_v4 = vpop.eup %5300 }
 0x2ff   : > { %v2214_v5 = vsel %vm2108_vm2, %v5301_v4, 0.0  ;;  %v2221_v6 = vpack.c.bf16 %v5301_v4, %v5297_v62  ;;  %v5303_v18 = vpop.eup %5302  ;;  %v5142_v4 = vld [vmem:[#allocation2 + $0x20] sm:$0xff] }
 0x300   : > { %2215 = vadd.xlane.f32.xlu1 %v2214_v5  ;;  %v2127_v20 = vmul.f32 0.0, %v5303_v18  ;;  %v5305_v24 = vpop.eup %5304 }
 0x301   : > { %v5307_v28 = vpop.eup %5306 }
 0x302   : > { %v2128_v31 = vmul.f32 0.0, %v5307_v28  ;;  %v6277_v34 = vpop.eup %5308 }
 0x30a   : > { %4584 = vmatmul.msk.bf16.vlgmr.msrb.gmra.mxu2 %vm2108_vm2, %v2221_v6 }
 0x310   : > { %v6258_v7 = vpop.f32.mrf.mxu3 }
 0x311   : > { %v2400_v8 = vsel %vm2108_vm2, %v6258_v7, -inf }
 0x312   : > { %2401 = vmax.xlane.f32.xlu2 %v2400_v8 }
 0x318   : > { %v6262_v9 = vpop.f32.mrf.mxu3 }
 0x319   : > { %v2403_v10 = vsel %vm2108_vm2, %v6262_v9, -inf }
 0x31a   : > { %2404 = vmax.xlane.f32.xlu0 %v2403_v10  ;;  %v2734_v10 = vsel %vm2087_vm1, %v5142_v4, 0 }
 0x31b   : > { %2743 = vmatpush.bf16.xpose.msra.mxu0 %v2734_v10 }
 0x320   : > { %v6266_v11 = vpop.f32.mrf.mxu3 }
 0x321   : > { %v2480_v12 = vsel %vm2108_vm2, %v6266_v11, -inf }
 0x322   : > { %2481 = vmax.xlane.f32.xlu1 %v2480_v12 }
 0x328   : > { %v6270_v13 = vpop.f32.mrf.mxu3 }
 0x329   : > { %v2483_v14 = vsel %vm2108_vm2, %v6270_v13, -inf }
 0x32a   : > { %2484 = vmax.xlane.f32.xlu2 %v2483_v14 }
 0x330   : > { %v2711_v18 = vpop.f32.mrf.mxu3 }
 0x331   : > { %v2712_v39 = vadd.f32 %v5286_v36, %v2711_v18 }
 0x363   : > { %v2131_v21 = vpop.xlane.xlu2 %2130 }
 0x364   : > { %v2135_v23 = vadd.f32 %v2131_v21, %v2127_v20 }
 0x366   : > { %v2209_v25 = vmul.f32 %v5305_v24, %v2135_v23 }
 0x36b   : > { %v2213_v29 = vpop.xlane.xlu0 %2212 }
 0x36c   : > { %v2134_v30 = vpop.xlane.xlu2 %2133  ;;  %v2217_v32 = vadd.f32 %v2213_v29, %v2209_v25 }
 0x36d   : > { %v2136_v33 = vadd.f32 %v2134_v30, %v2128_v31 }
 0x36e   : > { %5310 = vrcp.f32 %v2217_v32  ;;  %v2258_v59 = vand.u32 2147483648, %v2217_v32  ;;  %vm2252_vm4 = vweird.f32 %v2217_v32  ;;  %v2256_v61 = vand.u32 2147483647, %v2217_v32 }
 0x36f   : > { %v2210_v37 = vmul.f32 %v6277_v34, %v2136_v33 }
 0x370   : > { %v2259_v2 = vor.u32 1.1754944e-38, %v2258_v59  ;;  %vm2257_vm6 = vcmp.eq.f32.partialorder %v2256_v61, 8.507059e+37  ;;  %v5155_v61 = vld [vmem:[%s6711_s20 + $0xf8] sm:$0xff] }
 0x373   : > { %v2216_v35 = vpop.xlane.xlu1 %2215 }
 0x374   : > { %v6283_v38 = vadd.f32 %v2216_v35, %v2210_v37  ;;  %v5311_v41 = vpop.eup %5310 }
 0x375   : > { %v2248_v42 = vmul.f32 %v5311_v41, %v2217_v32  ;;  %vm2253_vm3 = vweird.f32 %v5311_v41 }
 0x376   : > { %5312 = vrcp.f32 %v6283_v38  ;;  %vm2254_vm5 = vmor %vm2252_vm4, %vm2253_vm3  ;;  %v2273_v17 = vand.u32 2147483648, %v6283_v38  ;;  %vm2267_vm8 = vweird.f32 %v6283_v38 }
 0x377   : > { %v2249_v46 = vsub.f32 1.0, %v2248_v42 }
 0x378   : > { %v2274_v23 = vor.u32 1.1754944e-38, %v2273_v17 }
 0x379   : > { %v2250_v51 = vmul.f32 %v5311_v41, %v2249_v46 }
 0x37b   : > { %v2251_v58 = vadd.f32 %v5311_v41, %v2250_v51 }
 0x37c   : > { %v5313_v48 = vpop.eup %5312 }
 0x37d   : > { %v2156_v44 = vpop.f32.mrf.mxu2  ;;  %v2263_v49 = vmul.f32 %v5313_v48, %v6283_v38  ;;  %v2255_v62 = vsel %vm2254_vm5, %v5311_v41, %v2251_v58  ;;  %vm2268_vm7 = vweird.f32 %v5313_v48 }
 0x37e   : > { %v2161_v45 = vadd.f32 %v2156_v44, %v2127_v20  ;;  %vm2269_vm9 = vmor %vm2267_vm8, %vm2268_vm7  ;;  %v2716_v44 = vmul.f32 0.17677669, %v2712_v39 }
 0x37f   : > { %v2264_v57 = vsub.f32 1.0, %v2263_v49 }
 0x380   : > { %v2219_v47 = vmul.f32 %v5305_v24, %v2161_v45 }
 0x381   : > { %v2265_v0 = vmul.f32 %v5313_v48, %v2264_v57 }
 0x383   : > { %v2266_v16 = vadd.f32 %v5313_v48, %v2265_v0 }
 0x385   : > { %v6290_v50 = vpop.xlane.xlu2 %2401  ;;  %v2158_v53 = vpop.f32.mrf.mxu2  ;;  %v2270_v20 = vsel %vm2269_vm9, %v5313_v48, %v2266_v16  ;;  %v5150_v16 = vld [vmem:[%s6711_s20 + $0xd0] sm:$0xff] }
 0x386   : > { %v2412_v54 = vsub.f32 %v6258_v7, %v6290_v50  ;;  %v2260_v7 = vsel %vm2257_vm6, %v2259_v2, %v2255_v62  ;;  %v2162_v12 = vadd.f32 %v2158_v53, %v2128_v31  ;;  %v5153_v2 = vld [vmem:[%s6711_s20 + $0xe8] sm:$0xff] }
 0x388   : > { %v2414_v56 = vmul.f32 1.442695, %v2412_v54  ;;  %v2220_v19 = vmul.f32 %v6277_v34, %v2162_v12 }
 0x38a   : > { %5314 = vpow2.f32 %v2414_v56 }
 0x38d   : > { %v6295_v63 = vpop.xlane.xlu0 %2404  ;;  %v2240_v1 = vpop.f32.mrf.mxu2 }
 0x38e   : > { %v2413_v3 = vsub.f32 %v6262_v9, %v6295_v63  ;;  %v2245_v5 = vadd.f32 %v2240_v1, %v2219_v47  ;;  %v2271_v9 = vand.u32 2147483647, %v6283_v38  ;;  %v2407_v58 = vsub.f32 -inf, %v6295_v63  ;;  %v5133_v1 = vld [vmem:[%s6666_s7 + $0x18] sm:$0xff] }
 0x38f   : > { %2595 = vmatpush.bf16.msrb.mxu2 %v5133_v1 }
 0x390   : > { %v5315_v6 = vpop.eup %5314  ;;  %v2416_v8 = vmul.f32 1.442695, %v2413_v3  ;;  %v2261_v14 = vmul.f32 %v2260_v7, %v2245_v5  ;;  %vm2272_vm10 = vcmp.eq.f32.partialorder %v2271_v9, 8.507059e+37  ;;  %v2410_v62 = vmul.f32 1.442695, %v2407_v58  ;;  %v5132_v5 = vld [vmem:[%s6666_s7 + $0x10] sm:$0xff] }
 0x391   : > { %v2420_v15 = vsel %vm2108_vm2, %v5315_v6, 0.0  ;;  %v2275_v27 = vsel %vm2272_vm10, %v2274_v23, %v2270_v20 }
 0x392   : > { %5316 = vpow2.f32 %v2416_v8  ;;  %2421 = vadd.xlane.f32.xlu0 %v2420_v15  ;;  %v5151_v15 = vld [vmem:[%s6711_s20 + $0xd8] sm:$0xff] }
 0x393   : > { %2596 = vmatpush.bf16.msrb.mxu2 %v5132_v5 }
 0x395   : > { %v2482_v21 = vpop.xlane.xlu1 %2481  ;;  %v2242_v22 = vpop.f32.mrf.mxu2 }
 0x396   : > { %v2486_v24 = vmax.f32 %v6290_v50, %v2482_v21  ;;  %v2246_v25 = vadd.f32 %v2242_v22, %v2220_v19 }
 0x398   : > { %v5317_v26 = vpop.eup %5316  ;;  %v2488_v28 = vsub.f32 %v6290_v50, %v2486_v24  ;;  %v2494_v29 = vsub.f32 %v6266_v11, %v2486_v24  ;;  %v2276_v30 = vmul.f32 %v2275_v27, %v2246_v25  ;;  %v2713_v11 = vpop.f32.mrf.mxu3 }
 0x399   : > { %v2423_v31 = vsel %vm2108_vm2, %v5317_v26, 0.0  ;;  %v2428_v32 = vpack.c.bf16 %v5317_v26, %v5315_v6  ;;  %v2714_v40 = vadd.f32 %v5286_v36, %v2713_v11  ;;  %v5149_v26 = vld [vmem:[%s6711_s20 + $0xc8] sm:$0xff] }
 0x39a   : > { %v2496_v33 = vmul.f32 1.442695, %v2494_v29  ;;  %2424 = vadd.xlane.f32.xlu1 %v2423_v31  ;;  %v2277_v34 = vpack.c.bf16 %v2276_v30, %v2261_v14  ;;  %v2490_v52 = vmul.f32 1.442695, %v2488_v28  ;;  %v5148_v28 = vld [vmem:[%s6711_s20 + $0xc0] sm:$0xff] }
 0x39b   : > { %4643 = vmatmul.msk.bf16.vlgmr.msra.gmra.mxu2 %vm2108_vm2, %v2428_v32  ;;  %v2717_v45 = vmul.f32 0.17677669, %v2714_v40 }
 0x39c   : > { %5318 = vpow2.f32 %v2496_v33  ;;  %4675 = vmatmul.msk.bf16.vlgmr.msra.gmra.mxu1 %vm2087_vm1, %v2277_v34 }
 0x39d   : > { %v2485_v35 = vpop.xlane.xlu2 %2484  ;;  %v2718_v46 = vpack.c.bf16 %v2717_v45, %v2716_v44  ;;  %3025 = vmatpush.bf16.msra.mxu1 %v5155_v61 }
 0x39e   : > { %v2487_v37 = vmax.f32 %v6295_v63, %v2485_v35 }
 0x3a0   : > { %v2495_v38 = vsub.f32 %v6270_v13, %v2487_v37  ;;  %v2406_v13 = vsub.f32 -inf, %v6290_v50  ;;  %v5154_v50 = vld [vmem:[%s6711_s20 + $0xf0] sm:$0xff]  ;;  %v2489_v0 = vsub.f32 %v6295_v63, %v2487_v37  ;;  %v5152_v63 = vld [vmem:[%s6711_s20 + $0xe0] sm:$0xff] }
 0x3a1   : > { %3026 = vmatpush.bf16.msra.mxu1 %v5154_v50  ;;  %v5143_v50 = vld [vmem:[#allocation3 + $0x20] sm:$0xff] }
 0x3a2   : > { %v2498_v41 = vmul.f32 1.442695, %v2495_v38  ;;  %v5319_v42 = vpop.eup %5318  ;;  %v2408_v51 = vmul.f32 1.442695, %v2406_v13  ;;  %v2492_v3 = vmul.f32 1.442695, %v2489_v0  ;;  %2795 = vmatpush.bf16.msra.mxu2 %v5143_v50 }
 0x3a3   : > { %v2502_v43 = vsel %vm2108_vm2, %v5319_v42, 0.0  ;;  %v5145_v0 = vld [vmem:[#allocation3 + $0x28] sm:$0xff] }
 0x3a4   : > { %5320 = vpow2.f32 %v2498_v41  ;;  %2503 = vadd.xlane.f32.xlu2 %v2502_v43 }
 0x3a5   : > { %5322 = vpow2.f32 %v2408_v51  ;;  %3027 = vmatpush.bf16.msra.mxu1 %v5153_v2  ;;  %v5156_v2 = vld [vmem:[#allocation2 + $0x30] sm:$0xff] }
 0x3a6   : > { %5324 = vpow2.f32 %v2490_v52 }
 0x3a7   : > { %5326 = vpow2.f32 %v2410_v62 }
 0x3a8   : > { %5328 = vpow2.f32 %v2492_v3  ;;  %v5287_v3 = vld [vmem:[%s6712_s2 + $0x3] ss:$0 sm:$0xff] }
 0x3a9   : > { %3028 = vmatpush.bf16.msra.mxu1 %v5152_v63 }
 0x3aa   : > { %v5321_v47 = vpop.eup %5320 }
 0x3ab   : > { %v2505_v48 = vsel %vm2108_vm2, %v5321_v47, 0.0  ;;  %v2512_v49 = vpack.c.bf16 %v5321_v47, %v5319_v42  ;;  %v5323_v53 = vpop.eup %5322 }
 0x3ac   : > { %2506 = vadd.xlane.f32.xlu0 %v2505_v48  ;;  %4739 = vmatmul.msk.bf16.vlgmr.msrb.gmra.mxu1 %vm2087_vm1, %v2718_v46  ;;  %v2418_v54 = vmul.f32 0.0, %v5323_v53  ;;  %v5325_v57 = vpop.eup %5324 }
 0x3ad   : > { %4653 = vmatmul.msk.bf16.vlgmr.msrb.gmra.mxu0 %vm2108_vm2, %v2512_v49  ;;  %v5327_v4 = vpop.eup %5326  ;;  %3029 = vmatpush.bf16.msra.mxu1 %v5151_v15 }
 0x3ae   : > { %v2419_v8 = vmul.f32 0.0, %v5327_v4  ;;  %v5329_v17 = vpop.eup %5328  ;;  %2879 = vmatpush.bf16.msrb.mxu0 %v5145_v0  ;;  %v3057_v4 = vsel %vm2087_vm1, %v5156_v2, 0  ;;  %v5158_v0 = vld [vmem:[#allocation2 + $0x38] sm:$0xff] }
 0x3af   : > { %3066 = vmatpush.bf16.xpose.msra.mxu3 %v3057_v4 }
 0x3b1   : > { %3030 = vmatpush.bf16.msra.mxu1 %v5150_v16 }
 0x3b5   : > { %3031 = vmatpush.bf16.msra.mxu1 %v5149_v26 }
 0x3b9   : > { %3032 = vmatpush.bf16.msra.mxu1 %v5148_v28 }
 0x3bc   : > { %3033 = vmatmul.bf16.vlgmr.msra.gmra.mxu1 %v6173_v60 }
 0x3bd   : > { %4729 = vmatmul.msk.bf16.vlgmr.msra.gmra.mxu0 %vm2087_vm1, %v2718_v46 }
 0x405   : > { %v2422_v55 = vpop.xlane.xlu0 %2421 }
 0x406   : > { %v2426_v56 = vadd.f32 %v2422_v55, %v2418_v54 }
 0x408   : > { %v2500_v59 = vmul.f32 %v5325_v57, %v2426_v56 }
 0x40d   : > { %v2425_v6 = vpop.xlane.xlu1 %2424 }
 0x40e   : > { %v2427_v14 = vadd.f32 %v2425_v6, %v2419_v8 }
 0x410   : > { %v2501_v19 = vmul.f32 %v5329_v17, %v2427_v14 }
 0x417   : > { %v2504_v7 = vpop.xlane.xlu2 %2503 }
 0x418   : > { %v2508_v10 = vadd.f32 %v2504_v7, %v2500_v59 }
 0x419   : > { %v6342_v12 = vpop.f32.mrf.mxu1 }
 0x41a   : > { %5330 = vrcp.f32 %v2508_v10  ;;  %v2549_v30 = vand.u32 2147483648, %v2508_v10  ;;  %vm2543_vm12 = vweird.f32 %v2508_v10  ;;  %v2547_v32 = vand.u32 2147483647, %v2508_v10 }
 0x41c   : > { %v2550_v38 = vor.u32 1.1754944e-38, %v2549_v30  ;;  %vm2548_vm14 = vcmp.eq.f32.partialorder %v2547_v32, 8.507059e+37 }
 0x41e   : > { %v2447_v9 = vpop.f32.mrf.mxu2 }
 0x41f   : > { %v2452_v18 = vadd.f32 %v2447_v9, %v2418_v54  ;;  %v2507_v20 = vpop.xlane.xlu0 %2506 }
 0x420   : > { %v5331_v21 = vpop.eup %5330  ;;  %v2509_v22 = vadd.f32 %v2507_v20, %v2501_v19 }
 0x421   : > { %v2510_v23 = vmul.f32 %v5325_v57, %v2452_v18  ;;  %v2539_v24 = vmul.f32 %v5331_v21, %v2508_v10  ;;  %v6350_v25 = vpop.f32.mrf.mxu1  ;;  %vm2544_vm11 = vweird.f32 %v5331_v21 }
 0x422   : > { %5332 = vrcp.f32 %v2509_v22  ;;  %vm2545_vm13 = vmor %vm2543_vm12, %vm2544_vm11  ;;  %v2564_v46 = vand.u32 2147483648, %v2509_v22  ;;  %vm2558_vm0 = vweird.f32 %v2509_v22  ;;  %v2562_v48 = vand.u32 2147483647, %v2509_v22 }
 0x423   : > { %v2540_v27 = vsub.f32 1.0, %v2539_v24 }
 0x424   : > { %v2565_v52 = vor.u32 1.1754944e-38, %v2564_v46  ;;  %vm2563_vm4 = vcmp.eq.f32.partialorder %v2562_v48, 8.507059e+37  ;;  %v5147_v48 = vld [vmem:[%s6666_s7 + $0x28] sm:$0xff] }
 0x425   : > { %v2541_v29 = vmul.f32 %v5331_v21, %v2540_v27 }
 0x426   : > { %v2449_v37 = vpop.f32.mrf.mxu2 }
 0x427   : > { %v2542_v31 = vadd.f32 %v5331_v21, %v2541_v29  ;;  %v2453_v43 = vadd.f32 %v2449_v37, %v2419_v8 }
 0x428   : > { %v5333_v33 = vpop.eup %5332 }
 0x429   : > { %v2554_v34 = vmul.f32 %v5333_v33, %v2509_v22  ;;  %v2546_v35 = vsel %vm2545_vm13, %v5331_v21, %v2542_v31  ;;  %v2825_v36 = vpop.f32.mrf.mxu1  ;;  %vm2559_vm15 = vweird.f32 %v5333_v33  ;;  %v2511_v49 = vmul.f32 %v5329_v17, %v2453_v43 }
 0x42a   : > { %v2531_v11 = vpop.f32.mrf.mxu0  ;;  %v2830_v39 = vsel %vm2108_vm2, %v2825_v36, -inf  ;;  %v2551_v42 = vsel %vm2548_vm14, %v2550_v38, %v2546_v35  ;;  %vm2560_vm3 = vmor %vm2558_vm0, %vm2559_vm15 }
 0x42b   : > { %v2555_v40 = vsub.f32 1.0, %v2554_v34  ;;  %v2536_v41 = vadd.f32 %v2531_v11, %v2510_v23  ;;  %2831 = vmax.xlane.f32.xlu0 %v2830_v39 }
 0x42d   : > { %v2552_v44 = vmul.f32 %v2551_v42, %v2536_v41  ;;  %v2556_v45 = vmul.f32 %v5333_v33, %v2555_v40 }
 0x42f   : > { %v2557_v47 = vadd.f32 %v5333_v33, %v2556_v45 }
 0x431   : > { %v2561_v13 = vsel %vm2560_vm3, %v5333_v33, %v2557_v47  ;;  %v2827_v58 = vpop.f32.mrf.mxu1 }
 0x432   : > { %v2533_v51 = vpop.f32.mrf.mxu0  ;;  %v2566_v54 = vsel %vm2563_vm4, %v2565_v52, %v2561_v13  ;;  %v2833_v62 = vsel %vm2108_vm2, %v2827_v58, -inf }
 0x433   : > { %v2537_v53 = vadd.f32 %v2533_v51, %v2511_v49 }
 0x435   : > { %v2567_v55 = vmul.f32 %v2566_v54, %v2537_v53 }
 0x437   : > { %v2568_v56 = vpack.c.bf16 %v2567_v55, %v2552_v44 }
 0x439   : > { %4666 = vmatmul.msk.bf16.vlgmr.msrb.gmra.mxu2 %vm2087_vm1, %v2568_v56  ;;  %v3034_v1 = vpop.f32.mrf.mxu1 }
 0x43a   : > { %v2745_v60 = vpop.f32.mrf.mxu0  ;;  %v3035_v5 = vadd.f32 %v5287_v3, %v3034_v1  ;;  %2945 = vmatpush.bf16.msrb.mxu2 %v5147_v48 }
 0x43b   : > { %v2750_v57 = vsel %vm2108_vm2, %v2745_v60, -inf }
 0x43c   : > { %2751 = vmax.xlane.f32.xlu1 %v2750_v57  ;;  %v3039_v14 = vmul.f32 0.17677669, %v3035_v5  ;;  %v3137_v5 = vsel %vm2087_vm1, %v5158_v0, 0 }
 0x441   : > { %v3036_v10 = vpop.f32.mrf.mxu1 }
 0x442   : > { %v2747_v59 = vpop.f32.mrf.mxu0  ;;  %v3037_v15 = vadd.f32 %v5287_v3, %v3036_v10 }
 0x443   : > { %v2753_v61 = vsel %vm2108_vm2, %v2747_v59, -inf }
 0x444   : > { %2754 = vmax.xlane.f32.xlu2 %v2753_v61  ;;  %2834 = vmax.xlane.f32.xlu1 %v2833_v62  ;;  %v3040_v18 = vmul.f32 0.17677669, %v3037_v15 }
 0x446   : > { %v6368_v20 = vpack.c.bf16 %v3040_v18, %v3039_v14 }
 0x448   : > { %4811 = vmatmul.msk.bf16.vlgmr.msra.gmra.mxu3 %vm2087_vm1, %v6368_v20 }
 0x49e   : > { %v2832_v63 = vpop.xlane.xlu0 %2831 }
 0x4af   : > { %v2752_v6 = vpop.xlane.xlu1 %2751 }
 0x4b0   : > { %v2762_v7 = vsub.f32 %v2745_v60, %v2752_v6  ;;  %v2836_v8 = vmax.f32 %v2752_v6, %v2832_v63  ;;  %v2756_v38 = vsub.f32 -inf, %v2752_v6 }
 0x4b2   : > { %v2764_v16 = vmul.f32 1.442695, %v2762_v7  ;;  %v2838_v17 = vsub.f32 %v2752_v6, %v2836_v8  ;;  %v2844_v9 = vsub.f32 %v2825_v36, %v2836_v8  ;;  %v2758_v39 = vmul.f32 1.442695, %v2756_v38 }
 0x4b4   : > { %5334 = vpow2.f32 %v2764_v16  ;;  %v2846_v19 = vmul.f32 1.442695, %v2844_v9  ;;  %v2840_v41 = vmul.f32 1.442695, %v2838_v17 }
 0x4b6   : > { %5336 = vpow2.f32 %v2846_v19 }
 0x4b7   : > { %v2755_v21 = vpop.xlane.xlu2 %2754  ;;  %v2835_v22 = vpop.xlane.xlu1 %2834 }
 0x4b8   : > { %v2763_v23 = vsub.f32 %v2747_v59, %v2755_v21  ;;  %v2837_v24 = vmax.f32 %v2755_v21, %v2835_v22  ;;  %v2757_v40 = vsub.f32 -inf, %v2755_v21 }
 0x4ba   : > { %v5335_v26 = vpop.eup %5334  ;;  %v2766_v27 = vmul.f32 1.442695, %v2763_v23  ;;  %v2845_v28 = vsub.f32 %v2827_v58, %v2837_v24  ;;  %v2760_v42 = vmul.f32 1.442695, %v2757_v40  ;;  %v2839_v44 = vsub.f32 %v2755_v21, %v2837_v24  ;;  %v5146_v58 = vld [vmem:[%s6666_s7 + $0x20] sm:$0xff] }
 0x4bb   : > { %v2770_v29 = vsel %vm2108_vm2, %v5335_v26, 0.0  ;;  %2946 = vmatpush.bf16.msrb.mxu2 %v5146_v58 }
 0x4bc   : > { %5338 = vpow2.f32 %v2766_v27  ;;  %v2848_v30 = vmul.f32 1.442695, %v2845_v28  ;;  %2771 = vadd.xlane.f32.xlu2 %v2770_v29  ;;  %v5337_v31 = vpop.eup %5336  ;;  %v2842_v46 = vmul.f32 1.442695, %v2839_v44  ;;  %v6381_v55 = vpop.f32.mrf.mxu2 }
 0x4bd   : > { %v2852_v32 = vsel %vm2108_vm2, %v5337_v31, 0.0 }
 0x4be   : > { %5340 = vpow2.f32 %v2848_v30  ;;  %2853 = vadd.xlane.f32.xlu1 %v2852_v32 }
 0x4bf   : > { %5342 = vpow2.f32 %v2758_v39 }
 0x4c0   : > { %5344 = vpow2.f32 %v2840_v41 }
 0x4c1   : > { %5346 = vpow2.f32 %v2760_v42 }
 0x4c2   : > { %v5339_v33 = vpop.eup %5338  ;;  %5348 = vpow2.f32 %v2842_v46 }
 0x4c3   : > { %v2773_v34 = vsel %vm2108_vm2, %v5339_v33, 0.0  ;;  %v2778_v35 = vpack.c.bf16 %v5339_v33, %v5335_v26 }
 0x4c4   : > { %2774 = vadd.xlane.f32.xlu0 %v2773_v34  ;;  %v5341_v36 = vpop.eup %5340  ;;  %v6388_v6 = vpop.f32.mrf.mxu2 }
 0x4c5   : > { %4734 = vmatmul.msk.bf16.vlgmr.msra.gmra.mxu2 %vm2108_vm2, %v2778_v35  ;;  %v2855_v37 = vsel %vm2108_vm2, %v5341_v36, 0.0  ;;  %v2862_v11 = vpack.c.bf16 %v5341_v36, %v5337_v31  ;;  %v5343_v43 = vpop.eup %5342 }
 0x4c6   : > { %2856 = vadd.xlane.f32.xlu2 %v2855_v37  ;;  %v2768_v45 = vmul.f32 0.0, %v5343_v43  ;;  %v5345_v13 = vpop.eup %5344  ;;  %3146 = vmatpush.bf16.xpose.msra.mxu2 %v3137_v5 }
 0x4c7   : > { %4744 = vmatmul.msk.bf16.vlgmr.msrb.gmra.mxu0 %vm2108_vm2, %v2862_v11  ;;  %v5347_v52 = vpop.eup %5346 }
 0x4c8   : > { %v2769_v56 = vmul.f32 0.0, %v5347_v52  ;;  %v5349_v59 = vpop.eup %5348 }
 0x4cb   : > { %v3068_v62 = vpop.f32.mrf.mxu3 }
 0x4cc   : > { %v3073_v1 = vsel %vm2108_vm2, %v3068_v62, -inf }
 0x4cd   : > { %3074 = vmax.xlane.f32.xlu0 %v3073_v1 }
 0x4d3   : > { %v3070_v7 = vpop.f32.mrf.mxu3 }
 0x4d4   : > { %v3076_v10 = vsel %vm2108_vm2, %v3070_v7, -inf }
 0x4d5   : > { %3077 = vmax.xlane.f32.xlu1 %v3076_v10 }
 0x52f   : > { %v2772_v47 = vpop.xlane.xlu2 %2771 }
 0x530   : > { %v2776_v49 = vadd.f32 %v2772_v47, %v2768_v45 }
 0x531   : > { %v2854_v53 = vpop.xlane.xlu1 %2853 }
 0x532   : > { %v2850_v51 = vmul.f32 %v5345_v13, %v2776_v49  ;;  %v5157_v49 = vld [vmem:[#allocation3 + $0x30] sm:$0xff] }
 0x533   : > { %3118 = vmatpush.bf16.msra.mxu0 %v5157_v49 }
 0x534   : > { %v2858_v54 = vadd.f32 %v2854_v53, %v2850_v51 }
 0x536   : > { %5350 = vrcp.f32 %v2858_v54  ;;  %v2899_v18 = vand.u32 2147483648, %v2858_v54  ;;  %vm2893_vm6 = vweird.f32 %v2858_v54  ;;  %v2897_v21 = vand.u32 2147483647, %v2858_v54 }
 0x537   : > { %v2775_v60 = vpop.xlane.xlu0 %2774 }
 0x538   : > { %v2777_v57 = vadd.f32 %v2775_v60, %v2769_v56  ;;  %v2900_v27 = vor.u32 1.1754944e-38, %v2899_v18  ;;  %vm2898_vm8 = vcmp.eq.f32.partialorder %v2897_v21, 8.507059e+37 }
 0x539   : > { %v2857_v50 = vpop.xlane.xlu2 %2856 }
 0x53a   : > { %v2851_v61 = vmul.f32 %v5349_v59, %v2777_v57 }
 0x53c   : > { %v5351_v2 = vpop.eup %5350  ;;  %v2859_v3 = vadd.f32 %v2857_v50, %v2851_v61  ;;  %v5159_v50 = vld [vmem:[#allocation3 + $0x38] sm:$0xff] }
 0x53d   : > { %v2889_v4 = vmul.f32 %v5351_v2, %v2858_v54  ;;  %vm2894_vm5 = vweird.f32 %v5351_v2  ;;  %3202 = vmatpush.bf16.msrb.mxu3 %v5159_v50 }
 0x53e   : > { %5352 = vrcp.f32 %v2859_v3  ;;  %vm2895_vm7 = vmor %vm2893_vm6, %vm2894_vm5  ;;  %v2914_v33 = vand.u32 2147483648, %v2859_v3  ;;  %vm2908_vm10 = vweird.f32 %v2859_v3  ;;  %v2912_v35 = vand.u32 2147483647, %v2859_v3 }
 0x53f   : > { %v2890_v63 = vsub.f32 1.0, %v2889_v4 }
 0x540   : > { %v2915_v38 = vor.u32 1.1754944e-38, %v2914_v33  ;;  %vm2913_vm12 = vcmp.eq.f32.partialorder %v2912_v35, 8.507059e+37  ;;  %v3075_v43 = vpop.xlane.xlu0 %3074 }
 0x541   : > { %v2891_v8 = vmul.f32 %v5351_v2, %v2890_v63  ;;  %v3085_v44 = vsub.f32 %v3068_v62, %v3075_v43 }
 0x543   : > { %v2892_v17 = vadd.f32 %v5351_v2, %v2891_v8 }
 0x544   : > { %v5353_v14 = vpop.eup %5352  ;;  %v2881_v22 = vpop.f32.mrf.mxu0 }
 0x545   : > { %v2904_v15 = vmul.f32 %v5353_v14, %v2859_v3  ;;  %v2896_v26 = vsel %vm2895_vm7, %v5351_v2, %v2892_v17  ;;  %vm2909_vm9 = vweird.f32 %v5353_v14 }
 0x546   : > { %v2901_v29 = vsel %vm2898_vm8, %v2900_v27, %v2896_v26  ;;  %vm2910_vm11 = vmor %vm2908_vm10, %vm2909_vm9 }
 0x547   : > { %v2905_v16 = vsub.f32 1.0, %v2904_v15  ;;  %v3079_v15 = vsub.f32 -inf, %v3075_v43 }
 0x548   : > { %v2797_v9 = vpop.f32.mrf.mxu2  ;;  %v3078_v46 = vpop.xlane.xlu1 %3077 }
 0x549   : > { %v2802_v19 = vadd.f32 %v2797_v9, %v2768_v45  ;;  %v2906_v23 = vmul.f32 %v5353_v14, %v2905_v16  ;;  %v3087_v45 = vmul.f32 1.442695, %v3085_v44  ;;  %v3086_v47 = vsub.f32 %v3070_v7, %v3078_v46 }
 0x54a   : > { %v3081_v16 = vmul.f32 1.442695, %v3079_v15  ;;  %v3080_v9 = vsub.f32 -inf, %v3078_v46  ;;  %v1983_v15 = vld [vmem:[%s6170_s17] sm:$0xff]   ;;  %s3710_s17 = sadd.s32 %s4970_s0, %s4969_s29  ;;  %s3713_s29 = sshll.u32 %s5654_s21, 4  ;;  %s3714_s29 = int_to_ptr.vmem [resolvable:$true] %s3713_s29 }
 0x54b   : > { %v2860_v24 = vmul.f32 %v5345_v13, %v2802_v19  ;;  %v2907_v31 = vadd.f32 %v5353_v14, %v2906_v23  ;;  %v3089_v48 = vmul.f32 1.442695, %v3086_v47  ;;  %5354 = vpow2.f32 %v3087_v45  ;;  %v5161_v19 = vld [vmem:[%s6666_s7 + $0x38] sm:$0xff]  ;;  %s4971_s27 = sshll.u32 %s3710_s17, 3 }
 0x54c   : > { %v2883_v11 = vpop.f32.mrf.mxu0  ;;  %v3083_v21 = vmul.f32 1.442695, %v3080_v9  ;;  %3268 = vmatpush.bf16.msrb.mxu0 %v5161_v19  ;;  %s3712_s24 = scalar_lea.hbm %s6716_s18, %s4971_s27  ;;  %s5404_s27 = scalar_lea.hbm %s6716_s18, 64 }
 0x54d   : > { %v2886_v28 = vadd.f32 %v2881_v22, %v2860_v24  ;;  %v2911_v37 = vsel %vm2910_vm11, %v5353_v14, %v2907_v31  ;;  %5356 = vpow2.f32 %v3089_v48  ;;  %s3715_s0 = sshll.u32 %s3712_s24, 4  ;;  %s3716_s0 = int_to_ptr.hbm [resolvable:$true] %s3715_s0 }
 0x54e   : > { %v2916_v40 = vsel %vm2913_vm12, %v2915_v38, %v2911_v37  ;;  %s5398_s17 = sshra.s32 %s3716_s0, 4  ;;  %s5399_s17 = int_to_ptr.hbm [resolvable:$true] %s5398_s17 }
 0x54f   : > { %v2902_v30 = vmul.f32 %v2901_v29, %v2886_v28  ;;  %v5160_v28 = vld [vmem:[%s6666_s7 + $0x30] sm:$0xff]  ;;  %s5400_s23 = scalar_lea.hbm %s5399_s17, 16  ;;  %p5405_p4 = scmp.lt.s32.totalorder %s5399_s17, %s6716_s18 }
 0x550   : > { %v2799_v32 = vpop.f32.mrf.mxu2  ;;  %3269 = vmatpush.bf16.msrb.mxu0 %v5160_v28  ;;  %p5401_p0 = scmp.ne.s32.totalorder %s5399_s17, %s5400_s23  ;;  %p5406_p5 = scmp.lt.s32.totalorder %s5404_s27, %s5400_s23 }
 0x551   : > { %v2803_v34 = vadd.f32 %v2799_v32, %v2769_v56  ;;  %v5355_v13 = vpop.eup %5354 }
 0x552   : > { %v3093_v53 = vsel %vm2108_vm2, %v5355_v13, 0.0  ;;  %p5402_p1 = pnand %p5401_p0, %p5624_p3  ;;  %p5407_p6 = por %p5406_p5, %p5405_p4 }
 0x553   : > { %v2861_v36 = vmul.f32 %v5349_v59, %v2803_v34  ;;  %v5357_v51 = vpop.eup %5356  ;;  %3094 = vadd.xlane.f32.xlu1 %v3093_v53 }
 0x554   : > { %v3101_v52 = vpack.c.bf16 %v5357_v51, %v5355_v13  ;;  %v3096_v61 = vsel %vm2108_vm2, %v5357_v51, 0.0  ;;  %p5403_p2 = pneg %p5402_p1 }
 0x555   : > { %v2887_v39 = vadd.f32 %v2883_v11, %v2861_v36 }
 0x556   : > { %4816 = vmatmul.msk.bf16.vlgmr.msra.gmra.mxu0 %vm2108_vm2, %v3101_v52  ;;  %p5408_p7 = pnand %p5407_p6, %p5403_p2 }
 0x557   : > { %v2917_v41 = vmul.f32 %v2916_v40, %v2887_v39 }
 0x559   : > { %v2918_v42 = vpack.c.bf16 %v2917_v41, %v2902_v30 }
 0x55b   : > { %4757 = vmatmul.msk.bf16.vlgmr.msrb.gmra.mxu2 %vm2087_vm1, %v2918_v42 }
 0x56b   : > { %4821 = vmatmul.msk.bf16.vlgmr.msra.gmra.mxu2 %vm2087_vm1, %v6368_v20  ;;  %v2628_v20 = vadd.f32 %v6342_v12, %v6381_v55 }
 0x5c6   : > { %v3095_v27 = vpop.xlane.xlu1 %3094 }
 0x5d3   : > { %v3120_v42 = vpop.f32.mrf.mxu0 }
 0x5db   : > { %v3122_v51 = vpop.f32.mrf.mxu0 }
 0x5de   : > { %v2948_v54 = vpop.f32.mrf.mxu2 }
 0x5df   : > { %v6398_v56 = vadd.f32 %v2948_v54, %v2628_v20 }
 0x5e6   : > { %v6400_v60 = vpop.f32.mrf.mxu2 }
 0x5ee   : > { %v3148_v57 = vpop.f32.mrf.mxu2 }
 0x5ef   : > { %v3153_v58 = vsel %vm2108_vm2, %v3148_v57, -inf }
 0x5f0   : > { %3154 = vmax.xlane.f32.xlu2 %v3153_v58 }
 0x5f6   : > { %v3150_v59 = vpop.f32.mrf.mxu2 }
 0x5f7   : > { %v3156_v62 = vsel %vm2108_vm2, %v3150_v59, -inf }
 0x5f8   : > { %3097 = vadd.xlane.f32.xlu2 %v3096_v61  ;;  %3157 = vmax.xlane.f32.xlu0 %v3156_v62  ;;  %v5171_v61 = vld [vmem:[%s6670_s11 + $0x44] sm:$0xf0] }
 0x663   : > { %v3155_v0 = vpop.xlane.xlu2 %3154 }
 0x664   : > { %v3159_v12 = vmax.f32 %v3075_v43, %v3155_v0 }
 0x666   : > { %v3167_v55 = vsub.f32 %v3148_v57, %v3159_v12  ;;  %v3161_v17 = vsub.f32 %v3075_v43, %v3159_v12 }
 0x668   : > { %v3169_v1 = vmul.f32 1.442695, %v3167_v55  ;;  %v3163_v18 = vmul.f32 1.442695, %v3161_v17 }
 0x66a   : > { %5358 = vpow2.f32 %v3169_v1 }
 0x66b   : > { %v3158_v2 = vpop.xlane.xlu0 %3157  ;;  %v3098_v34 = vpop.xlane.xlu2 %3097 }
 0x66c   : > { %v3160_v3 = vmax.f32 %v3078_v46, %v3158_v2 }
 0x66e   : > { %v3168_v4 = vsub.f32 %v3150_v59, %v3160_v3  ;;  %v3162_v22 = vsub.f32 %v3078_v46, %v3160_v3 }
 0x670   : > { %v3171_v5 = vmul.f32 1.442695, %v3168_v4  ;;  %v5359_v63 = vpop.eup %5358  ;;  %v3165_v24 = vmul.f32 1.442695, %v3162_v22 }
 0x671   : > { %v3175_v7 = vsel %vm2108_vm2, %v5359_v63, 0.0 }
 0x672   : > { %5360 = vpow2.f32 %v3171_v5  ;;  %3176 = vadd.xlane.f32.xlu0 %v3175_v7 }
 0x673   : > { %5362 = vpow2.f32 %v3081_v16  ;;  %v5288_v16 = vld [vmem:[%s6667_s8] ss:$0 sm:$0xff] }
 0x674   : > { %5364 = vpow2.f32 %v3163_v18  ;;  %v1985_v18 = vunpack.c.l.bf16 %v1983_v15 }
 0x675   : > { %5366 = vpow2.f32 %v3083_v21  ;;  %v2630_v21 = vadd.f32 %v6350_v25, %v6388_v6 }
 0x676   : > { %5368 = vpow2.f32 %v3165_v24 }
 0x678   : > { %v5361_v8 = vpop.eup %5360 }
 0x679   : > { %v3185_v10 = vpack.c.bf16 %v5361_v8, %v5359_v63  ;;  %v3178_v14 = vsel %vm2108_vm2, %v5361_v8, 0.0  ;;  %v5363_v23 = vpop.eup %5362 }
 0x67a   : > { %3179 = vadd.xlane.f32.xlu1 %v3178_v14  ;;  %v3091_v26 = vmul.f32 0.0, %v5363_v23  ;;  %v5365_v29 = vpop.eup %5364  ;;  %v2954_v23 = vadd.f32 %v6400_v60, %v2630_v21  ;;  %v4842_v21 = vld [vmem:[%s6670_s11] sm:$0xf] }
 0x67b   : > { %4826 = vmatmul.msk.bf16.vlgmr.msrb.gmra.mxu3 %vm2108_vm2, %v3185_v10  ;;  %v5367_v31 = vpop.eup %5366 }
 0x67c   : > { %v3099_v30 = vadd.f32 %v3095_v27, %v3091_v26  ;;  %v3092_v35 = vmul.f32 0.0, %v5367_v31  ;;  %v5369_v37 = vpop.eup %5368  ;;  %v3125_v52 = vadd.f32 %v3120_v42, %v3091_v26  ;;  %v1986_v27 = vunpack.c.h.bf16 %v1983_v15  ;;  %v5176_v42 = vld [vmem:[%s6670_s11 + $0x74] sm:$0xf] }
 0x67e   : > { %v3173_v33 = vmul.f32 %v5365_v29, %v3099_v30  ;;  %v3100_v11 = vadd.f32 %v3098_v34, %v3092_v35  ;;  %v3126_v54 = vadd.f32 %v3122_v51, %v3092_v35  ;;  %v3183_v59 = vmul.f32 %v5365_v29, %v3125_v52  ;;  %v4882_v52 = vld [vmem:[%s6670_s11 + $0x50] sm:$0xf] }
 0x67f   : > { %v5480_v30 = vmov 128.0  }
 0x680   : > { %v3174_v38 = vmul.f32 %v5369_v37, %v3100_v11  ;;  %v3184_v55 = vmul.f32 %v5369_v37, %v3126_v54 }
 0x6e5   : > { %v3177_v32 = vpop.xlane.xlu0 %3176 }
 0x6e6   : > { %v3181_v36 = vadd.f32 %v3177_v32, %v3173_v33 }
 0x6e8   : > { %5370 = vrcp.f32 %v3181_v36  ;;  %vm3216_vm14 = vweird.f32 %v3181_v36  ;;  %v3222_v57 = vand.u32 2147483648, %v3181_v36  ;;  %v3220_v62 = vand.u32 2147483647, %v3181_v36 }
 0x6ea   : > { %v3223_v2 = vor.u32 1.1754944e-38, %v3222_v57  ;;  %vm3221_vm4 = vcmp.eq.f32.partialorder %v3220_v62, 8.507059e+37  ;;  %v4884_v57 = vld [vmem:[%s6670_s11 + $0x58] sm:$0xf0]  ;;  %v5170_v62 = vld [vmem:[%s6670_s11 + $0x44] sm:$0xf] }
 0x6ed   : > { %v3180_v39 = vpop.xlane.xlu1 %3179 }
 0x6ee   : > { %v3182_v40 = vadd.f32 %v3180_v39, %v3174_v38  ;;  %v5371_v41 = vpop.eup %5370 }
 0x6ef   : > { %v3212_v43 = vmul.f32 %v5371_v41, %v3181_v36  ;;  %vm3217_vm2 = vweird.f32 %v5371_v41 }
 0x6f0   : > { %5372 = vrcp.f32 %v3182_v40  ;;  %v3237_v58 = vand.u32 2147483648, %v3182_v40  ;;  %vm6414_vm15 = vmor %vm3216_vm14, %vm3217_vm2  ;;  %vm3231_vm0 = vweird.f32 %v3182_v40  ;;  %v3235_v50 = vand.u32 2147483647, %v3182_v40 }
 0x6f1   : > { %v3213_v46 = vsub.f32 1.0, %v3212_v43  ;;  %5374 = vrcp.f32 %v5480_v30 }
 0x6f2   : > { %v3238_v4 = vor.u32 1.1754944e-38, %v3237_v58  ;;  %vm3236_vm5 = vcmp.eq.f32.partialorder %v3235_v50, 8.507059e+37 }
 0x6f3   : > { %v3214_v48 = vmul.f32 %v5371_v41, %v3213_v46  ;;  %v4890_v46 = vld [vmem:[%s6670_s11 + $0x60] sm:$0xf] }
 0x6f5   : > { %v3215_v53 = vadd.f32 %v5371_v41, %v3214_v48  ;;  %v5174_v48 = vld [vmem:[%s6670_s11 + $0x64] sm:$0xf] }
 0x6f6   : > { %v5373_v44 = vpop.eup %5372 }
 0x6f7   : > { %v3227_v45 = vmul.f32 %v5373_v44, %v3182_v40  ;;  %vm3232_vm13 = vweird.f32 %v5373_v44  ;;  %v3219_v12 = vsel %vm6414_vm15, %v5371_v41, %v3215_v53  ;;  %v5375_v31 = vpop.eup %5374  ;;  %v4898_v40 = vld [vmem:[%s6670_s11 + $0x70] sm:$0xf]  ;;  %v5177_v41 = vld [vmem:[%s6670_s11 + $0x74] sm:$0xf0] }
 0x6f8   : > { %vm3233_vm3 = vmor %vm3231_vm0, %vm3232_vm13  ;;  %v3224_v63 = vsel %vm3221_vm4, %v3223_v2, %v3219_v12  ;;  %v3293_v32 = vmul.f32 128.0, %v5375_v31  ;;  %v4899_v43 = vor.u32 %v5177_v41, %v4898_v40  ;;  %v5173_v53 = vld [vmem:[%s6670_s11 + $0x54] sm:$0xf0]  ;;  %v5168_v2 = vld [vmem:[%s6670_s11 + $0x34] sm:$0xf] }
 0x6f9   : > { %v3228_v47 = vsub.f32 1.0, %v3227_v45  ;;  %v4883_v54 = vor.u32 %v5173_v53, %v4882_v52  ;;  %v5183_v40 = vld [vmem:[%s6672_s13 + $0x28] sm:$0xff]  ;;  %v5289_v53 = vld [vmem:[%s6668_s9] ss:$0 sm:$0xff] }
 0x6fa   : > { %3448 = vmatpush.bf16.msrb.mxu2 %v4899_v43  ;;  %v5190_v43 = vld [vmem:[%s6672_s13 + $0x60] sm:$0xff] }
 0x6fb   : > { %v3229_v49 = vmul.f32 %v5373_v44, %v3228_v47  ;;  %v5175_v47 = vld [vmem:[%s6670_s11 + $0x64] sm:$0xf0] }
 0x6fd   : > { %v3230_v20 = vadd.f32 %v5373_v44, %v3229_v49  ;;  %v4891_v49 = vor.u32 %v5175_v47, %v4890_v46 }
 0x6fe   : > { %v3204_v13 = vpop.f32.mrf.mxu3 }
 0x6ff   : > { %v3209_v0 = vadd.f32 %v3204_v13, %v3183_v59  ;;  %v3234_v1 = vsel %vm3233_vm3, %v5373_v44, %v3230_v20  ;;  %v4900_v44 = vld [vmem:[%s6670_s11 + $0x78] sm:$0xf0]  ;;  %v4892_v13 = vld [vmem:[%s6670_s11 + $0x68] sm:$0xf0]  ;;  %3449 = vmatpush.bf16.msrb.mxu2 %v4891_v49  ;;  %v5172_v20 = vld [vmem:[%s6670_s11 + $0x54] sm:$0xf] }
 0x700   : > { %v3239_v7 = vsel %vm3236_vm5, %v3238_v4, %v3234_v1  ;;  %v4903_v45 = vor.u32 %v5176_v42, %v4900_v44  ;;  %v4895_v51 = vor.u32 %v5174_v48, %v4892_v13  ;;  %v4887_v58 = vor.u32 %v5172_v20, %v4884_v57  ;;  %v4874_v59 = vld [vmem:[%s6670_s11 + $0x40] sm:$0xf]  ;;  %v5169_v1 = vld [vmem:[%s6670_s11 + $0x34] sm:$0xf0]  ;;  %v4868_v4 = vld [vmem:[%s6670_s11 + $0x38] sm:$0xf0] }
 0x701   : > { %v3225_v8 = vmul.f32 %v3224_v63, %v3209_v0  ;;  %v4875_v50 = vor.u32 %v5171_v61, %v4874_v59  ;;  %v4876_v0 = vld [vmem:[%s6670_s11 + $0x48] sm:$0xf0]  ;;  %v4858_v63 = vld [vmem:[%s6670_s11 + $0x20] sm:$0xf] }
 0x702   : > { %3462 = vmatpush.bf16.msrb.mxu1 %v4903_v45  ;;  %v4879_v12 = vor.u32 %v5170_v62, %v4876_v0  ;;  %v5290_v59 = vld [vmem:[%s6669_s10] ss:$0 sm:$0xff] }
 0x703   : > { %3450 = vmatpush.bf16.msrb.mxu2 %v4883_v54 }
 0x706   : > { %v3206_v3 = vpop.f32.mrf.mxu3  ;;  %3463 = vmatpush.bf16.msrb.mxu1 %v4895_v51 }
 0x707   : > { %v3210_v5 = vadd.f32 %v3206_v3, %v3184_v55  ;;  %3451 = vmatpush.bf16.msrb.mxu2 %v4875_v50  ;;  %v4866_v55 = vld [vmem:[%s6670_s11 + $0x30] sm:$0xf] }
 0x708   : > { %v4867_v3 = vor.u32 %v5169_v1, %v4866_v55  ;;  %v5181_v55 = vld [vmem:[%s6672_s13 + $0x18] sm:$0xff]  ;;  %v5187_v1 = vld [vmem:[%s6672_s13 + $0x48] sm:$0xff] }
 0x709   : > { %v3240_v10 = vmul.f32 %v3239_v7, %v3210_v5  ;;  %v4871_v5 = vor.u32 %v5168_v2, %v4868_v4  ;;  %v5167_v7 = vld [vmem:[%s6670_s11 + $0x24] sm:$0xf0]  ;;  %v5180_v2 = vld [vmem:[%s6672_s13 + $0x10] sm:$0xff] }
 0x70a   : > { %3464 = vmatpush.bf16.msrb.mxu1 %v4887_v58  ;;  %v5179_v4 = vld [vmem:[%s6672_s13 + $0x8] sm:$0xff] }
 0x70b   : > { %v3241_v14 = vpack.c.bf16 %v3240_v10, %v3225_v8  ;;  %3452 = vmatpush.bf16.msrb.mxu2 %v4867_v3  ;;  %v5166_v8 = vld [vmem:[%s6670_s11 + $0x24] sm:$0xf]  ;;  %v4859_v10 = vor.u32 %v5167_v7, %v4858_v63  ;;  %v3362_v63 = vld [vmem:[%s6671_s12] sm:$0x3] }
 0x70c   : > { %v5186_v3 = vld [vmem:[%s6672_s13 + $0x40] sm:$0xff] }
 0x70d   : > { %4839 = vmatmul.msk.bf16.vlgmr.msrb.gmra.mxu0 %vm2087_vm1, %v3241_v14  ;;  %vm3297_vm1 = vweird.f32 %v5375_v31  ;;  %v4860_v14 = vld [vmem:[%s6670_s11 + $0x28] sm:$0xf0] }
 0x70e   : > { %3465 = vmatpush.bf16.msrb.mxu1 %v4879_v12  ;;  %v4863_v15 = vor.u32 %v5166_v8, %v4860_v14  ;;  %v5188_v12 = vld [vmem:[%s6672_s13 + $0x50] sm:$0xff]  ;;  %v3365_v8 = vperm.slane %v3362_v63, 1 }
 0x70f   : > { %3453 = vmatpush.bf16.msrb.mxu2 %v4859_v10 }
 0x712   : > { %3466 = vmatpush.bf16.msrb.mxu1 %v4871_v5  ;;  %v5178_v5 = vld [vmem:[%s6672_s13] sm:$0xff] }
 0x716   : > { %3467 = vmatpush.bf16.msrb.mxu1 %v4863_v15 }
 0x78a   : > { %v3271_v17 = vpop.f32.mrf.mxu0 }
 0x78b   : > { %v3276_v9 = vadd.f32 %v3271_v17, %v6398_v56  ;;  %v3294_v56 = vsub.f32 1.0, %v3293_v32  ;;  %v5165_v17 = vld [vmem:[%s6670_s11 + $0x14] sm:$0xf0] }
 0x78c   : > { %v5193_v32 = vld [vmem:[%s6672_s13 + $0x78] sm:$0xff] }
 0x78d   : > { %v3282_v19 = vadd.f32 %v5288_v16, %v3276_v9  ;;  %v3295_v33 = vmul.f32 %v5375_v31, %v3294_v56  ;;  %v5164_v9 = vld [vmem:[%s6670_s11 + $0x14] sm:$0xf]  ;;  %v5185_v56 = vld [vmem:[%s6672_s13 + $0x38] sm:$0xff]  ;;  %3628 = vmatpush.bf16.msra.mxu0 %v5193_v32 }
 0x78e   : > { %3614 = vmatpush.bf16.msra.mxu3 %v5185_v56 }
 0x78f   : > { %v3284_v22 = vadd.f32 %v3282_v19, %v1985_v18  ;;  %v3296_v34 = vadd.f32 %v5375_v31, %v3295_v33  ;;  %v4852_v19 = vld [vmem:[%s6670_s11 + $0x18] sm:$0xf0] }
 0x791   : > { %3288 = vadd.xlane.f32.xlu2 %v3284_v22  ;;  %v6429_v35 = vsel %vm3297_vm1, %v5375_v31, %v3296_v34 }
 0x792   : > { %v3273_v24 = vpop.f32.mrf.mxu0 }
 0x793   : > { %v3277_v26 = vadd.f32 %v3273_v24, %v2954_v23  ;;  %v4855_v24 = vor.u32 %v5164_v9, %v4852_v19 }
 0x795   : > { %v3283_v28 = vadd.f32 %v5288_v16, %v3277_v26  ;;  %v4850_v16 = vld [vmem:[%s6670_s11 + $0x10] sm:$0xf]  ;;  %v5162_v26 = vld [vmem:[%s6670_s11 + $0x4] sm:$0xf]  ;;  %3468 = vmatpush.bf16.msrb.mxu1 %v4855_v24 }
 0x796   : > { %v4851_v18 = vor.u32 %v5165_v17, %v4850_v16  ;;  %v3364_v16 = vperm.slane %v3362_v63, 0 }
 0x797   : > { %v3285_v29 = vadd.f32 %v3283_v28, %v1986_v27  ;;  %v4844_v27 = vld [vmem:[%s6670_s11 + $0x8] sm:$0xf0] }
 0x798   : > { %3454 = vmatpush.bf16.msrb.mxu2 %v4851_v18  ;;  %v4847_v30 = vor.u32 %v5162_v26, %v4844_v27 }
 0x799   : > { %3290 = vadd.xlane.f32.xlu0 %v3285_v29 }
 0x79a   : > { %3469 = vmatpush.bf16.msrb.mxu1 %v4847_v30 }
 0x804   : > { %v3289_v25 = vpop.xlane.xlu2 %3288 }
 0x805   : > { %v3299_v6 = vmul.f32 %v6429_v35, %v3289_v25  ;;  %v5192_v25 = vld [vmem:[%s6672_s13 + $0x70] sm:$0xff] }
 0x806   : > { %3629 = vmatpush.bf16.msra.mxu0 %v5192_v25 }
 0x807   : > { %v6432_v60 = vsub.f32 %v3284_v22, %v3299_v6  ;;  %v5163_v22 = vld [vmem:[%s6670_s11 + $0x4] sm:$0xf0]  ;;  %v5184_v6 = vld [vmem:[%s6672_s13 + $0x30] sm:$0xff] }
 0x808   : > { %3615 = vmatpush.bf16.msra.mxu3 %v5184_v6 }
 0x809   : > { %v3303_v36 = vmul.f32 %v6432_v60, %v6432_v60 }
 0x80b   : > { %3305 = vadd.xlane.f32.xlu1 %v3303_v36 }
 0x80c   : > { %v3291_v37 = vpop.xlane.xlu0 %3290  ;;  %3616 = vmatpush.bf16.msra.mxu3 %v5183_v40 }
 0x80d   : > { %v3300_v11 = vmul.f32 %v6429_v35, %v3291_v37 }
 0x80f   : > { %v6437_v38 = vsub.f32 %v3285_v29, %v3300_v11  ;;  %v4843_v29 = vor.u32 %v5163_v22, %v4842_v21 }
 0x811   : > { %v3304_v39 = vmul.f32 %v6437_v38, %v6437_v38  ;;  %3455 = vmatpush.bf16.msrb.mxu2 %v4843_v29 }
 0x813   : > { %3307 = vadd.xlane.f32.xlu2 %v3304_v39  ;;  %v5191_v39 = vld [vmem:[%s6672_s13 + $0x68] sm:$0xff] }
 0x814   : > { %3630 = vmatpush.bf16.msra.mxu0 %v5191_v39 }
 0x818   : > { %3631 = vmatpush.bf16.msra.mxu0 %v5190_v43 }
 0x87e   : > { %v3306_v23 = vpop.xlane.xlu1 %3305 }
 0x87f   : > { %v3309_v28 = vmul.f32 %v3306_v23, %v6429_v35 }
 0x881   : > { %v3311_v31 = vadd.f32 1e-05, %v3309_v28  ;;  %v5291_v28 = vld [vmem:[%s6673_s14] ss:$0 sm:$0xff] }
 0x883   : > { %5376 = vrsqrt.f32 %v3311_v31  ;;  %vm3319_vm7 = vweird.f32 %v3311_v31 }
 0x886   : > { %v3308_v33 = vpop.xlane.xlu2 %3307 }
 0x887   : > { %v3310_v34 = vmul.f32 %v3308_v33, %v6429_v35 }
 0x889   : > { %v5377_v36 = vpop.eup %5376  ;;  %v3312_v37 = vadd.f32 1e-05, %v3310_v34 }
 0x88a   : > { %v3314_v11 = vmul.f32 %v5377_v36, %v3311_v31  ;;  %vm3320_vm6 = vweird.f32 %v5377_v36 }
 0x88b   : > { %5378 = vrsqrt.f32 %v3312_v37  ;;  %vm3321_vm8 = vmor %vm3319_vm7, %vm3320_vm6  ;;  %vm3329_vm10 = vweird.f32 %v3312_v37 }
 0x88c   : > { %v3315_v41 = vmul.f32 %v5377_v36, %v3314_v11 }
 0x88e   : > { %v3316_v42 = vmul.f32 0.5, %v3315_v41 }
 0x890   : > { %v3317_v44 = vsub.f32 1.5, %v3316_v42 }
 0x891   : > { %v5379_v45 = vpop.eup %5378 }
 0x892   : > { %v3318_v46 = vmul.f32 %v5377_v36, %v3317_v44  ;;  %v3324_v47 = vmul.f32 %v5379_v45, %v3312_v37  ;;  %vm3330_vm9 = vweird.f32 %v5379_v45 }
 0x893   : > { %vm3331_vm11 = vmor %vm3329_vm10, %vm3330_vm9 }
 0x894   : > { %v3325_v48 = vmul.f32 %v5379_v45, %v3324_v47  ;;  %v3322_v49 = vsel %vm3321_vm8, %v5377_v36, %v3318_v46 }
 0x895   : > { %v3333_v52 = vmul.f32 %v3322_v49, %v6432_v60  ;;  %v5189_v60 = vld [vmem:[%s6672_s13 + $0x58] sm:$0xff] }
 0x896   : > { %v3326_v13 = vmul.f32 0.5, %v3325_v48  ;;  %3632 = vmatpush.bf16.msra.mxu0 %v5189_v60 }
 0x897   : > { %v3338_v58 = vmul.f32 %v5289_v53, %v3333_v52 }
 0x898   : > { %v3327_v51 = vsub.f32 1.5, %v3326_v13 }
 0x899   : > { %v3343_v62 = vadd.f32 %v5290_v59, %v3338_v58 }
 0x89a   : > { %v3328_v20 = vmul.f32 %v5379_v45, %v3327_v51  ;;  %3633 = vmatpush.bf16.msra.mxu0 %v5188_v12 }
 0x89c   : > { %v3332_v54 = vsel %vm3331_vm11, %v5379_v45, %v3328_v20 }
 0x89d   : > { %v3334_v57 = vmul.f32 %v3332_v54, %v6437_v38  ;;  %v5182_v38 = vld [vmem:[%s6672_s13 + $0x20] sm:$0xff] }
 0x89e   : > { %3617 = vmatpush.bf16.msra.mxu3 %v5182_v38  ;;  %3634 = vmatpush.bf16.msra.mxu0 %v5187_v1 }
 0x89f   : > { %v3339_v61 = vmul.f32 %v5289_v53, %v3334_v57 }
 0x8a1   : > { %v3344_v50 = vadd.f32 %v5290_v59, %v3339_v61  ;;  %v5292_v61 = vld [vmem:[%s6674_s15] ss:$0 sm:$0xff] }
 0x8a2   : > { %3618 = vmatpush.bf16.msra.mxu3 %v5181_v55  ;;  %3635 = vmatpush.bf16.msra.mxu0 %v5186_v3 }
 0x8a3   : > { %v3345_v0 = vpack.c.bf16 %v3344_v50, %v3343_v62 }
 0x8a5   : > { %3456 = vmatmul.bf16.vlgmr.msrb.gmra.mxu2 %v3345_v0  ;;  %3470 = vmatmul.bf16.vlgmr.msrb.gmra.mxu1 %v3345_v0  ;;  %v5293_v0 = vld [vmem:[%s6715_s1] ss:$0 sm:$0xff] }
 0x8a6   : > { %3619 = vmatpush.bf16.msra.mxu3 %v5180_v2 }
 0x8aa   : > { %3620 = vmatpush.bf16.msra.mxu3 %v5179_v4 }
 0x8ae   : > { %3621 = vmatpush.bf16.msra.mxu3 %v5178_v5 }
 0x922   : > { %v3471_v7 = vpop.f32.mrf.mxu1 }
 0x923   : > { %v3472_v14 = vadd.f32 %v3471_v7, %v3365_v8 }
 0x925   : > { %v3477_v9 = vmax.f32 %v3472_v14, 0.0 }
 0x928   : > { %v3457_v10 = vpop.f32.mrf.mxu2 }
 0x929   : > { %v3458_v19 = vadd.f32 %v3457_v10, %v3364_v16 }
 0x92a   : > { %v3473_v15 = vpop.f32.mrf.mxu1 }
 0x92b   : > { %v3474_v17 = vadd.f32 %v3473_v15, %v3365_v8  ;;  %v3476_v24 = vmax.f32 %v3458_v19, 0.0 }
 0x92d   : > { %v3479_v18 = vmax.f32 %v3474_v17, 0.0 }
 0x92f   : > { %v3481_v21 = vpack.c.bf16 %v3479_v18, %v3477_v9 }
 0x930   : > { %v3459_v22 = vpop.f32.mrf.mxu2 }
 0x931   : > { %v3460_v23 = vadd.f32 %v3459_v22, %v3364_v16  ;;  %3636 = vmatmul.bf16.vlgmr.msra.gmra.mxu0 %v3481_v21 }
 0x933   : > { %v3478_v26 = vmax.f32 %v3460_v23, 0.0 }
 0x935   : > { %v3480_v27 = vpack.c.bf16 %v3478_v26, %v3476_v24 }
 0x937   : > { %3622 = vmatmul.bf16.vlgmr.msra.gmra.mxu3 %v3480_v27 }
 0x9ae   : > { %v3637_v29 = vpop.f32.mrf.mxu0 }
 0x9b6   : > { %v3639_v25 = vpop.f32.mrf.mxu0 }
 0x9ba   : > { %v3623_v30 = vpop.f32.mrf.mxu3 }
 0x9bb   : > { %v3624_v31 = vadd.f32 %v5291_v28, %v3623_v30 }
 0x9bd   : > { %v3638_v32 = vadd.f32 %v3637_v29, %v3624_v31 }
 0x9bf   : > { %v3642_v56 = vadd.f32 %v3638_v32, %v3343_v62 }
 0x9c1   : > { %3646 = vadd.xlane.f32.xlu0 %v3642_v56 }
 0x9c2   : > { %v3625_v33 = vpop.f32.mrf.mxu3 }
 0x9c3   : > { %v3626_v34 = vadd.f32 %v5291_v28, %v3625_v33 }
 0x9c5   : > { %v3640_v6 = vadd.f32 %v3639_v25, %v3626_v34 }
 0x9c7   : > { %v3643_v36 = vadd.f32 %v3640_v6, %v3344_v50 }
 0x9c9   : > { %3648 = vadd.xlane.f32.xlu1 %v3643_v36 }
 0xa34   : > { %v3647_v37 = vpop.xlane.xlu0 %3646 }
 0xa35   : > { %v3650_v11 = vmul.f32 %v3647_v37, %v6429_v35 }
 0xa37   : > { %v3652_v39 = vsub.f32 %v3642_v56, %v3650_v11 }
 0xa39   : > { %v3654_v40 = vmul.f32 %v3652_v39, %v3652_v39 }
 0xa3b   : > { %3656 = vadd.xlane.f32.xlu2 %v3654_v40 }
 0xa3c   : > { %v3649_v41 = vpop.xlane.xlu1 %3648 }
 0xa3d   : > { %v3651_v42 = vmul.f32 %v3649_v41, %v6429_v35 }
 0xa3f   : > { %v3653_v43 = vsub.f32 %v3643_v36, %v3651_v42 }
 0xa41   : > { %v3655_v44 = vmul.f32 %v3653_v43, %v3653_v43 }
 0xa43   : > { %3658 = vadd.xlane.f32.xlu0 %v3655_v44 }
 0xaae   : > { %v3657_v45 = vpop.xlane.xlu2 %3656 }
 0xaaf   : > { %v3660_v46 = vmul.f32 %v3657_v45, %v6429_v35 }
 0xab1   : > { %v3662_v47 = vadd.f32 1e-05, %v3660_v46 }
 0xab3   : > { %5380 = vrsqrt.f32 %v3662_v47  ;;  %vm3670_vm2 = vweird.f32 %v3662_v47 }
 0xab6   : > { %v3659_v48 = vpop.xlane.xlu0 %3658 }
 0xab7   : > { %v3661_v49 = vmul.f32 %v3659_v48, %v6429_v35 }
 0xab9   : > { %v5381_v13 = vpop.eup %5380  ;;  %v3663_v51 = vadd.f32 1e-05, %v3661_v49 }
 0xaba   : > { %v3665_v52 = vmul.f32 %v5381_v13, %v3662_v47  ;;  %vm3671_vm12 = vweird.f32 %v5381_v13 }
 0xabb   : > { %5382 = vrsqrt.f32 %v3663_v51  ;;  %vm3672_vm13 = vmor %vm3670_vm2, %vm3671_vm12  ;;  %vm3680_vm15 = vweird.f32 %v3663_v51 }
 0xabc   : > { %v3666_v53 = vmul.f32 %v5381_v13, %v3665_v52 }
 0xabe   : > { %v3667_v20 = vmul.f32 0.5, %v3666_v53 }
 0xac0   : > { %v3668_v54 = vsub.f32 1.5, %v3667_v20 }
 0xac1   : > { %v5383_v57 = vpop.eup %5382 }
 0xac2   : > { %v3669_v58 = vmul.f32 %v5381_v13, %v3668_v54  ;;  %v3675_v59 = vmul.f32 %v5383_v57, %v3663_v51  ;;  %vm3681_vm14 = vweird.f32 %v5383_v57 }
 0xac3   : > { %vm3682_vm0 = vmor %vm3680_vm15, %vm3681_vm14 }
 0xac4   : > { %v3673_v35 = vsel %vm3672_vm13, %v5381_v13, %v3669_v58  ;;  %v3676_v62 = vmul.f32 %v5383_v57, %v3675_v59 }
 0xac5   : > { %v3684_v50 = vmul.f32 %v3673_v35, %v3652_v39 }
 0xac6   : > { %v3677_v60 = vmul.f32 0.5, %v3676_v62 }
 0xac7   : > { %v3689_v38 = vmul.f32 %v5292_v61, %v3684_v50 }
 0xac8   : > { %v3678_v12 = vsub.f32 1.5, %v3677_v60 }
 0xac9   : > { %v3694_v55 = vadd.f32 %v5293_v0, %v3689_v38 }
 0xaca   : > { %v3679_v1 = vmul.f32 %v5383_v57, %v3678_v12 }
 0xacb   : > { %3696 = vst [vmem:[%s5654_s21] sm:$0xff] %v3694_v55 }
 0xacc   : > { %v3683_v2 = vsel %vm3682_vm0, %v5383_v57, %v3679_v1 }
 0xacd   : > { %v3685_v3 = vmul.f32 %v3683_v2, %v3653_v43 }
 0xacf   : > { %v3690_v4 = vmul.f32 %v5292_v61, %v3685_v3 }
 0xad1   : > { %v3695_v5 = vadd.f32 %v5293_v0, %v3690_v4 }
 0xad3   : > { %3697 = vst [vmem:[%s5654_s21 + $0x8] sm:$0xff] %v3695_v5 }
 0xad4   : > { %5411 = shalt.err (!%p5408_p7)
}
 0xad5   : > { %s5481_s21 = smov 128   ;;  %s5482_s24 = smov 8  }
 0xad6   : > { %5194 = dma.vmem_to_hbm [thread:$0]  (%p5624_p3), %s3714_s29, 256, %s3716_s0, %s3699_s22, %s5481_s21, %s5481_s21, %s5482_s24  }
 0xad7 PF: > { %s6719_s26 = sld [smem:[#allocation11_spill]] }
 0xad8   : > { %s6720_s2 = sld [smem:[#allocation7_spill]] }
 0xadd   : > { %p5200_p9 = scmp.ge.s32.totalorder %s6719_s26, 2 }
 0xade   : > { %s3730_s16 = sand.u32 1, %s6720_s2  }
 0xadf   : > { %p5197_p10 = pnand %p5200_p9, %p5633_p8  ;;  %s3731_s1 = scalar_lea.sflag [#allocation5], %s3730_s16 }
 0xae1   : > { %p5198_p11 = pneg %p5197_p10 }
 0xae3   : > { %5445 = dma.done.wait (%p5198_p11), %s3731_s1, 256  }
 0xae4   : > { %5447 = vsyncadd (%p5198_p11), %s3731_s1, 4294967040  ;;  %s30_s30 = sadd.s32 1, %s6719_s26   ;;  %s6722_s17 = sld [smem:[#allocation8_spill]] }
 0xae5   : > { %p27_p12 = scmp.ge.s32.totalorder %s30_s30, 6   ;;  %s6723_s26 = sld [smem:[#allocation16_spill]] }
 0xae6   : > { %s6724_s27 = sld [smem:[#allocation9_spill]]  ;;  %s6728_s24 = smov %s5454_s25 }
 0xae7   : > { %s6725_s28 = sld [smem:[#allocation10_spill]]  ;;  %29 = sbr.rel (!%p27_p12) target bundleno = 12 (0xc), region = 161 }
 0xae8   : > { %s6726_s29 = sld [smem:[#allocation12_spill]] }
 0xae9   : > { %s6727_s0 = sld [smem:[#allocation14_spill]] }
 0xaea   : > { %s6729_s25 = smov %s6722_s17 }
 0xaec   :  { %3737 = vsyncpa [#allocation5], 1 }
 0xaed   :  { %3739 = vsyncpa [#allocation5 + $0x1], 1 }

</bundles_post_ra>
